<compile_context>
chip_gen: v7x
topology: tpu7x:2x2x1
jax: 0.10.0
libtpu: 0.0.40
codegen_flags: <defaults>
</compile_context>

<pallas_src>
import functools

import jax
import jax.numpy as jnp
from jax import lax
from jax.experimental import pallas as pl
from jax.experimental.pallas import tpu as pltpu

NEG_SLOPE = 0.01   # nn.LeakyReLU default
LN_EPS = 1e-5      # nn.LayerNorm default


# ----------------------------------------------------------------------------
# Fused forward kernel: one grid step == one block of `sb` samples.
# Samples are stacked along the sublane (channel) axis; all 1x1-convs use
# block-diagonal weights so each conv is still a single MXU matmul.
# ----------------------------------------------------------------------------
def _fused_forward_kernel(ab_ref,        # SMEM: [alpha, beta]
                          x_ref,         # (1, sb*c_in, P)
                          bias_ref,      # (2*sb*f, 1): [prenet_b ; iter_b]
                          pw_ref,        # (sb*f, sb*c_in)     prenet weight
                          iw_ref,        # (sb*f, sb*f)        iter weight
                          ewa_ref,       # (sb*f, sb*f)        extractor, copy_input half
                          cew_ref,       # (sb*(nc+f), sb*f)   [classifier ; extractor hidden half]
                          dw_ref,        # (sb*f, sb*nc)       declassifier
                          ln_ref,        # (6, P): [g1;b1;g2;b2;g3;b3]
                          out_ref,       # (1, max_stack, sb*nc, P)
                          *, max_stack, sb, f, num_class):
    alpha = ab_ref[0]
    beta = ab_ref[1]
    sbf = sb * f
    sbnc = sb * num_class

    dot = functools.partial(jnp.dot, preferred_element_type=jnp.float32)

    def lrelu(y):
        return jnp.maximum(y, NEG_SLOPE * y)

    def ln(y, grow):
        # One-pass 'layerHW' LayerNorm over the flattened H*W lane axis,
        # per (sample, channel) sublane row.  gamma/beta read at point of use.
        g = ln_ref[grow:grow + 1, :]
        b = ln_ref[grow + 1:grow + 2, :]
        mean = jnp.mean(y, axis=-1, keepdims=True)
        msq = jnp.mean(y * y, axis=-1, keepdims=True)
        var = jnp.maximum(msq - mean * mean, 0.0)
        return (y - mean) * lax.rsqrt(var + LN_EPS) * g + b

    x = x_ref[0]                                              # (sb*c_in, P)

    # hidden = prenet(x)   (synthetic 1x1 conv + LeakyReLU stand-in)
    hidden = lrelu(dot(pw_ref[...], x) + bias_ref[:sbf, :])   # (sb*f, P)

    # copy_input half of the extractor (constant across iterations).
    # extractor bias dropped: it cancels exactly in the layerHW LayerNorm.
    ext_const = dot(ewa_ref[...], hidden)                     # (sb*f, P)

    # hidden_con = LeakyReLU(bn1(extractor(cat(copy_input, zeros))))
    hc = lrelu(ln(ext_const, 0))
    iter_in = alpha * hc                                      # i == 0 input

    for i in range(max_stack):                                # static unroll
        # hidden = iter_net(iter_in)   (synthetic 1x1 conv + LeakyReLU)
        hidden = lrelu(dot(iw_ref[...], iter_in) + bias_ref[sbf:2 * sbf, :])

        if i < max_stack - 1:
            # fused classifier + extractor-hidden-half matmul
            ce = dot(cew_ref[...], hidden)                    # (sb*(nc+f), P)
            segmentation = lrelu(ln(ce[:sbnc], 2))            # bn2 branch
            out_ref[0, i] = segmentation
            residual = lrelu(ln(dot(dw_ref[...], segmentation), 4))
            hc_next = lrelu(ln(ext_const + ce[sbnc:], 0))
            # pre-combine next iteration's input (prev_hidden == current hc)
            iter_in = beta * residual + alpha * hc_next + hc
            hc = hc_next
        else:
            # last iteration: residual / extractor update are dead -> skip
            segmentation = lrelu(ln(dot(cew_ref[:sbnc, :], hidden), 2))
            out_ref[0, i] = segmentation


# ----------------------------------------------------------------------------
# Wrapper: single pallas_call for the whole network
# ----------------------------------------------------------------------------
@functools.partial(jax.jit,
                   static_argnames=("max_stack", "num_class", "samples_per_block"))
def network_forward(x, params, *, max_stack, num_class, samples_per_block):
    n, c_in, h, w = x.shape
    p = h * w
    sb = samples_per_block
    assert n % sb == 0, (n, sb)
    nb = n // sb
    f = params["iter_w"].shape[0]

    # Samples of a block stacked along the channel/sublane axis.
    xr = x.reshape(nb, sb * c_in, p)

    def bd(wm):  # block-diagonal replicate over the samples of a block
        co, ci = wm.shape
        if sb == 1:
            return wm
        out = jnp.zeros((sb * co, sb * ci), wm.dtype)
        for s in range(sb):
            out = lax.dynamic_update_slice(out, wm, (s * co, s * ci))
        return out

    ext_wa = params["ext_w"][:, :f]    # copy_input half
    ext_wb = params["ext_w"][:, f:]    # hidden half

    pw = bd(params["prenet_w"])
    iw = bd(params["iter_w"])
    ewa = bd(ext_wa)
    # row-stack classifier and extractor-hidden-half (both consume `hidden`)
    cew = jnp.concatenate([bd(params["cls_w"]), bd(ext_wb)], axis=0)
    dw = bd(params["dec_w"])

    bias_pack = jnp.concatenate([jnp.tile(params["prenet_b"], (sb, 1)),
                                 jnp.tile(params["iter_b"], (sb, 1))], axis=0)
    ln_pack = jnp.concatenate([params["ln1_g"], params["ln1_b"],
                               params["ln2_g"], params["ln2_b"],
                               params["ln3_g"], params["ln3_b"]], axis=0)
    ab = jnp.stack([params["alpha"], params["beta"]]).astype(jnp.float32)

    kernel = functools.partial(_fused_forward_kernel, max_stack=max_stack,
                               sb=sb, f=f, num_class=num_class)
    const2d = lambda i: (0, 0)

    out = pl.pallas_call(
        kernel,
        out_shape=jax.ShapeDtypeStruct((nb, max_stack, sb * num_class, p),
                                       jnp.float32),
        grid=(nb,),
        in_specs=[
            pl.BlockSpec(memory_space=pltpu.MemorySpace.SMEM),          # alpha/beta
            pl.BlockSpec((1, sb * c_in, p), lambda i: (i, 0, 0)),       # x
            pl.BlockSpec((2 * sb * f, 1), const2d),                     # biases
            pl.BlockSpec((sb * f, sb * c_in), const2d),                 # prenet_w
            pl.BlockSpec((sb * f, sb * f), const2d),                    # iter_w
            pl.BlockSpec((sb * f, sb * f), const2d),                    # ext_w (a half)
            pl.BlockSpec((sb * (num_class + f), sb * f), const2d),      # cls + ext_b half
            pl.BlockSpec((sb * f, sb * num_class), const2d),            # dec_w
            pl.BlockSpec((6, p), const2d),                              # LN pack
        ],
        out_specs=pl.BlockSpec((1, max_stack, sb * num_class, p),
                               lambda i: (i, 0, 0, 0)),
        compiler_params=pltpu.CompilerParams(
            dimension_semantics=("parallel",)),
    )(ab, xr, bias_pack, pw, iw, ewa, cew, dw, ln_pack)

    # (nb, S, sb*nc, P) -> (nb, S, sb, nc, P) -> (nb, sb, S, nc, P) -> final
    out = out.reshape(nb, max_stack, sb, num_class, p)
    out = jnp.transpose(out, (0, 2, 1, 3, 4))
    return out.reshape(n, max_stack, num_class, h, w)


def pick_samples_per_block(n, f):
    """Fold the whole batch into one grid step on single-TC chips; keep a
    2-step parallel grid on v7x (2 TensorCores per chip)."""
    try:
        kind = jax.devices()[0].device_kind.lower()
    except Exception:
        kind = ""
    if "v7" in kind or "7x" in kind:
        sb = max(1, n // 2)
    else:
        sb = n
    # keep block-diagonal K/M within one MXU tile
    sb = max(1, min(sb, max(1, 128 // f)))
    while n % sb:
        sb -= 1
    return sb


# ----------------------------------------------------------------------------
# Pure-JAX reference (mirrors the PyTorch forward with the concat and the
# pre-LN conv biases) for checking.
# ----------------------------------------------------------------------------
@functools.partial(jax.jit, static_argnames=("max_stack", "num_class"))
def reference_forward(x, params, *, max_stack, num_class):
    n, c_in, h, w = x.shape
    p = h * w
    xr = x.reshape(n, c_in, p)

    def conv(w_, b_, t):     # 1x1 conv: (co, ci) @ (n, ci, p)
        return jnp.einsum("oc,ncp->nop", w_, t,
                          precision=lax.Precision.HIGHEST) + b_[None]

    def ln(t, g, b):
        mean = jnp.mean(t, axis=-1, keepdims=True)
        var = jnp.mean((t - mean) ** 2, axis=-1, keepdims=True)
        return (t - mean) * lax.rsqrt(var + LN_EPS) * g[None] + b[None]

    def lrelu(t):
        return jnp.where(t >= 0, t, NEG_SLOPE * t)

    hidden = lrelu(conv(params["prenet_w"], params["prenet_b"], xr))
    copy_input = hidden
    initial_hidden = jnp.zeros_like(hidden)
    hidden_cat = jnp.concatenate([copy_input, initial_hidden], axis=1)
    hidden_con = lrelu(ln(conv(params["ext_w"], params["ext_b"], hidden_cat),
                          params["ln1_g"], params["ln1_b"]))
    alpha, beta = params["alpha"], params["beta"]
    outs = []
    residual = None
    prev_hidden = None
    for i in range(max_stack):
        temp_prev_hidden = hidden_con
        if i > 0:
            iter_in = beta * residual + alpha * hidden_con + prev_hidden
        else:
            iter_in = alpha * hidden_con
        hidden = lrelu(conv(params["iter_w"], params["iter_b"], iter_in))
        segmentation = lrelu(ln(conv(params["cls_w"], params["cls_b"], hidden),
                                params["ln2_g"], params["ln2_b"]))
        residual = lrelu(ln(conv(params["dec_w"], params["dec_b"], segmentation),
                            params["ln3_g"], params["ln3_b"]))
        outs.append(segmentation)
        if i < max_stack - 1:
            hidden_cat = jnp.concatenate([copy_input, hidden], axis=1)
            hidden_con = lrelu(ln(conv(params["ext_w"], params["ext_b"], hidden_cat),
                                  params["ln1_g"], params["ln1_b"]))
            prev_hidden = temp_prev_hidden
    out = jnp.swapaxes(jnp.stack(outs, axis=0), 0, 1)
    return out.reshape(n, max_stack, num_class, h, w)


# ----------------------------------------------------------------------------
# Deterministic synthetic parameters
# ----------------------------------------------------------------------------
def make_params(key, *, c_in, f, num_class, h, w):
    keys = jax.random.split(key, 10)
    p_hw = h * w

    def conv_w(k, co, ci):
        return 0.1 * jax.random.normal(k, (co, ci), jnp.float32)

    def conv_b(k, co):
        return 0.05 * jax.random.normal(k, (co, 1), jnp.float32)

    return {
        # TODO(synk): prenet / base sub-networks are config-driven imports in
        # the original code; substituted with 1x1 conv + LeakyReLU stand-ins.
        "prenet_w": conv_w(keys[0], f, c_in),
        "prenet_b": conv_b(keys[1], f),
        "iter_w": conv_w(keys[2], f, f),
        "iter_b": conv_b(keys[3], f),
        # extractor: Conv2d(2f, f, 1).  Its bias (and cls_b / dec_b) feed
        # straight into a layerHW LayerNorm and cancel exactly -> the Pallas
        # kernel drops them; they are kept here for the reference path.
        "ext_w": conv_w(keys[4], f, 2 * f),
        "ext_b": conv_b(keys[5], f),
        # classifier: Conv2d(f, num_class, 1)
        "cls_w": conv_w(keys[6], num_class, f),
        "cls_b": conv_b(keys[7], num_class),
        # declassifier: Conv2d(num_class, f, 1)
        "dec_w": conv_w(keys[8], f, num_class),
        "dec_b": conv_b(keys[9], f),
        # layerHW LayerNorms over [H, W] (flattened to P), default init
        "ln1_g": jnp.ones((1, p_hw), jnp.float32),
        "ln1_b": jnp.zeros((1, p_hw), jnp.float32),
        "ln2_g": jnp.ones((1, p_hw), jnp.float32),
        "ln2_b": jnp.zeros((1, p_hw), jnp.float32),
        "ln3_g": jnp.ones((1, p_hw), jnp.float32),
        "ln3_b": jnp.zeros((1, p_hw), jnp.float32),
        # alpha / beta scalars (module init 0.0)
        "alpha": jnp.float32(0.0),
        "beta": jnp.float32(0.0),
    }


# ----------------------------------------------------------------------------
if __name__ == "__main__":
    # config: f=32, num_class=8, oup_dim=(16,16), max_stack=3, input C=4, N=2
    N, C_IN, H, W = 2, 4, 16, 16
    F, NUM_CLASS, MAX_STACK = 32, 8, 3

    key = jax.random.PRNGKey(0)
    k_x, k_p = jax.random.split(key)
    x = jax.random.normal(k_x, (N, C_IN, H, W), jnp.float32)
    params = make_params(k_p, c_in=C_IN, f=F, num_class=NUM_CLASS, h=H, w=W)
    SB = pick_samples_per_block(N, F)

    # 1) module init (alpha = beta = 0, default LN affine)
    out0 = jax.block_until_ready(
        network_forward(x, params, max_stack=MAX_STACK, num_class=NUM_CLASS,
                        samples_per_block=SB))
    ref0 = jax.block_until_ready(
        reference_forward(x, params, max_stack=MAX_STACK, num_class=NUM_CLASS))
    assert out0.shape == (N, MAX_STACK, NUM_CLASS, H, W), out0.shape
    assert bool(jnp.all(jnp.isfinite(out0)))
    assert bool(jnp.allclose(out0, ref0, atol=1e-3, rtol=1e-3))

    # 2) nonzero alpha/beta + random LN affine + random (inert) conv biases to
    #    exercise the recurrence path and the bias-cancellation claim.
    kk = jax.random.split(jax.random.PRNGKey(1), 9)
    params_nz = dict(
        params,
        alpha=jnp.float32(0.3), beta=jnp.float32(0.2),
        ln1_g=1.0 + 0.1 * jax.random.normal(kk[0], (1, H * W), jnp.float32),
        ln1_b=0.1 * jax.random.normal(kk[1], (1, H * W), jnp.float32),
        ln2_g=1.0 + 0.1 * jax.random.normal(kk[2], (1, H * W), jnp.float32),
        ln2_b=0.1 * jax.random.normal(kk[3], (1, H * W), jnp.float32),
        ln3_g=1.0 + 0.1 * jax.random.normal(kk[4], (1, H * W), jnp.float32),
        ln3_b=0.1 * jax.random.normal(kk[5], (1, H * W), jnp.float32),
        ext_b=0.5 * jax.random.normal(kk[6], (F, 1), jnp.float32),
        cls_b=0.5 * jax.random.normal(kk[7], (NUM_CLASS, 1), jnp.float32),
        dec_b=0.5 * jax.random.normal(kk[8], (F, 1), jnp.float32),
    )
    out1 = jax.block_until_ready(
        network_forward(x, params_nz, max_stack=MAX_STACK, num_class=NUM_CLASS,
                        samples_per_block=SB))
    ref1 = jax.block_until_ready(
        reference_forward(x, params_nz, max_stack=MAX_STACK, num_class=NUM_CLASS))
    assert bool(jnp.all(jnp.isfinite(out1)))
    assert bool(jnp.allclose(out1, ref1, atol=1e-3, rtol=1e-3))

    print("KERNEL_OK")
</pallas_src>

<mosaic_0001>
module attributes {stable_mosaic.version = 11 : i64} {
  func.func @_fused_forward_kernel(%arg0: i32, %arg1: memref<2xf32, #tpu.memory_space<smem>>, %arg2: memref<1x8x256xf32, #tpu.memory_space<vmem>>, %arg3: memref<128x1xf32, #tpu.memory_space<vmem>>, %arg4: memref<64x8xf32, #tpu.memory_space<vmem>>, %arg5: memref<64x64xf32, #tpu.memory_space<vmem>>, %arg6: memref<64x64xf32, #tpu.memory_space<vmem>>, %arg7: memref<80x64xf32, #tpu.memory_space<vmem>>, %arg8: memref<64x16xf32, #tpu.memory_space<vmem>>, %arg9: memref<6x256xf32, #tpu.memory_space<vmem>>, %arg10: memref<1x3x16x256xf32, #tpu.memory_space<vmem>>) attributes {dimension_semantics = [#tpu.dimension_semantics<parallel>], iteration_bounds = array<i64: 1>, scalar_prefetch = 0 : i64, scratch_operands = 0 : i64, tpu.core_type = #tpu.core_type<tc>, window_params = [{transform_indices = @transform_0, window_bounds = array<i64: 2>}, {transform_indices = @transform_1, window_bounds = array<i64: 1, 8, 256>}, {pipeline_mode = #tpu.pipeline_mode<synchronous>, transform_indices = @transform_2, window_bounds = array<i64: 128, 1>}, {pipeline_mode = #tpu.pipeline_mode<synchronous>, transform_indices = @transform_3, window_bounds = array<i64: 64, 8>}, {pipeline_mode = #tpu.pipeline_mode<synchronous>, transform_indices = @transform_4, window_bounds = array<i64: 64, 64>}, {pipeline_mode = #tpu.pipeline_mode<synchronous>, transform_indices = @transform_5, window_bounds = array<i64: 64, 64>}, {pipeline_mode = #tpu.pipeline_mode<synchronous>, transform_indices = @transform_6, window_bounds = array<i64: 80, 64>}, {pipeline_mode = #tpu.pipeline_mode<synchronous>, transform_indices = @transform_7, window_bounds = array<i64: 64, 16>}, {pipeline_mode = #tpu.pipeline_mode<synchronous>, transform_indices = @transform_8, window_bounds = array<i64: 6, 256>}, {transform_indices = @transform_9, window_bounds = array<i64: 1, 3, 16, 256>}]} {
    %c0 = arith.constant 0 : index
    %0 = memref.load %arg1[%c0] : memref<2xf32, #tpu.memory_space<smem>>
    %c1 = arith.constant 1 : index
    %1 = memref.load %arg1[%c1] : memref<2xf32, #tpu.memory_space<smem>>
    %c0_0 = arith.constant 0 : index
    %c0_1 = arith.constant 0 : index
    %c0_2 = arith.constant 0 : index
    %2 = vector.load %arg2[%c0_0, %c0_1, %c0_2] : memref<1x8x256xf32, #tpu.memory_space<vmem>>, vector<1x8x256xf32>
    %3 = vector.shape_cast %2 : vector<1x8x256xf32> to vector<8x256xf32>
    %c0_3 = arith.constant 0 : index
    %c0_4 = arith.constant 0 : index
    %4 = vector.load %arg4[%c0_3, %c0_4] : memref<64x8xf32, #tpu.memory_space<vmem>>, vector<64x8xf32>
    %cst = arith.constant dense<0.000000e+00> : vector<64x256xf32>
    %5 = tpu.matmul %4, %3, %cst {dimension_numbers = #tpu.dot_dimension_numbers<[1], [0], [0], [1], [0, 0, 1, 1], [], []>} : vector<64x8xf32>, vector<8x256xf32>, vector<64x256xf32> -> vector<64x256xf32>
    %c0_5 = arith.constant 0 : index
    %c0_6 = arith.constant 0 : index
    %6 = vector.load %arg3[%c0_5, %c0_6] : memref<128x1xf32, #tpu.memory_space<vmem>>, vector<64x1xf32>
    %7 = vector.broadcast %6 : vector<64x1xf32> to vector<64x256xf32>
    %8 = arith.addf %5, %7 : vector<64x256xf32>
    %cst_7 = arith.constant 0.00999999977 : f32
    %9 = vector.broadcast %cst_7 : f32 to vector<64x256xf32>
    %10 = arith.mulf %9, %8 : vector<64x256xf32>
    %11 = arith.maximumf %8, %10 : vector<64x256xf32>
    %c0_8 = arith.constant 0 : index
    %c0_9 = arith.constant 0 : index
    %12 = vector.load %arg6[%c0_8, %c0_9] : memref<64x64xf32, #tpu.memory_space<vmem>>, vector<64x64xf32>
    %cst_10 = arith.constant dense<0.000000e+00> : vector<64x256xf32>
    %13 = tpu.matmul %12, %11, %cst_10 {dimension_numbers = #tpu.dot_dimension_numbers<[1], [0], [0], [1], [0, 0, 1, 1], [], []>} : vector<64x64xf32>, vector<64x256xf32>, vector<64x256xf32> -> vector<64x256xf32>
    %c0_11 = arith.constant 0 : index
    %c0_12 = arith.constant 0 : index
    %14 = vector.load %arg9[%c0_11, %c0_12] : memref<6x256xf32, #tpu.memory_space<vmem>>, vector<1x256xf32>
    %c1_13 = arith.constant 1 : index
    %c0_14 = arith.constant 0 : index
    %15 = vector.load %arg9[%c1_13, %c0_14] : memref<6x256xf32, #tpu.memory_space<vmem>>, vector<1x256xf32>
    %cst_15 = arith.constant dense<0.000000e+00> : vector<64xf32>
    %16 = vector.multi_reduction <add>, %13, %cst_15 [1] : vector<64x256xf32> to vector<64xf32>
    %17 = vector.shape_cast %16 : vector<64xf32> to vector<64x1xf32>
    %cst_16 = arith.constant 2.560000e+02 : f32
    %18 = vector.broadcast %cst_16 : f32 to vector<64x1xf32>
    %19 = arith.divf %17, %18 : vector<64x1xf32>
    %20 = arith.mulf %13, %13 : vector<64x256xf32>
    %cst_17 = arith.constant dense<0.000000e+00> : vector<64xf32>
    %21 = vector.multi_reduction <add>, %20, %cst_17 [1] : vector<64x256xf32> to vector<64xf32>
    %22 = vector.shape_cast %21 : vector<64xf32> to vector<64x1xf32>
    %cst_18 = arith.constant 2.560000e+02 : f32
    %23 = vector.broadcast %cst_18 : f32 to vector<64x1xf32>
    %24 = arith.divf %22, %23 : vector<64x1xf32>
    %25 = arith.mulf %19, %19 : vector<64x1xf32>
    %26 = arith.subf %24, %25 : vector<64x1xf32>
    %cst_19 = arith.constant 0.000000e+00 : f32
    %27 = vector.broadcast %cst_19 : f32 to vector<64x1xf32>
    %28 = arith.maximumf %26, %27 : vector<64x1xf32>
    %29 = vector.broadcast %19 : vector<64x1xf32> to vector<64x256xf32>
    %30 = arith.subf %13, %29 : vector<64x256xf32>
    %cst_20 = arith.constant 9.99999974E-6 : f32
    %31 = vector.broadcast %cst_20 : f32 to vector<64x1xf32>
    %32 = arith.addf %28, %31 : vector<64x1xf32>
    %33 = math.rsqrt %32 : vector<64x1xf32>
    %34 = vector.broadcast %33 : vector<64x1xf32> to vector<64x256xf32>
    %35 = arith.mulf %30, %34 : vector<64x256xf32>
    %36 = vector.broadcast %14 : vector<1x256xf32> to vector<64x256xf32>
    %37 = arith.mulf %35, %36 : vector<64x256xf32>
    %38 = vector.broadcast %15 : vector<1x256xf32> to vector<64x256xf32>
    %39 = arith.addf %37, %38 : vector<64x256xf32>
    %cst_21 = arith.constant 0.00999999977 : f32
    %40 = vector.broadcast %cst_21 : f32 to vector<64x256xf32>
    %41 = arith.mulf %40, %39 : vector<64x256xf32>
    %42 = arith.maximumf %39, %41 : vector<64x256xf32>
    %43 = vector.broadcast %0 : f32 to vector<64x256xf32>
    %44 = arith.mulf %43, %42 : vector<64x256xf32>
    %c0_22 = arith.constant 0 : index
    %c0_23 = arith.constant 0 : index
    %45 = vector.load %arg5[%c0_22, %c0_23] : memref<64x64xf32, #tpu.memory_space<vmem>>, vector<64x64xf32>
    %cst_24 = arith.constant dense<0.000000e+00> : vector<64x256xf32>
    %46 = tpu.matmul %45, %44, %cst_24 {dimension_numbers = #tpu.dot_dimension_numbers<[1], [0], [0], [1], [0, 0, 1, 1], [], []>} : vector<64x64xf32>, vector<64x256xf32>, vector<64x256xf32> -> vector<64x256xf32>
    %c64 = arith.constant 64 : index
    %c0_25 = arith.constant 0 : index
    %47 = vector.load %arg3[%c64, %c0_25] : memref<128x1xf32, #tpu.memory_space<vmem>>, vector<64x1xf32>
    %48 = vector.broadcast %47 : vector<64x1xf32> to vector<64x256xf32>
    %49 = arith.addf %46, %48 : vector<64x256xf32>
    %cst_26 = arith.constant 0.00999999977 : f32
    %50 = vector.broadcast %cst_26 : f32 to vector<64x256xf32>
    %51 = arith.mulf %50, %49 : vector<64x256xf32>
    %52 = arith.maximumf %49, %51 : vector<64x256xf32>
    %c0_27 = arith.constant 0 : index
    %c0_28 = arith.constant 0 : index
    %53 = vector.load %arg7[%c0_27, %c0_28] : memref<80x64xf32, #tpu.memory_space<vmem>>, vector<80x64xf32>
    %cst_29 = arith.constant dense<0.000000e+00> : vector<80x256xf32>
    %54 = tpu.matmul %53, %52, %cst_29 {dimension_numbers = #tpu.dot_dimension_numbers<[1], [0], [0], [1], [0, 0, 1, 1], [], []>} : vector<80x64xf32>, vector<64x256xf32>, vector<80x256xf32> -> vector<80x256xf32>
    %55 = vector.extract_strided_slice %54 {offsets = [0, 0], sizes = [16, 256], strides = [1, 1]} : vector<80x256xf32> to vector<16x256xf32>
    %c2 = arith.constant 2 : index
    %c0_30 = arith.constant 0 : index
    %56 = vector.load %arg9[%c2, %c0_30] : memref<6x256xf32, #tpu.memory_space<vmem>>, vector<1x256xf32>
    %c3 = arith.constant 3 : index
    %c0_31 = arith.constant 0 : index
    %57 = vector.load %arg9[%c3, %c0_31] : memref<6x256xf32, #tpu.memory_space<vmem>>, vector<1x256xf32>
    %cst_32 = arith.constant dense<0.000000e+00> : vector<16xf32>
    %58 = vector.multi_reduction <add>, %55, %cst_32 [1] : vector<16x256xf32> to vector<16xf32>
    %59 = vector.shape_cast %58 : vector<16xf32> to vector<16x1xf32>
    %cst_33 = arith.constant 2.560000e+02 : f32
    %60 = vector.broadcast %cst_33 : f32 to vector<16x1xf32>
    %61 = arith.divf %59, %60 : vector<16x1xf32>
    %62 = arith.mulf %55, %55 : vector<16x256xf32>
    %cst_34 = arith.constant dense<0.000000e+00> : vector<16xf32>
    %63 = vector.multi_reduction <add>, %62, %cst_34 [1] : vector<16x256xf32> to vector<16xf32>
    %64 = vector.shape_cast %63 : vector<16xf32> to vector<16x1xf32>
    %cst_35 = arith.constant 2.560000e+02 : f32
    %65 = vector.broadcast %cst_35 : f32 to vector<16x1xf32>
    %66 = arith.divf %64, %65 : vector<16x1xf32>
    %67 = arith.mulf %61, %61 : vector<16x1xf32>
    %68 = arith.subf %66, %67 : vector<16x1xf32>
    %cst_36 = arith.constant 0.000000e+00 : f32
    %69 = vector.broadcast %cst_36 : f32 to vector<16x1xf32>
    %70 = arith.maximumf %68, %69 : vector<16x1xf32>
    %71 = vector.broadcast %61 : vector<16x1xf32> to vector<16x256xf32>
    %72 = arith.subf %55, %71 : vector<16x256xf32>
    %cst_37 = arith.constant 9.99999974E-6 : f32
    %73 = vector.broadcast %cst_37 : f32 to vector<16x1xf32>
    %74 = arith.addf %70, %73 : vector<16x1xf32>
    %75 = math.rsqrt %74 : vector<16x1xf32>
    %76 = vector.broadcast %75 : vector<16x1xf32> to vector<16x256xf32>
    %77 = arith.mulf %72, %76 : vector<16x256xf32>
    %78 = vector.broadcast %56 : vector<1x256xf32> to vector<16x256xf32>
    %79 = arith.mulf %77, %78 : vector<16x256xf32>
    %80 = vector.broadcast %57 : vector<1x256xf32> to vector<16x256xf32>
    %81 = arith.addf %79, %80 : vector<16x256xf32>
    %cst_38 = arith.constant 0.00999999977 : f32
    %82 = vector.broadcast %cst_38 : f32 to vector<16x256xf32>
    %83 = arith.mulf %82, %81 : vector<16x256xf32>
    %84 = arith.maximumf %81, %83 : vector<16x256xf32>
    %c0_39 = arith.constant 0 : index
    %c0_40 = arith.constant 0 : index
    %c0_41 = arith.constant 0 : index
    %c0_42 = arith.constant 0 : index
    %85 = vector.load %arg10[%c0_39, %c0_40, %c0_41, %c0_42] : memref<1x3x16x256xf32, #tpu.memory_space<vmem>>, vector<1x1x16x256xf32>
    %86 = vector.shape_cast %85 : vector<1x1x16x256xf32> to vector<16x256xf32>
    %87 = vector.shape_cast %84 : vector<16x256xf32> to vector<1x1x16x256xf32>
    tpu.vector_store %arg10[%c0_39, %c0_40, %c0_41, %c0_42], %87 {strides = array<i32>} : memref<1x3x16x256xf32, #tpu.memory_space<vmem>>, vector<1x1x16x256xf32>,
    %c0_43 = arith.constant 0 : index
    %c0_44 = arith.constant 0 : index
    %88 = vector.load %arg8[%c0_43, %c0_44] : memref<64x16xf32, #tpu.memory_space<vmem>>, vector<64x16xf32>
    %cst_45 = arith.constant dense<0.000000e+00> : vector<64x256xf32>
    %89 = tpu.matmul %88, %84, %cst_45 {dimension_numbers = #tpu.dot_dimension_numbers<[1], [0], [0], [1], [0, 0, 1, 1], [], []>} : vector<64x16xf32>, vector<16x256xf32>, vector<64x256xf32> -> vector<64x256xf32>
    %c4 = arith.constant 4 : index
    %c0_46 = arith.constant 0 : index
    %90 = vector.load %arg9[%c4, %c0_46] : memref<6x256xf32, #tpu.memory_space<vmem>>, vector<1x256xf32>
    %c5 = arith.constant 5 : index
    %c0_47 = arith.constant 0 : index
    %91 = vector.load %arg9[%c5, %c0_47] : memref<6x256xf32, #tpu.memory_space<vmem>>, vector<1x256xf32>
    %cst_48 = arith.constant dense<0.000000e+00> : vector<64xf32>
    %92 = vector.multi_reduction <add>, %89, %cst_48 [1] : vector<64x256xf32> to vector<64xf32>
    %93 = vector.shape_cast %92 : vector<64xf32> to vector<64x1xf32>
    %cst_49 = arith.constant 2.560000e+02 : f32
    %94 = vector.broadcast %cst_49 : f32 to vector<64x1xf32>
    %95 = arith.divf %93, %94 : vector<64x1xf32>
    %96 = arith.mulf %89, %89 : vector<64x256xf32>
    %cst_50 = arith.constant dense<0.000000e+00> : vector<64xf32>
    %97 = vector.multi_reduction <add>, %96, %cst_50 [1] : vector<64x256xf32> to vector<64xf32>
    %98 = vector.shape_cast %97 : vector<64xf32> to vector<64x1xf32>
    %cst_51 = arith.constant 2.560000e+02 : f32
    %99 = vector.broadcast %cst_51 : f32 to vector<64x1xf32>
    %100 = arith.divf %98, %99 : vector<64x1xf32>
    %101 = arith.mulf %95, %95 : vector<64x1xf32>
    %102 = arith.subf %100, %101 : vector<64x1xf32>
    %cst_52 = arith.constant 0.000000e+00 : f32
    %103 = vector.broadcast %cst_52 : f32 to vector<64x1xf32>
    %104 = arith.maximumf %102, %103 : vector<64x1xf32>
    %105 = vector.broadcast %95 : vector<64x1xf32> to vector<64x256xf32>
    %106 = arith.subf %89, %105 : vector<64x256xf32>
    %cst_53 = arith.constant 9.99999974E-6 : f32
    %107 = vector.broadcast %cst_53 : f32 to vector<64x1xf32>
    %108 = arith.addf %104, %107 : vector<64x1xf32>
    %109 = math.rsqrt %108 : vector<64x1xf32>
    %110 = vector.broadcast %109 : vector<64x1xf32> to vector<64x256xf32>
    %111 = arith.mulf %106, %110 : vector<64x256xf32>
    %112 = vector.broadcast %90 : vector<1x256xf32> to vector<64x256xf32>
    %113 = arith.mulf %111, %112 : vector<64x256xf32>
    %114 = vector.broadcast %91 : vector<1x256xf32> to vector<64x256xf32>
    %115 = arith.addf %113, %114 : vector<64x256xf32>
    %cst_54 = arith.constant 0.00999999977 : f32
    %116 = vector.broadcast %cst_54 : f32 to vector<64x256xf32>
    %117 = arith.mulf %116, %115 : vector<64x256xf32>
    %118 = arith.maximumf %115, %117 : vector<64x256xf32>
    %119 = vector.extract_strided_slice %54 {offsets = [16, 0], sizes = [64, 256], strides = [1, 1]} : vector<80x256xf32> to vector<64x256xf32>
    %120 = arith.addf %13, %119 : vector<64x256xf32>
    %c0_55 = arith.constant 0 : index
    %c0_56 = arith.constant 0 : index
    %121 = vector.load %arg9[%c0_55, %c0_56] : memref<6x256xf32, #tpu.memory_space<vmem>>, vector<1x256xf32>
    %c1_57 = arith.constant 1 : index
    %c0_58 = arith.constant 0 : index
    %122 = vector.load %arg9[%c1_57, %c0_58] : memref<6x256xf32, #tpu.memory_space<vmem>>, vector<1x256xf32>
    %cst_59 = arith.constant dense<0.000000e+00> : vector<64xf32>
    %123 = vector.multi_reduction <add>, %120, %cst_59 [1] : vector<64x256xf32> to vector<64xf32>
    %124 = vector.shape_cast %123 : vector<64xf32> to vector<64x1xf32>
    %cst_60 = arith.constant 2.560000e+02 : f32
    %125 = vector.broadcast %cst_60 : f32 to vector<64x1xf32>
    %126 = arith.divf %124, %125 : vector<64x1xf32>
    %127 = arith.mulf %120, %120 : vector<64x256xf32>
    %cst_61 = arith.constant dense<0.000000e+00> : vector<64xf32>
    %128 = vector.multi_reduction <add>, %127, %cst_61 [1] : vector<64x256xf32> to vector<64xf32>
    %129 = vector.shape_cast %128 : vector<64xf32> to vector<64x1xf32>
    %cst_62 = arith.constant 2.560000e+02 : f32
    %130 = vector.broadcast %cst_62 : f32 to vector<64x1xf32>
    %131 = arith.divf %129, %130 : vector<64x1xf32>
    %132 = arith.mulf %126, %126 : vector<64x1xf32>
    %133 = arith.subf %131, %132 : vector<64x1xf32>
    %cst_63 = arith.constant 0.000000e+00 : f32
    %134 = vector.broadcast %cst_63 : f32 to vector<64x1xf32>
    %135 = arith.maximumf %133, %134 : vector<64x1xf32>
    %136 = vector.broadcast %126 : vector<64x1xf32> to vector<64x256xf32>
    %137 = arith.subf %120, %136 : vector<64x256xf32>
    %cst_64 = arith.constant 9.99999974E-6 : f32
    %138 = vector.broadcast %cst_64 : f32 to vector<64x1xf32>
    %139 = arith.addf %135, %138 : vector<64x1xf32>
    %140 = math.rsqrt %139 : vector<64x1xf32>
    %141 = vector.broadcast %140 : vector<64x1xf32> to vector<64x256xf32>
    %142 = arith.mulf %137, %141 : vector<64x256xf32>
    %143 = vector.broadcast %121 : vector<1x256xf32> to vector<64x256xf32>
    %144 = arith.mulf %142, %143 : vector<64x256xf32>
    %145 = vector.broadcast %122 : vector<1x256xf32> to vector<64x256xf32>
    %146 = arith.addf %144, %145 : vector<64x256xf32>
    %cst_65 = arith.constant 0.00999999977 : f32
    %147 = vector.broadcast %cst_65 : f32 to vector<64x256xf32>
    %148 = arith.mulf %147, %146 : vector<64x256xf32>
    %149 = arith.maximumf %146, %148 : vector<64x256xf32>
    %150 = vector.broadcast %1 : f32 to vector<64x256xf32>
    %151 = arith.mulf %150, %118 : vector<64x256xf32>
    %152 = vector.broadcast %0 : f32 to vector<64x256xf32>
    %153 = arith.mulf %152, %149 : vector<64x256xf32>
    %154 = arith.addf %151, %153 : vector<64x256xf32>
    %155 = arith.addf %154, %42 : vector<64x256xf32>
    %c0_66 = arith.constant 0 : index
    %c0_67 = arith.constant 0 : index
    %156 = vector.load %arg5[%c0_66, %c0_67] : memref<64x64xf32, #tpu.memory_space<vmem>>, vector<64x64xf32>
    %cst_68 = arith.constant dense<0.000000e+00> : vector<64x256xf32>
    %157 = tpu.matmul %156, %155, %cst_68 {dimension_numbers = #tpu.dot_dimension_numbers<[1], [0], [0], [1], [0, 0, 1, 1], [], []>} : vector<64x64xf32>, vector<64x256xf32>, vector<64x256xf32> -> vector<64x256xf32>
    %c64_69 = arith.constant 64 : index
    %c0_70 = arith.constant 0 : index
    %158 = vector.load %arg3[%c64_69, %c0_70] : memref<128x1xf32, #tpu.memory_space<vmem>>, vector<64x1xf32>
    %159 = vector.broadcast %158 : vector<64x1xf32> to vector<64x256xf32>
    %160 = arith.addf %157, %159 : vector<64x256xf32>
    %cst_71 = arith.constant 0.00999999977 : f32
    %161 = vector.broadcast %cst_71 : f32 to vector<64x256xf32>
    %162 = arith.mulf %161, %160 : vector<64x256xf32>
    %163 = arith.maximumf %160, %162 : vector<64x256xf32>
    %c0_72 = arith.constant 0 : index
    %c0_73 = arith.constant 0 : index
    %164 = vector.load %arg7[%c0_72, %c0_73] : memref<80x64xf32, #tpu.memory_space<vmem>>, vector<80x64xf32>
    %cst_74 = arith.constant dense<0.000000e+00> : vector<80x256xf32>
    %165 = tpu.matmul %164, %163, %cst_74 {dimension_numbers = #tpu.dot_dimension_numbers<[1], [0], [0], [1], [0, 0, 1, 1], [], []>} : vector<80x64xf32>, vector<64x256xf32>, vector<80x256xf32> -> vector<80x256xf32>
    %166 = vector.extract_strided_slice %165 {offsets = [0, 0], sizes = [16, 256], strides = [1, 1]} : vector<80x256xf32> to vector<16x256xf32>
    %c2_75 = arith.constant 2 : index
    %c0_76 = arith.constant 0 : index
    %167 = vector.load %arg9[%c2_75, %c0_76] : memref<6x256xf32, #tpu.memory_space<vmem>>, vector<1x256xf32>
    %c3_77 = arith.constant 3 : index
    %c0_78 = arith.constant 0 : index
    %168 = vector.load %arg9[%c3_77, %c0_78] : memref<6x256xf32, #tpu.memory_space<vmem>>, vector<1x256xf32>
    %cst_79 = arith.constant dense<0.000000e+00> : vector<16xf32>
    %169 = vector.multi_reduction <add>, %166, %cst_79 [1] : vector<16x256xf32> to vector<16xf32>
    %170 = vector.shape_cast %169 : vector<16xf32> to vector<16x1xf32>
    %cst_80 = arith.constant 2.560000e+02 : f32
    %171 = vector.broadcast %cst_80 : f32 to vector<16x1xf32>
    %172 = arith.divf %170, %171 : vector<16x1xf32>
    %173 = arith.mulf %166, %166 : vector<16x256xf32>
    %cst_81 = arith.constant dense<0.000000e+00> : vector<16xf32>
    %174 = vector.multi_reduction <add>, %173, %cst_81 [1] : vector<16x256xf32> to vector<16xf32>
    %175 = vector.shape_cast %174 : vector<16xf32> to vector<16x1xf32>
    %cst_82 = arith.constant 2.560000e+02 : f32
    %176 = vector.broadcast %cst_82 : f32 to vector<16x1xf32>
    %177 = arith.divf %175, %176 : vector<16x1xf32>
    %178 = arith.mulf %172, %172 : vector<16x1xf32>
    %179 = arith.subf %177, %178 : vector<16x1xf32>
    %cst_83 = arith.constant 0.000000e+00 : f32
    %180 = vector.broadcast %cst_83 : f32 to vector<16x1xf32>
    %181 = arith.maximumf %179, %180 : vector<16x1xf32>
    %182 = vector.broadcast %172 : vector<16x1xf32> to vector<16x256xf32>
    %183 = arith.subf %166, %182 : vector<16x256xf32>
    %cst_84 = arith.constant 9.99999974E-6 : f32
    %184 = vector.broadcast %cst_84 : f32 to vector<16x1xf32>
    %185 = arith.addf %181, %184 : vector<16x1xf32>
    %186 = math.rsqrt %185 : vector<16x1xf32>
    %187 = vector.broadcast %186 : vector<16x1xf32> to vector<16x256xf32>
    %188 = arith.mulf %183, %187 : vector<16x256xf32>
    %189 = vector.broadcast %167 : vector<1x256xf32> to vector<16x256xf32>
    %190 = arith.mulf %188, %189 : vector<16x256xf32>
    %191 = vector.broadcast %168 : vector<1x256xf32> to vector<16x256xf32>
    %192 = arith.addf %190, %191 : vector<16x256xf32>
    %cst_85 = arith.constant 0.00999999977 : f32
    %193 = vector.broadcast %cst_85 : f32 to vector<16x256xf32>
    %194 = arith.mulf %193, %192 : vector<16x256xf32>
    %195 = arith.maximumf %192, %194 : vector<16x256xf32>
    %c0_86 = arith.constant 0 : index
    %c1_87 = arith.constant 1 : index
    %c0_88 = arith.constant 0 : index
    %c0_89 = arith.constant 0 : index
    %196 = vector.load %arg10[%c0_86, %c1_87, %c0_88, %c0_89] : memref<1x3x16x256xf32, #tpu.memory_space<vmem>>, vector<1x1x16x256xf32>
    %197 = vector.shape_cast %196 : vector<1x1x16x256xf32> to vector<16x256xf32>
    %198 = vector.shape_cast %195 : vector<16x256xf32> to vector<1x1x16x256xf32>
    tpu.vector_store %arg10[%c0_86, %c1_87, %c0_88, %c0_89], %198 {strides = array<i32>} : memref<1x3x16x256xf32, #tpu.memory_space<vmem>>, vector<1x1x16x256xf32>,
    %c0_90 = arith.constant 0 : index
    %c0_91 = arith.constant 0 : index
    %199 = vector.load %arg8[%c0_90, %c0_91] : memref<64x16xf32, #tpu.memory_space<vmem>>, vector<64x16xf32>
    %cst_92 = arith.constant dense<0.000000e+00> : vector<64x256xf32>
    %200 = tpu.matmul %199, %195, %cst_92 {dimension_numbers = #tpu.dot_dimension_numbers<[1], [0], [0], [1], [0, 0, 1, 1], [], []>} : vector<64x16xf32>, vector<16x256xf32>, vector<64x256xf32> -> vector<64x256xf32>
    %c4_93 = arith.constant 4 : index
    %c0_94 = arith.constant 0 : index
    %201 = vector.load %arg9[%c4_93, %c0_94] : memref<6x256xf32, #tpu.memory_space<vmem>>, vector<1x256xf32>
    %c5_95 = arith.constant 5 : index
    %c0_96 = arith.constant 0 : index
    %202 = vector.load %arg9[%c5_95, %c0_96] : memref<6x256xf32, #tpu.memory_space<vmem>>, vector<1x256xf32>
    %cst_97 = arith.constant dense<0.000000e+00> : vector<64xf32>
    %203 = vector.multi_reduction <add>, %200, %cst_97 [1] : vector<64x256xf32> to vector<64xf32>
    %204 = vector.shape_cast %203 : vector<64xf32> to vector<64x1xf32>
    %cst_98 = arith.constant 2.560000e+02 : f32
    %205 = vector.broadcast %cst_98 : f32 to vector<64x1xf32>
    %206 = arith.divf %204, %205 : vector<64x1xf32>
    %207 = arith.mulf %200, %200 : vector<64x256xf32>
    %cst_99 = arith.constant dense<0.000000e+00> : vector<64xf32>
    %208 = vector.multi_reduction <add>, %207, %cst_99 [1] : vector<64x256xf32> to vector<64xf32>
    %209 = vector.shape_cast %208 : vector<64xf32> to vector<64x1xf32>
    %cst_100 = arith.constant 2.560000e+02 : f32
    %210 = vector.broadcast %cst_100 : f32 to vector<64x1xf32>
    %211 = arith.divf %209, %210 : vector<64x1xf32>
    %212 = arith.mulf %206, %206 : vector<64x1xf32>
    %213 = arith.subf %211, %212 : vector<64x1xf32>
    %cst_101 = arith.constant 0.000000e+00 : f32
    %214 = vector.broadcast %cst_101 : f32 to vector<64x1xf32>
    %215 = arith.maximumf %213, %214 : vector<64x1xf32>
    %216 = vector.broadcast %206 : vector<64x1xf32> to vector<64x256xf32>
    %217 = arith.subf %200, %216 : vector<64x256xf32>
    %cst_102 = arith.constant 9.99999974E-6 : f32
    %218 = vector.broadcast %cst_102 : f32 to vector<64x1xf32>
    %219 = arith.addf %215, %218 : vector<64x1xf32>
    %220 = math.rsqrt %219 : vector<64x1xf32>
    %221 = vector.broadcast %220 : vector<64x1xf32> to vector<64x256xf32>
    %222 = arith.mulf %217, %221 : vector<64x256xf32>
    %223 = vector.broadcast %201 : vector<1x256xf32> to vector<64x256xf32>
    %224 = arith.mulf %222, %223 : vector<64x256xf32>
    %225 = vector.broadcast %202 : vector<1x256xf32> to vector<64x256xf32>
    %226 = arith.addf %224, %225 : vector<64x256xf32>
    %cst_103 = arith.constant 0.00999999977 : f32
    %227 = vector.broadcast %cst_103 : f32 to vector<64x256xf32>
    %228 = arith.mulf %227, %226 : vector<64x256xf32>
    %229 = arith.maximumf %226, %228 : vector<64x256xf32>
    %230 = vector.extract_strided_slice %165 {offsets = [16, 0], sizes = [64, 256], strides = [1, 1]} : vector<80x256xf32> to vector<64x256xf32>
    %231 = arith.addf %13, %230 : vector<64x256xf32>
    %c0_104 = arith.constant 0 : index
    %c0_105 = arith.constant 0 : index
    %232 = vector.load %arg9[%c0_104, %c0_105] : memref<6x256xf32, #tpu.memory_space<vmem>>, vector<1x256xf32>
    %c1_106 = arith.constant 1 : index
    %c0_107 = arith.constant 0 : index
    %233 = vector.load %arg9[%c1_106, %c0_107] : memref<6x256xf32, #tpu.memory_space<vmem>>, vector<1x256xf32>
    %cst_108 = arith.constant dense<0.000000e+00> : vector<64xf32>
    %234 = vector.multi_reduction <add>, %231, %cst_108 [1] : vector<64x256xf32> to vector<64xf32>
    %235 = vector.shape_cast %234 : vector<64xf32> to vector<64x1xf32>
    %cst_109 = arith.constant 2.560000e+02 : f32
    %236 = vector.broadcast %cst_109 : f32 to vector<64x1xf32>
    %237 = arith.divf %235, %236 : vector<64x1xf32>
    %238 = arith.mulf %231, %231 : vector<64x256xf32>
    %cst_110 = arith.constant dense<0.000000e+00> : vector<64xf32>
    %239 = vector.multi_reduction <add>, %238, %cst_110 [1] : vector<64x256xf32> to vector<64xf32>
    %240 = vector.shape_cast %239 : vector<64xf32> to vector<64x1xf32>
    %cst_111 = arith.constant 2.560000e+02 : f32
    %241 = vector.broadcast %cst_111 : f32 to vector<64x1xf32>
    %242 = arith.divf %240, %241 : vector<64x1xf32>
    %243 = arith.mulf %237, %237 : vector<64x1xf32>
    %244 = arith.subf %242, %243 : vector<64x1xf32>
    %cst_112 = arith.constant 0.000000e+00 : f32
    %245 = vector.broadcast %cst_112 : f32 to vector<64x1xf32>
    %246 = arith.maximumf %244, %245 : vector<64x1xf32>
    %247 = vector.broadcast %237 : vector<64x1xf32> to vector<64x256xf32>
    %248 = arith.subf %231, %247 : vector<64x256xf32>
    %cst_113 = arith.constant 9.99999974E-6 : f32
    %249 = vector.broadcast %cst_113 : f32 to vector<64x1xf32>
    %250 = arith.addf %246, %249 : vector<64x1xf32>
    %251 = math.rsqrt %250 : vector<64x1xf32>
    %252 = vector.broadcast %251 : vector<64x1xf32> to vector<64x256xf32>
    %253 = arith.mulf %248, %252 : vector<64x256xf32>
    %254 = vector.broadcast %232 : vector<1x256xf32> to vector<64x256xf32>
    %255 = arith.mulf %253, %254 : vector<64x256xf32>
    %256 = vector.broadcast %233 : vector<1x256xf32> to vector<64x256xf32>
    %257 = arith.addf %255, %256 : vector<64x256xf32>
    %cst_114 = arith.constant 0.00999999977 : f32
    %258 = vector.broadcast %cst_114 : f32 to vector<64x256xf32>
    %259 = arith.mulf %258, %257 : vector<64x256xf32>
    %260 = arith.maximumf %257, %259 : vector<64x256xf32>
    %261 = vector.broadcast %1 : f32 to vector<64x256xf32>
    %262 = arith.mulf %261, %229 : vector<64x256xf32>
    %263 = vector.broadcast %0 : f32 to vector<64x256xf32>
    %264 = arith.mulf %263, %260 : vector<64x256xf32>
    %265 = arith.addf %262, %264 : vector<64x256xf32>
    %266 = arith.addf %265, %149 : vector<64x256xf32>
    %c0_115 = arith.constant 0 : index
    %c0_116 = arith.constant 0 : index
    %267 = vector.load %arg5[%c0_115, %c0_116] : memref<64x64xf32, #tpu.memory_space<vmem>>, vector<64x64xf32>
    %cst_117 = arith.constant dense<0.000000e+00> : vector<64x256xf32>
    %268 = tpu.matmul %267, %266, %cst_117 {dimension_numbers = #tpu.dot_dimension_numbers<[1], [0], [0], [1], [0, 0, 1, 1], [], []>} : vector<64x64xf32>, vector<64x256xf32>, vector<64x256xf32> -> vector<64x256xf32>
    %c64_118 = arith.constant 64 : index
    %c0_119 = arith.constant 0 : index
    %269 = vector.load %arg3[%c64_118, %c0_119] : memref<128x1xf32, #tpu.memory_space<vmem>>, vector<64x1xf32>
    %270 = vector.broadcast %269 : vector<64x1xf32> to vector<64x256xf32>
    %271 = arith.addf %268, %270 : vector<64x256xf32>
    %cst_120 = arith.constant 0.00999999977 : f32
    %272 = vector.broadcast %cst_120 : f32 to vector<64x256xf32>
    %273 = arith.mulf %272, %271 : vector<64x256xf32>
    %274 = arith.maximumf %271, %273 : vector<64x256xf32>
    %c0_121 = arith.constant 0 : index
    %c0_122 = arith.constant 0 : index
    %275 = vector.load %arg7[%c0_121, %c0_122] : memref<80x64xf32, #tpu.memory_space<vmem>>, vector<16x64xf32>
    %cst_123 = arith.constant dense<0.000000e+00> : vector<16x256xf32>
    %276 = tpu.matmul %275, %274, %cst_123 {dimension_numbers = #tpu.dot_dimension_numbers<[1], [0], [0], [1], [0, 0, 1, 1], [], []>} : vector<16x64xf32>, vector<64x256xf32>, vector<16x256xf32> -> vector<16x256xf32>
    %c2_124 = arith.constant 2 : index
    %c0_125 = arith.constant 0 : index
    %277 = vector.load %arg9[%c2_124, %c0_125] : memref<6x256xf32, #tpu.memory_space<vmem>>, vector<1x256xf32>
    %c3_126 = arith.constant 3 : index
    %c0_127 = arith.constant 0 : index
    %278 = vector.load %arg9[%c3_126, %c0_127] : memref<6x256xf32, #tpu.memory_space<vmem>>, vector<1x256xf32>
    %cst_128 = arith.constant dense<0.000000e+00> : vector<16xf32>
    %279 = vector.multi_reduction <add>, %276, %cst_128 [1] : vector<16x256xf32> to vector<16xf32>
    %280 = vector.shape_cast %279 : vector<16xf32> to vector<16x1xf32>
    %cst_129 = arith.constant 2.560000e+02 : f32
    %281 = vector.broadcast %cst_129 : f32 to vector<16x1xf32>
    %282 = arith.divf %280, %281 : vector<16x1xf32>
    %283 = arith.mulf %276, %276 : vector<16x256xf32>
    %cst_130 = arith.constant dense<0.000000e+00> : vector<16xf32>
    %284 = vector.multi_reduction <add>, %283, %cst_130 [1] : vector<16x256xf32> to vector<16xf32>
    %285 = vector.shape_cast %284 : vector<16xf32> to vector<16x1xf32>
    %cst_131 = arith.constant 2.560000e+02 : f32
    %286 = vector.broadcast %cst_131 : f32 to vector<16x1xf32>
    %287 = arith.divf %285, %286 : vector<16x1xf32>
    %288 = arith.mulf %282, %282 : vector<16x1xf32>
    %289 = arith.subf %287, %288 : vector<16x1xf32>
    %cst_132 = arith.constant 0.000000e+00 : f32
    %290 = vector.broadcast %cst_132 : f32 to vector<16x1xf32>
    %291 = arith.maximumf %289, %290 : vector<16x1xf32>
    %292 = vector.broadcast %282 : vector<16x1xf32> to vector<16x256xf32>
    %293 = arith.subf %276, %292 : vector<16x256xf32>
    %cst_133 = arith.constant 9.99999974E-6 : f32
    %294 = vector.broadcast %cst_133 : f32 to vector<16x1xf32>
    %295 = arith.addf %291, %294 : vector<16x1xf32>
    %296 = math.rsqrt %295 : vector<16x1xf32>
    %297 = vector.broadcast %296 : vector<16x1xf32> to vector<16x256xf32>
    %298 = arith.mulf %293, %297 : vector<16x256xf32>
    %299 = vector.broadcast %277 : vector<1x256xf32> to vector<16x256xf32>
    %300 = arith.mulf %298, %299 : vector<16x256xf32>
    %301 = vector.broadcast %278 : vector<1x256xf32> to vector<16x256xf32>
    %302 = arith.addf %300, %301 : vector<16x256xf32>
    %cst_134 = arith.constant 0.00999999977 : f32
    %303 = vector.broadcast %cst_134 : f32 to vector<16x256xf32>
    %304 = arith.mulf %303, %302 : vector<16x256xf32>
    %305 = arith.maximumf %302, %304 : vector<16x256xf32>
    %c0_135 = arith.constant 0 : index
    %c2_136 = arith.constant 2 : index
    %c0_137 = arith.constant 0 : index
    %c0_138 = arith.constant 0 : index
    %306 = vector.load %arg10[%c0_135, %c2_136, %c0_137, %c0_138] : memref<1x3x16x256xf32, #tpu.memory_space<vmem>>, vector<1x1x16x256xf32>
    %307 = vector.shape_cast %306 : vector<1x1x16x256xf32> to vector<16x256xf32>
    %308 = vector.shape_cast %305 : vector<16x256xf32> to vector<1x1x16x256xf32>
    tpu.vector_store %arg10[%c0_135, %c2_136, %c0_137, %c0_138], %308 {strides = array<i32>} : memref<1x3x16x256xf32, #tpu.memory_space<vmem>>, vector<1x1x16x256xf32>,
    return
  }
  func.func @transform_0(%arg0: i32) -> i32 {
    %c0_i32 = arith.constant 0 : i32
    %c0_i32_0 = arith.constant 0 : i32
    return %c0_i32 : i32
  }
  func.func @transform_1(%arg0: i32) -> (i32, i32, i32) {
    %c0_i32 = arith.constant 0 : i32
    %c0_i32_0 = arith.constant 0 : i32
    %c0_i32_1 = arith.constant 0 : i32
    return %arg0, %c0_i32, %c0_i32_0 : i32, i32, i32
  }
  func.func @transform_2(%arg0: i32) -> (i32, i32) {
    %c0_i32 = arith.constant 0 : i32
    %c0_i32_0 = arith.constant 0 : i32
    %c0_i32_1 = arith.constant 0 : i32
    return %c0_i32, %c0_i32_0 : i32, i32
  }
  func.func @transform_3(%arg0: i32) -> (i32, i32) {
    %c0_i32 = arith.constant 0 : i32
    %c0_i32_0 = arith.constant 0 : i32
    %c0_i32_1 = arith.constant 0 : i32
    return %c0_i32, %c0_i32_0 : i32, i32
  }
  func.func @transform_4(%arg0: i32) -> (i32, i32) {
    %c0_i32 = arith.constant 0 : i32
    %c0_i32_0 = arith.constant 0 : i32
    %c0_i32_1 = arith.constant 0 : i32
    return %c0_i32, %c0_i32_0 : i32, i32
  }
  func.func @transform_5(%arg0: i32) -> (i32, i32) {
    %c0_i32 = arith.constant 0 : i32
    %c0_i32_0 = arith.constant 0 : i32
    %c0_i32_1 = arith.constant 0 : i32
    return %c0_i32, %c0_i32_0 : i32, i32
  }
  func.func @transform_6(%arg0: i32) -> (i32, i32) {
    %c0_i32 = arith.constant 0 : i32
    %c0_i32_0 = arith.constant 0 : i32
    %c0_i32_1 = arith.constant 0 : i32
    return %c0_i32, %c0_i32_0 : i32, i32
  }
  func.func @transform_7(%arg0: i32) -> (i32, i32) {
    %c0_i32 = arith.constant 0 : i32
    %c0_i32_0 = arith.constant 0 : i32
    %c0_i32_1 = arith.constant 0 : i32
    return %c0_i32, %c0_i32_0 : i32, i32
  }
  func.func @transform_8(%arg0: i32) -> (i32, i32) {
    %c0_i32 = arith.constant 0 : i32
    %c0_i32_0 = arith.constant 0 : i32
    %c0_i32_1 = arith.constant 0 : i32
    return %c0_i32, %c0_i32_0 : i32, i32
  }
  func.func @transform_9(%arg0: i32) -> (i32, i32, i32, i32) {
    %c0_i32 = arith.constant 0 : i32
    %c0_i32_0 = arith.constant 0 : i32
    %c0_i32_1 = arith.constant 0 : i32
    %c0_i32_2 = arith.constant 0 : i32
    return %arg0, %c0_i32, %c0_i32_0, %c0_i32_1 : i32, i32, i32, i32
  }
}

</mosaic_0001>

<bundles_post_ra>
// kernel: network_forward.1
= control target key start
LH: loop header
LB: loop body
LE: loop exit
PB: predicated region body
PF: predicated region fallthrough
CT: control target
= control target key end

     0   :  { %14 = vsyncpa [#allocation3], 0  ;;  %s5808_s0 = inlined_call_operand.vmem [shape: f32[2], index: 0, kind: input, shape index: {}]   ;;  %s5809_s1 = inlined_call_operand.vmem [shape: f32[1,8,256], index: 1, kind: input, shape index: {}]   ;;  %s5810_s2 = inlined_call_operand.vmem [shape: f32[128,1], index: 2, kind: input, shape index: {}]   ;;  %s5811_s3 = inlined_call_operand.vmem [shape: f32[64,8], index: 3, kind: input, shape index: {}]   ;;  %s5812_s4 = inlined_call_operand.vmem [shape: f32[64,64], index: 4, kind: input, shape index: {}]   ;;  %s5813_s5 = inlined_call_operand.vmem [shape: f32[64,64], index: 5, kind: input, shape index: {}]   ;;  %s5814_s6 = inlined_call_operand.vmem [shape: f32[80,64], index: 6, kind: input, shape index: {}]   ;;  %s5815_s7 = inlined_call_operand.vmem [shape: f32[64,16], index: 7, kind: input, shape index: {}]   ;;  %s5816_s8 = inlined_call_operand.vmem [shape: f32[6,256], index: 8, kind: input, shape index: {}]   ;;  %s5817_s9 = inlined_call_operand.vmem [shape: f32[1,3,16,256], index: 9, kind: output, shape index: {}]  }
   0x1   :  { %s21_s11 = sshll.u32 %s5808_s0, 4  ;;  %s22_s11 = int_to_ptr.vmem [resolvable:$true] %s21_s11 }
   0x2   :  { %s3766_s12 = scalar_lea.vmem %s22_s11, 16  ;;  %p3771_p1 = scmp.lt.s32.totalorder %s22_s11, %s22_s11 }
   0x3   :  { %p3767_p0 = scmp.ne.s32.totalorder %s22_s11, %s3766_s12  ;;  %p3772_p2 = scmp.lt.s32.totalorder %s3766_s12, %s3766_s12 }
   0x5   :  { %p3773_p3 = por %p3772_p2, %p3771_p1 }
   0x7   :  { %p3774_p4 = pnand %p3773_p3, %p3767_p0 }
   0x9   :  { %3777 = shalt.err (!%p3774_p4)
}
   0xa   :  { %s3780_s13 = smov [#allocation2]  }
   0xb   :  { %24 = dma.vmem_to_smem %s22_s11, 16, %s3780_s13, [#allocation3]  }
   0xc   :  { %3778 = dma.done.wait [#allocation3], 16  }
   0xd   :  { %3779 = vsyncadd [#allocation3], 4294967280 }
   0xe   :  { %44 = sfence }
   0xf   :  { %v48_v0 = vld [vmem:[%s5809_s1 + $0x8] sm:$0xff]  ;;  %v47_v1 = vld [vmem:[%s5809_s1] sm:$0xff]  ;;  %vm105_vm0 = vcmask 64512   ;;  %v5818_v4 = vmov 0.0   ;;  %v59_v6 = vld [vmem:[%s5810_s2 + $0x10] sm:$0xff]  ;;  %v3782_v9 = vmov 0  }
  0x10   :  { %130 = vmatprep.subr.mxu0 %v48_v0  ;;  %3659 = vmatprep.subr.mxu1 %v48_v0  ;;  %v49_v2 = vld [vmem:[%s5811_s3] sm:$0xff]  ;;  %v50_v7 = vld [vmem:[%s5811_s3 + $0x8] sm:$0xff]  ;;  %v60_v11 = vld [vmem:[%s5810_s2 + $0x18] sm:$0xff]  ;;  %vm283_vm1 = vcmask 523264   ;;  %s45_s10 = sld [smem:[#allocation2]]  ;;  %vm1162_vm2 = vcmask 130048  }
  0x11   :  { %v53_v3 = vld [vmem:[%s5811_s3 + $0x20] sm:$0xff]  ;;  %131 = vmatpush1.msra.mxu0 %v47_v1  ;;  %3660 = vmatpush1.msra.mxu1 %v47_v1  ;;  %v54_v8 = vld [vmem:[%s5811_s3 + $0x28] sm:$0xff]  ;;  %v51_v12 = vld [vmem:[%s5811_s3 + $0x10] sm:$0xff]  ;;  %s4747_s21 = sld [smem:[#allocation2 + $0x1]] }
  0x12   :  { %194 = vmatprep.mubr.f32.mxu0 %v5818_v4  ;;  %218 = vmatprep.mubr.f32.mxu1 %v5818_v4  ;;  %v57_v5 = vld [vmem:[%s5810_s2] sm:$0xff]  ;;  %v58_v10 = vld [vmem:[%s5810_s2 + $0x8] sm:$0xff]  ;;  %v55_v13 = vld [vmem:[%s5811_s3 + $0x30] sm:$0xff] }
  0x13   :  { %3440 = vmatmul.mubr.msk.f32.vlgmr.msra.gmra.mrb[0].mxu0 %vm105_vm0, %v49_v2  ;;  %3444 = vmatmul.mubr.msk.f32.vlgmr.msra.gmra.mrb[0].mxu1 %vm105_vm0, %v53_v3  ;;  %v61_v14 = vld [vmem:[%s5810_s2 + $0x20] sm:$0xff]  ;;  %v62_v15 = vld [vmem:[%s5810_s2 + $0x28] sm:$0xff]  ;;  %v52_v16 = vld [vmem:[%s5811_s3 + $0x18] sm:$0xff] }
  0x14   :  { %200 = vmatprep.mubr.f32.mxu0 %v5818_v4  ;;  %224 = vmatprep.mubr.f32.mxu1 %v5818_v4  ;;  %v56_v17 = vld [vmem:[%s5811_s3 + $0x38] sm:$0xff]  ;;  %v63_v18 = vld [vmem:[%s5810_s2 + $0x30] sm:$0xff] }
  0x15   :  { %3672 = vset.pattern.permute.xlu0 %v3782_v9  ;;  %3673 = vset.pattern.permute.xlu1 %v3782_v9  ;;  %v64_v19 = vld [vmem:[%s5810_s2 + $0x38] sm:$0xff] }
  0x16   :  { %67 = vperm.xlu0 %3672, %v57_v5   ;;  %77 = vperm.xlu1 %3673, %v59_v6  }
  0x17   :  { %3441 = vmatmul.mubr.msk.f32.gmra.mrb[2].mxu0 %vm105_vm0, %v50_v7  ;;  %3445 = vmatmul.mubr.msk.f32.gmra.mrb[2].mxu1 %vm105_vm0, %v54_v8 }
  0x18   :  { %206 = vmatprep.mubr.f32.mxu0 %v5818_v4  ;;  %230 = vmatprep.mubr.f32.mxu1 %v5818_v4 }
  0x1a   :  { %72 = vperm.xlu0 %3672, %v58_v10   ;;  %82 = vperm.xlu1 %3673, %v60_v11  }
  0x1b   :  { %3442 = vmatmul.mubr.msk.f32.gmra.mrb[4].mxu0 %vm105_vm0, %v51_v12  ;;  %3446 = vmatmul.mubr.msk.f32.gmra.mrb[4].mxu1 %vm105_vm0, %v55_v13 }
  0x1c   :  { %212 = vmatprep.mubr.f32.mxu0 %v5818_v4  ;;  %236 = vmatprep.mubr.f32.mxu1 %v5818_v4 }
  0x1e   :  { %87 = vperm.xlu0 %3672, %v61_v14   ;;  %92 = vperm.xlu1 %3673, %v62_v15  }
  0x1f   :  { %3443 = vmatmul.mubr.msk.f32.gmra.mrb[6].mxu0 %vm105_vm0, %v52_v16  ;;  %3447 = vmatmul.mubr.msk.f32.gmra.mrb[6].mxu1 %vm105_vm0, %v56_v17 }
  0x20   :  { %372 = vmatprep.mubr.f32.mxu1 %v5818_v4  ;;  %824 = vmatprep.mubr.f32.mxu0 %v5818_v4 }
  0x22   :  { %97 = vperm.xlu0 %3672, %v63_v18   ;;  %102 = vperm.xlu1 %3673, %v64_v19  }
  0x95   :  { %v68_v20 = vpop.permute.xlu0 %67  ;;  %v78_v21 = vpop.permute.xlu1 %77 }
  0x99   :  { %v73_v22 = vpop.permute.xlu0 %72  ;;  %v83_v23 = vpop.permute.xlu1 %82 }
  0x9d   :  { %v88_v24 = vpop.permute.xlu0 %87  ;;  %v93_v33 = vpop.permute.xlu1 %92 }
  0xa1   :  { %v98_v50 = vpop.permute.xlu0 %97  ;;  %v103_v6 = vpop.permute.xlu1 %102 }
  0xe6   :  { %v196_v25 = vpop.f32.mrb[0].mxu0  ;;  %v220_v26 = vpop.f32.mrb[0].mxu1 }
  0xe7   :  { %v197_v27 = vadd.f32 %v196_v25, %v68_v20  ;;  %v198_v28 = vpop.f32.mrb[1].mxu0  ;;  %v221_v29 = vadd.f32 %v220_v26, %v88_v24  ;;  %v222_v30 = vpop.f32.mrb[1].mxu1 }
  0xe8   :  { %v199_v31 = vadd.f32 %v198_v28, %v68_v20  ;;  %v223_v32 = vadd.f32 %v222_v30, %v88_v24 }
  0xe9   :  { %v243_v34 = vmul.f32 0.01, %v197_v27  ;;  %v251_v35 = vmul.f32 0.01, %v221_v29 }
  0xea   :  { %v244_v36 = vmul.f32 0.01, %v199_v31  ;;  %v252_v37 = vmul.f32 0.01, %v223_v32  ;;  %v202_v38 = vpop.f32.mrb[2].mxu0  ;;  %v226_v39 = vpop.f32.mrb[2].mxu1 }
  0xeb   :  { %v203_v40 = vadd.f32 %v202_v38, %v73_v22  ;;  %v227_v41 = vadd.f32 %v226_v39, %v93_v33  ;;  %v204_v42 = vpop.f32.mrb[3].mxu0  ;;  %v228_v43 = vpop.f32.mrb[3].mxu1  ;;  %v259_v46 = vmax.f32 %v197_v27, %v243_v34  ;;  %v267_v47 = vmax.f32 %v221_v29, %v251_v35  ;;  %v276_v38 = vld [vmem:[%s5813_s5 + $0x8] sm:$0xff]  ;;  %v277_v39 = vld [vmem:[%s5813_s5 + $0x10] sm:$0xff] }
  0xec   :  { %v205_v44 = vadd.f32 %v204_v42, %v73_v22  ;;  %v229_v45 = vadd.f32 %v228_v43, %v93_v33  ;;  %v260_v51 = vmax.f32 %v199_v31, %v244_v36  ;;  %v268_v52 = vmax.f32 %v223_v32, %v252_v37  ;;  %v280_v42 = vld [vmem:[%s5813_s5 + $0x28] sm:$0xff]  ;;  %v281_v43 = vld [vmem:[%s5813_s5 + $0x30] sm:$0xff] }
  0xed   :  { %v245_v48 = vmul.f32 0.01, %v203_v40  ;;  %v253_v49 = vmul.f32 0.01, %v227_v41 }
  0xee   :  { %v246_v53 = vmul.f32 0.01, %v205_v44  ;;  %v254_v54 = vmul.f32 0.01, %v229_v45  ;;  %v208_v55 = vpop.f32.mrb[4].mxu0  ;;  %v232_v56 = vpop.f32.mrb[4].mxu1 }
  0xef   :  { %v261_v57 = vmax.f32 %v203_v40, %v245_v48  ;;  %v269_v58 = vmax.f32 %v227_v41, %v253_v49  ;;  %v209_v59 = vadd.f32 %v208_v55, %v78_v21  ;;  %v233_v60 = vadd.f32 %v232_v56, %v98_v50  ;;  %v210_v61 = vpop.f32.mrb[5].mxu0  ;;  %v234_v62 = vpop.f32.mrb[5].mxu1  ;;  %v278_v40 = vld [vmem:[%s5813_s5 + $0x18] sm:$0xff]  ;;  %v279_v41 = vld [vmem:[%s5813_s5 + $0x20] sm:$0xff] }
  0xf0   :  { %v262_v63 = vmax.f32 %v205_v44, %v246_v53  ;;  %v270_v0 = vmax.f32 %v229_v45, %v254_v54  ;;  %v211_v1 = vadd.f32 %v210_v61, %v78_v21  ;;  %v235_v2 = vadd.f32 %v234_v62, %v98_v50  ;;  %v282_v44 = vld [vmem:[%s5813_s5 + $0x38] sm:$0xff] }
  0xf1   :  { %v3541_v3 = vpack.c.bf16 %v261_v57, %v259_v46  ;;  %v3549_v5 = vpack.c.bf16 %v269_v58, %v267_v47  ;;  %v247_v11 = vmul.f32 0.01, %v209_v59  ;;  %v255_v12 = vmul.f32 0.01, %v233_v60 }
  0xf2   :  { %v214_v7 = vpop.f32.mrb[6].mxu0  ;;  %v238_v8 = vpop.f32.mrb[6].mxu1  ;;  %v3539_v9 = vpack.c.bf16 %v262_v63, %v260_v51  ;;  %v3547_v10 = vpack.c.bf16 %v270_v0, %v268_v52  ;;  %v248_v17 = vmul.f32 0.01, %v211_v1  ;;  %v256_v18 = vmul.f32 0.01, %v235_v2 }
  0xf3   :  { %v215_v13 = vadd.f32 %v214_v7, %v83_v23  ;;  %v239_v14 = vadd.f32 %v238_v8, %v103_v6  ;;  %v216_v15 = vpop.f32.mrb[7].mxu0  ;;  %v240_v16 = vpop.f32.mrb[7].mxu1  ;;  %v263_v26 = vmax.f32 %v209_v59, %v247_v11  ;;  %v271_v27 = vmax.f32 %v233_v60, %v255_v12 }
  0xf4   :  { %v217_v19 = vadd.f32 %v216_v15, %v83_v23  ;;  %v241_v20 = vadd.f32 %v240_v16, %v103_v6  ;;  %3540 = vmatprep.subr.bf16.mxu1 %v3539_v9  ;;  %v264_v30 = vmax.f32 %v211_v1, %v248_v17  ;;  %v272_v31 = vmax.f32 %v235_v2, %v256_v18  ;;  %v275_v23 = vld [vmem:[%s5813_s5] sm:$0xff] }
  0xf5   :  { %v249_v21 = vmul.f32 0.01, %v215_v13  ;;  %v257_v22 = vmul.f32 0.01, %v239_v14  ;;  %3542 = vmatpush1.bf16.msra.mxu1 %v3541_v3 }
  0xf6   :  { %v250_v24 = vmul.f32 0.01, %v217_v19  ;;  %v258_v25 = vmul.f32 0.01, %v241_v20 }
  0xf7   :  { %v265_v28 = vmax.f32 %v215_v13, %v249_v21  ;;  %v273_v29 = vmax.f32 %v239_v14, %v257_v22 }
  0xf8   :  { %v266_v32 = vmax.f32 %v217_v19, %v250_v24  ;;  %v274_v33 = vmax.f32 %v241_v20, %v258_v25 }
  0xf9   :  { %v3545_v34 = vpack.c.bf16 %v265_v28, %v263_v26  ;;  %v3553_v35 = vpack.c.bf16 %v273_v29, %v271_v27 }
  0xfa   :  { %v3543_v36 = vpack.c.bf16 %v266_v32, %v264_v30  ;;  %v3551_v37 = vpack.c.bf16 %v274_v33, %v272_v31  ;;  %v688_v31 = vld [vmem:[%s5810_s2 + $0x40] sm:$0xff]  ;;  %v690_v32 = vld [vmem:[%s5810_s2 + $0x50] sm:$0xff]  ;;  %v691_v33 = vld [vmem:[%s5810_s2 + $0x58] sm:$0xff] }
  0xfc   :  { %3544 = vmatprep.subr.bf16.mxu1 %v3543_v36  ;;  %v692_v36 = vld [vmem:[%s5810_s2 + $0x60] sm:$0xff] }
  0xfd   :  { %3546 = vmatpush1.bf16.msra.mxu1 %v3545_v34  ;;  %v689_v34 = vld [vmem:[%s5810_s2 + $0x48] sm:$0xff] }
  0xfe   :  { %3548 = vmatprep.subr.bf16.mxu1 %v3547_v10 }
 0x101   :  { %3550 = vmatpush1.bf16.msra.mxu1 %v3549_v5 }
 0x102   :  { %3552 = vmatprep.subr.bf16.mxu1 %v3551_v37  ;;  %v695_v37 = vld [vmem:[%s5810_s2 + $0x78] sm:$0xff] }
 0x105   :  { %3554 = vmatpush1.bf16.msra.mxu1 %v3553_v35  ;;  %v693_v35 = vld [vmem:[%s5810_s2 + $0x68] sm:$0xff] }
 0x108   :  { %3448 = vmatmul.mubr.msk.f32.vlgmr.msra.gmra.mrb[8].mxu1 %vm283_vm1, %v275_v23  ;;  %v694_v23 = vld [vmem:[%s5810_s2 + $0x70] sm:$0xff] }
 0x109   :  { %378 = vmatprep.mubr.f32.mxu1 %v5818_v4 }
 0x10c   :  { %3449 = vmatmul.mubr.msk.f32.gmra.mrb[10].mxu1 %vm283_vm1, %v276_v38 }
 0x10d   :  { %384 = vmatprep.mubr.f32.mxu1 %v5818_v4 }
 0x110   :  { %3450 = vmatmul.mubr.msk.f32.gmra.mrb[12].mxu1 %vm283_vm1, %v277_v39 }
 0x111   :  { %390 = vmatprep.mubr.f32.mxu1 %v5818_v4 }
 0x114   :  { %3451 = vmatmul.mubr.msk.f32.gmra.mrb[14].mxu1 %vm283_vm1, %v278_v40 }
 0x115   :  { %396 = vmatprep.mubr.f32.mxu1 %v5818_v4 }
 0x118   :  { %3452 = vmatmul.mubr.msk.f32.gmra.mrb[16].mxu1 %vm283_vm1, %v279_v41 }
 0x119   :  { %402 = vmatprep.mubr.f32.mxu1 %v5818_v4 }
 0x11c   :  { %3453 = vmatmul.mubr.msk.f32.gmra.mrb[18].mxu1 %vm283_vm1, %v280_v42 }
 0x11d   :  { %408 = vmatprep.mubr.f32.mxu1 %v5818_v4 }
 0x120   :  { %3454 = vmatmul.mubr.msk.f32.gmra.mrb[20].mxu1 %vm283_vm1, %v281_v43 }
 0x121   :  { %414 = vmatprep.mubr.f32.mxu1 %v5818_v4 }
 0x124   :  { %3455 = vmatmul.mubr.msk.f32.gmra.mrb[22].mxu1 %vm283_vm1, %v282_v44 }
 0x125   :  { %1015 = vmatprep.mubr.f32.mxu1 %v5818_v4 }
 0x1db   :  { %v3948_v45 = vpop.f32.mrb[8].mxu1 }
 0x1dc   :  { %5898 = vst [vmem:[#allocation5_spill] sm:$0xff] %v3948_v45  ;;  %v3950_v46 = vpop.f32.mrb[9].mxu1  ;;  %v457_v47 = vmul.f32 %v3948_v45, %v3948_v45 }
 0x1dd   :  { %5899 = vst [vmem:[#allocation6_spill] sm:$0xff] %v3950_v46  ;;  %v424_v48 = vadd.f32 %v3950_v46, %v3948_v45  ;;  %v458_v49 = vmul.f32 %v3950_v46, %v3950_v46 }
 0x1df   :  { %425 = vadd.xlane.f32.xlu0 %v424_v48  ;;  %v3958_v50 = vpop.f32.mrb[10].mxu1  ;;  %v473_v51 = vadd.f32 %v458_v49, %v457_v47  ;;  %v578_v48 = vlaneseq }
 0x1e0   :  { %5900 = vst [vmem:[#allocation7_spill] sm:$0xff] %v3958_v50  ;;  %v3960_v52 = vpop.f32.mrb[11].mxu1  ;;  %v459_v53 = vmul.f32 %v3958_v50, %v3958_v50 }
 0x1e1   :  { %5901 = vst [vmem:[#allocation8_spill] sm:$0xff] %v3960_v52  ;;  %v427_v54 = vadd.f32 %v3960_v52, %v3958_v50  ;;  %v460_v55 = vmul.f32 %v3960_v52, %v3960_v52 }
 0x1e3   :  { %474 = vadd.xlane.f32.xlu0 %v473_v51  ;;  %428 = vadd.xlane.f32.xlu1 %v427_v54  ;;  %v3968_v56 = vpop.f32.mrb[12].mxu1  ;;  %v476_v57 = vadd.f32 %v460_v55, %v459_v53 }
 0x1e4   :  { %5902 = vst [vmem:[#allocation9_spill] sm:$0xff] %v3968_v56  ;;  %v3970_v58 = vpop.f32.mrb[13].mxu1  ;;  %v461_v59 = vmul.f32 %v3968_v56, %v3968_v56 }
 0x1e5   :  { %5903 = vst [vmem:[#allocation10_spill] sm:$0xff] %v3970_v58  ;;  %v430_v60 = vadd.f32 %v3970_v58, %v3968_v56  ;;  %v462_v61 = vmul.f32 %v3970_v58, %v3970_v58 }
 0x1e7   :  { %477 = vadd.xlane.f32.xlu0 %v476_v57  ;;  %431 = vadd.xlane.f32.xlu1 %v430_v60  ;;  %v3978_v62 = vpop.f32.mrb[14].mxu1  ;;  %v479_v63 = vadd.f32 %v462_v61, %v461_v59  ;;  %v579_v61 = vshrl.u32 %v578_v48, 7 }
 0x1e8   :  { %5904 = vst [vmem:[#allocation11_spill] sm:$0xff] %v3978_v62  ;;  %v3980_v0 = vpop.f32.mrb[15].mxu1  ;;  %v463_v1 = vmul.f32 %v3978_v62, %v3978_v62 }
 0x1e9   :  { %5905 = vst [vmem:[#allocation12_spill] sm:$0xff] %v3980_v0  ;;  %v433_v2 = vadd.f32 %v3980_v0, %v3978_v62  ;;  %v464_v3 = vmul.f32 %v3980_v0, %v3980_v0 }
 0x1eb   :  { %480 = vadd.xlane.f32.xlu1 %v479_v63  ;;  %434 = vadd.xlane.f32.xlu0 %v433_v2  ;;  %v3988_v5 = vpop.f32.mrb[16].mxu1  ;;  %v482_v6 = vadd.f32 %v464_v3, %v463_v1 }
 0x1ec   :  { %5906 = vst [vmem:[#allocation13_spill] sm:$0xff] %v3988_v5  ;;  %v3990_v7 = vpop.f32.mrb[17].mxu1  ;;  %v465_v8 = vmul.f32 %v3988_v5, %v3988_v5 }
 0x1ed   :  { %5907 = vst [vmem:[#allocation14_spill] sm:$0xff] %v3990_v7  ;;  %v436_v9 = vadd.f32 %v3990_v7, %v3988_v5  ;;  %v466_v10 = vmul.f32 %v3990_v7, %v3990_v7 }
 0x1ef   :  { %483 = vadd.xlane.f32.xlu0 %v482_v6  ;;  %437 = vadd.xlane.f32.xlu1 %v436_v9  ;;  %v3998_v11 = vpop.f32.mrb[18].mxu1  ;;  %v485_v12 = vadd.f32 %v466_v10, %v465_v8 }
 0x1f0   :  { %5908 = vst [vmem:[#allocation15_spill] sm:$0xff] %v3998_v11  ;;  %v4000_v13 = vpop.f32.mrb[19].mxu1  ;;  %v467_v14 = vmul.f32 %v3998_v11, %v3998_v11 }
 0x1f1   :  { %5909 = vst [vmem:[#allocation16_spill] sm:$0xff] %v4000_v13  ;;  %v439_v15 = vadd.f32 %v4000_v13, %v3998_v11  ;;  %v468_v16 = vmul.f32 %v4000_v13, %v4000_v13 }
 0x1f3   :  { %486 = vadd.xlane.f32.xlu1 %v485_v12  ;;  %440 = vadd.xlane.f32.xlu0 %v439_v15  ;;  %v4008_v17 = vpop.f32.mrb[20].mxu1  ;;  %v488_v18 = vadd.f32 %v468_v16, %v467_v14  ;;  %v4066_v12 = vsub.s32 0, %v579_v61 }
 0x1f4   :  { %5910 = vst [vmem:[#allocation17_spill] sm:$0xff] %v4008_v17  ;;  %v4010_v19 = vpop.f32.mrb[21].mxu1  ;;  %v469_v20 = vmul.f32 %v4008_v17, %v4008_v17 }
 0x1f5   :  { %5911 = vst [vmem:[#allocation18_spill] sm:$0xff] %v4010_v19  ;;  %v442_v21 = vadd.f32 %v4010_v19, %v4008_v17  ;;  %v470_v22 = vmul.f32 %v4010_v19, %v4010_v19  ;;  %5914 = vst [vmem:[#allocation21_spill] sm:$0xff] %v4066_v12 }
 0x1f7   :  { %489 = vadd.xlane.f32.xlu0 %v488_v18  ;;  %443 = vadd.xlane.f32.xlu1 %v442_v21  ;;  %v4018_v24 = vpop.f32.mrb[22].mxu1  ;;  %v491_v25 = vadd.f32 %v470_v22, %v469_v20  ;;  %v421_v18 = vld [vmem:[%s5816_s8] ss:$8 sm:$0x3]  ;;  %v4073_v20 = vsub.s32 1, %v579_v61 }
 0x1f8   :  { %5912 = vst [vmem:[#allocation19_spill] sm:$0xff] %v4018_v24  ;;  %v4020_v26 = vpop.f32.mrb[23].mxu1  ;;  %v471_v27 = vmul.f32 %v4018_v24, %v4018_v24 }
 0x1f9   :  { %5913 = vst [vmem:[#allocation20_spill] sm:$0xff] %v4020_v26  ;;  %v445_v28 = vadd.f32 %v4020_v26, %v4018_v24  ;;  %v472_v29 = vmul.f32 %v4020_v26, %v4020_v26  ;;  %5915 = vst [vmem:[#allocation22_spill] sm:$0xff] %v4073_v20 }
 0x1fb   :  { %492 = vadd.xlane.f32.xlu1 %v491_v25  ;;  %446 = vadd.xlane.f32.xlu0 %v445_v28  ;;  %v494_v30 = vadd.f32 %v472_v29, %v471_v27  ;;  %v3456_v27 = vld [vmem:[%s5816_s8 + $0x1] ss:$8 sm:$0x3] }
 0x1ff   :  { %495 = vadd.xlane.f32.xlu0 %v494_v30  ;;  %v4081_v30 = vrot.slane %v421_v18, %v4066_v12 }
 0x20c   :  { %698 = vperm.xlu1 %3673, %v688_v31  }
 0x210   :  { %708 = vperm.xlu1 %3673, %v690_v32  }
 0x214   :  { %713 = vperm.xlu1 %3673, %v691_v33  }
 0x215   :  { %703 = vperm.xlu0 %3672, %v689_v34   ;;  %v4086_v34 = vrot.slane %v421_v18, %v4073_v20 }
 0x218   :  { %723 = vperm.xlu1 %3673, %v693_v35   ;;  %v4089_v35 = vrot.slane %v3456_v27, %v4066_v12 }
 0x219   :  { %718 = vperm.xlu0 %3672, %v692_v36   ;;  %v4092_v36 = vrot.slane %v3456_v27, %v4073_v20 }
 0x21c   :  { %733 = vperm.xlu1 %3673, %v695_v37  }
 0x21d   :  { %728 = vperm.xlu0 %3672, %v694_v23  }
 0x26c   :  { %v426_v38 = vpop.xlane.xlu0 %425 }
 0x26d   :  { %v4052_v39 = vmul.f32 0.00390625, %v426_v38 }
 0x26f   :  { %v505_v42 = vmul.f32 %v4052_v39, %v4052_v39 }
 0x270   :  { %v475_v40 = vpop.xlane.xlu0 %474  ;;  %v429_v41 = vpop.xlane.xlu1 %428 }
 0x271   :  { %v497_v43 = vmul.f32 0.00390625, %v475_v40  ;;  %v4056_v44 = vmul.f32 0.00390625, %v429_v41  ;;  %v529_v40 = vsub.f32 %v3948_v45, %v4052_v39  ;;  %v530_v41 = vsub.f32 %v3950_v46, %v4052_v39 }
 0x273   :  { %v513_v47 = vsub.f32 %v497_v43, %v505_v42  ;;  %v506_v55 = vmul.f32 %v4056_v44, %v4056_v44  ;;  %v531_v42 = vsub.f32 %v3958_v50, %v4056_v44  ;;  %v4102_v43 = vstv %s45_s10 }
 0x274   :  { %v478_v49 = vpop.xlane.xlu0 %477  ;;  %v432_v51 = vpop.xlane.xlu1 %431  ;;  %5916 = vst [vmem:[#allocation23_spill] sm:$0xff] %v4102_v43  ;;  %v532_v48 = vsub.f32 %v3960_v52, %v4056_v44 }
 0x275   :  { %v521_v53 = vmax.f32 %v513_v47, 0.0  ;;  %v498_v54 = vmul.f32 0.00390625, %v478_v49  ;;  %v4060_v57 = vmul.f32 0.00390625, %v432_v51 }
 0x277   :  { %v545_v59 = vadd.f32 1e-05, %v521_v53  ;;  %v514_v60 = vsub.f32 %v498_v54, %v506_v55  ;;  %v507_v63 = vmul.f32 %v4060_v57, %v4060_v57  ;;  %v533_v49 = vsub.f32 %v3968_v56, %v4060_v57 }
 0x278   :  { %v481_v1 = vpop.xlane.xlu1 %480  ;;  %v435_v2 = vpop.xlane.xlu0 %434  ;;  %v534_v55 = vsub.f32 %v3970_v58, %v4060_v57 }
 0x279   :  { %3674 = vrsqrt.f32 %v545_v59  ;;  %v522_v3 = vmax.f32 %v514_v60, 0.0  ;;  %v499_v6 = vmul.f32 0.00390625, %v481_v1  ;;  %v4064_v8 = vmul.f32 0.00390625, %v435_v2 }
 0x27b   :  { %v546_v9 = vadd.f32 1e-05, %v522_v3  ;;  %v515_v10 = vsub.f32 %v499_v6, %v507_v63  ;;  %v508_v14 = vmul.f32 %v4064_v8, %v4064_v8  ;;  %v535_v44 = vsub.f32 %v3978_v62, %v4064_v8 }
 0x27c   :  { %v484_v15 = vpop.xlane.xlu0 %483  ;;  %v438_v16 = vpop.xlane.xlu1 %437  ;;  %v536_v3 = vsub.f32 %v3980_v0, %v4064_v8 }
 0x27d   :  { %3676 = vrsqrt.f32 %v546_v9  ;;  %v523_v21 = vmax.f32 %v515_v10, 0.0  ;;  %v500_v22 = vmul.f32 0.00390625, %v484_v15  ;;  %v4075_v25 = vmul.f32 0.00390625, %v438_v16 }
 0x27f   :  { %v547_v28 = vadd.f32 1e-05, %v523_v21  ;;  %v516_v29 = vsub.f32 %v500_v22, %v508_v14  ;;  %v509_v31 = vmul.f32 %v4075_v25, %v4075_v25  ;;  %v537_v10 = vsub.f32 %v3988_v5, %v4075_v25 }
 0x280   :  { %v487_v32 = vpop.xlane.xlu1 %486  ;;  %v441_v33 = vpop.xlane.xlu0 %440  ;;  %v538_v14 = vsub.f32 %v3990_v7, %v4075_v25 }
 0x281   :  { %3678 = vrsqrt.f32 %v547_v28  ;;  %v524_v37 = vmax.f32 %v516_v29, 0.0  ;;  %v501_v23 = vmul.f32 0.00390625, %v487_v32  ;;  %v4094_v38 = vmul.f32 0.00390625, %v441_v33 }
 0x283   :  { %v3675_v47 = vpop.eup %3674  ;;  %v548_v51 = vadd.f32 1e-05, %v524_v37  ;;  %v517_v53 = vsub.f32 %v501_v23, %v509_v31  ;;  %v510_v39 = vmul.f32 %v4094_v38, %v4094_v38 }
 0x284   :  { %v561_v54 = vmul.f32 %v3675_v47, %v529_v40  ;;  %v490_v59 = vpop.xlane.xlu0 %489  ;;  %v444_v60 = vpop.xlane.xlu1 %443  ;;  %v562_v61 = vmul.f32 %v3675_v47, %v530_v41  ;;  %v540_v47 = vsub.f32 %v4000_v13, %v4094_v38 }
 0x285   :  { %3680 = vrsqrt.f32 %v548_v51  ;;  %v525_v63 = vmax.f32 %v517_v53, 0.0  ;;  %v502_v1 = vmul.f32 0.00390625, %v490_v59  ;;  %v4112_v2 = vmul.f32 0.00390625, %v444_v60 }
 0x286   :  { %v589_v6 = vmul.f32 %v4086_v34, %v562_v61  ;;  %v588_v57 = vmul.f32 %v4081_v30, %v561_v54 }
 0x287   :  { %v3677_v9 = vpop.eup %3676  ;;  %v549_v15 = vadd.f32 1e-05, %v525_v63  ;;  %v518_v16 = vsub.f32 %v502_v1, %v510_v39  ;;  %v511_v21 = vmul.f32 %v4112_v2, %v4112_v2 }
 0x288   :  { %v563_v18 = vmul.f32 %v3677_v9, %v531_v42  ;;  %v493_v22 = vpop.xlane.xlu1 %492  ;;  %v447_v27 = vpop.xlane.xlu0 %446  ;;  %v564_v8 = vmul.f32 %v3677_v9, %v532_v48  ;;  %v616_v28 = vadd.f32 %v4092_v36, %v589_v6  ;;  %v615_v40 = vadd.f32 %v4089_v35, %v588_v57 }
 0x289   :  { %3682 = vrsqrt.f32 %v549_v15  ;;  %v526_v29 = vmax.f32 %v518_v16, 0.0  ;;  %v503_v31 = vmul.f32 0.00390625, %v493_v22  ;;  %v4127_v32 = vmul.f32 0.00390625, %v447_v27 }
 0x28a   :  { %v591_v33 = vmul.f32 %v4086_v34, %v564_v8  ;;  %v632_v37 = vmul.f32 0.01, %v616_v28  ;;  %v590_v23 = vmul.f32 %v4081_v30, %v563_v18  ;;  %v539_v42 = vsub.f32 %v3998_v11, %v4094_v38 }
 0x28b   :  { %v3679_v41 = vpop.eup %3678  ;;  %v550_v48 = vadd.f32 1e-05, %v526_v29  ;;  %v519_v51 = vsub.f32 %v503_v31, %v511_v21  ;;  %v512_v54 = vmul.f32 %v4127_v32, %v4127_v32  ;;  %v631_v57 = vmul.f32 0.01, %v615_v40 }
 0x28c   :  { %v565_v53 = vmul.f32 %v3679_v41, %v533_v49  ;;  %v496_v39 = vpop.xlane.xlu0 %495  ;;  %v618_v59 = vadd.f32 %v4092_v36, %v591_v33  ;;  %v4139_v60 = vmax.f32 %v616_v28, %v632_v37  ;;  %v617_v1 = vadd.f32 %v4089_v35, %v590_v23 }
 0x28d   :  { %3684 = vrsqrt.f32 %v550_v48  ;;  %v527_v61 = vmax.f32 %v519_v51, 0.0  ;;  %v504_v63 = vmul.f32 0.00390625, %v496_v39  ;;  %v566_v9 = vmul.f32 %v3679_v41, %v534_v55 }
 0x28e   :  { %v634_v6 = vmul.f32 0.01, %v618_v59  ;;  %v665_v38 = vmul.f32 %v4102_v43, %v4139_v60  ;;  %v633_v18 = vmul.f32 0.01, %v617_v1  ;;  %v592_v21 = vmul.f32 %v4081_v30, %v565_v53 }
 0x28f   :  { %v3681_v49 = vpop.eup %3680  ;;  %v551_v15 = vadd.f32 1e-05, %v527_v61  ;;  %v520_v16 = vsub.f32 %v504_v63, %v512_v54  ;;  %v4147_v8 = vmax.f32 %v615_v40, %v631_v57  ;;  %v593_v33 = vmul.f32 %v4086_v34, %v566_v9 }
 0x290   :  { %v567_v22 = vmul.f32 %v3681_v49, %v535_v44  ;;  %v4145_v27 = vmax.f32 %v618_v59, %v634_v6  ;;  %v568_v28 = vmul.f32 %v3681_v49, %v536_v3  ;;  %v4149_v31 = vmax.f32 %v617_v1, %v633_v18 }
 0x291   :  { %5918 = vst [vmem:[#allocation25_spill] sm:$0xff] %v4147_v8  ;;  %3686 = vrsqrt.f32 %v551_v15  ;;  %v528_v29 = vmax.f32 %v520_v16, 0.0  ;;  %v664_v37 = vmul.f32 %v4102_v43, %v4147_v8  ;;  %v620_v48 = vadd.f32 %v4092_v36, %v593_v33 }
 0x292   :  { %5917 = vst [vmem:[#allocation24_spill] sm:$0xff] %v4145_v27  ;;  %5919 = vst [vmem:[#allocation26_spill] sm:$0xff] %v4149_v31  ;;  %v667_v55 = vmul.f32 %v4102_v43, %v4145_v27  ;;  %v595_v23 = vmul.f32 %v4086_v34, %v568_v28  ;;  %v594_v44 = vmul.f32 %v4081_v30, %v567_v22 }
 0x293   :  { %v3683_v41 = vpop.eup %3682  ;;  %v552_v40 = vadd.f32 1e-05, %v528_v29  ;;  %v666_v3 = vmul.f32 %v4102_v43, %v4149_v31  ;;  %v619_v51 = vadd.f32 %v4089_v35, %v592_v21  ;;  %v636_v63 = vmul.f32 0.01, %v620_v48 }
 0x294   :  { %v569_v53 = vmul.f32 %v3683_v41, %v537_v10  ;;  %v3555_v54 = vpack.c.bf16 %v667_v55, %v665_v38  ;;  %v622_v39 = vadd.f32 %v4092_v36, %v595_v23  ;;  %v621_v59 = vadd.f32 %v4089_v35, %v594_v44 }
 0x295   :  { %3688 = vrsqrt.f32 %v552_v40  ;;  %v3557_v61 = vpack.c.bf16 %v666_v3, %v664_v37  ;;  %v635_v1 = vmul.f32 0.01, %v619_v51  ;;  %v570_v9 = vmul.f32 %v3683_v41, %v538_v14 }
 0x296   :  { %3556 = vmatprep.subr.bf16.mxu0 %v3555_v54  ;;  %v638_v6 = vmul.f32 0.01, %v622_v39  ;;  %v637_v57 = vmul.f32 0.01, %v621_v59  ;;  %v596_v49 = vmul.f32 %v4081_v30, %v569_v53  ;;  %v541_v10 = vsub.f32 %v4008_v17, %v4112_v2 }
 0x297   :  { %v3685_v15 = vpop.eup %3684  ;;  %3558 = vmatpush1.bf16.msra.mxu0 %v3557_v61  ;;  %v4170_v38 = vmax.f32 %v620_v48, %v636_v63  ;;  %v4172_v16 = vmax.f32 %v619_v51, %v635_v1  ;;  %v597_v29 = vmul.f32 %v4086_v34, %v570_v9  ;;  %v542_v44 = vsub.f32 %v4010_v19, %v4112_v2 }
 0x298   :  { %v571_v18 = vmul.f32 %v3685_v15, %v539_v42  ;;  %v4174_v21 = vmax.f32 %v622_v39, %v638_v6  ;;  %v4176_v22 = vmax.f32 %v621_v59, %v637_v57  ;;  %v572_v28 = vmul.f32 %v3685_v15, %v540_v47 }
 0x299   :  { %5920 = vst [vmem:[#allocation27_spill] sm:$0xff] %v4170_v38  ;;  %5921 = vst [vmem:[#allocation28_spill] sm:$0xff] %v4172_v16  ;;  %v669_v25 = vmul.f32 %v4102_v43, %v4170_v38  ;;  %v668_v14 = vmul.f32 %v4102_v43, %v4172_v16  ;;  %v623_v33 = vadd.f32 %v4089_v35, %v596_v49 }
 0x29a   :  { %5922 = vst [vmem:[#allocation29_spill] sm:$0xff] %v4174_v21  ;;  %5923 = vst [vmem:[#allocation30_spill] sm:$0xff] %v4176_v22  ;;  %v671_v55 = vmul.f32 %v4102_v43, %v4174_v21  ;;  %v670_v42 = vmul.f32 %v4102_v43, %v4176_v22  ;;  %v599_v37 = vmul.f32 %v4086_v34, %v572_v28 }
 0x29b   :  { %v598_v47 = vmul.f32 %v4081_v30, %v571_v18  ;;  %v3687_v23 = vpop.eup %3686  ;;  %v624_v41 = vadd.f32 %v4092_v36, %v597_v29  ;;  %v639_v40 = vmul.f32 0.01, %v623_v33  ;;  %v543_v61 = vsub.f32 %v4018_v24, %v4127_v32 }
 0x29c   :  { %v573_v3 = vmul.f32 %v3687_v23, %v541_v10  ;;  %v3559_v48 = vpack.c.bf16 %v671_v55, %v669_v25  ;;  %v3561_v51 = vpack.c.bf16 %v670_v42, %v668_v14  ;;  %v626_v53 = vadd.f32 %v4092_v36, %v599_v37 }
 0x29d   :  { %v640_v54 = vmul.f32 0.01, %v624_v41  ;;  %v625_v39 = vadd.f32 %v4089_v35, %v598_v47  ;;  %v574_v59 = vmul.f32 %v3687_v23, %v542_v44  ;;  %v544_v63 = vsub.f32 %v4020_v26, %v4127_v32 }
 0x29e   :  { %3560 = vmatprep.subr.bf16.mxu0 %v3559_v48  ;;  %v642_v2 = vmul.f32 0.01, %v626_v53  ;;  %v600_v1 = vmul.f32 %v4081_v30, %v573_v3  ;;  %v4202_v49 = vmax.f32 %v623_v33, %v639_v40 }
 0x29f   :  { %v3689_v6 = vpop.eup %3688  ;;  %3562 = vmatpush1.bf16.msra.mxu0 %v3561_v51  ;;  %v4200_v57 = vmax.f32 %v624_v41, %v640_v54  ;;  %v641_v9 = vmul.f32 0.01, %v625_v39  ;;  %v601_v15 = vmul.f32 %v4086_v34, %v574_v59 }
 0x2a0   :  { %5925 = vst [vmem:[#allocation32_spill] sm:$0xff] %v4202_v49  ;;  %v575_v10 = vmul.f32 %v3689_v6, %v543_v61  ;;  %v4205_v18 = vmax.f32 %v626_v53, %v642_v2  ;;  %v576_v28 = vmul.f32 %v3689_v6, %v544_v63  ;;  %v627_v25 = vadd.f32 %v4089_v35, %v600_v1  ;;  %v680_v1 = vld [vmem:[%s5812_s4] sm:$0xff]  ;;  %v681_v6 = vld [vmem:[%s5812_s4 + $0x8] sm:$0xff] }
 0x2a1   :  { %5924 = vst [vmem:[#allocation31_spill] sm:$0xff] %v4200_v57  ;;  %v673_v32 = vmul.f32 %v4102_v43, %v4200_v57  ;;  %v4210_v14 = vmax.f32 %v625_v39, %v641_v9  ;;  %v628_v29 = vadd.f32 %v4092_v36, %v601_v15  ;;  %v672_v47 = vmul.f32 %v4102_v43, %v4202_v49  ;;  %v682_v9 = vld [vmem:[%s5812_s4 + $0x10] sm:$0xff]  ;;  %v683_v15 = vld [vmem:[%s5812_s4 + $0x18] sm:$0xff] }
 0x2a2   :  { %5926 = vst [vmem:[#allocation33_spill] sm:$0xff] %v4205_v18  ;;  %v675_v55 = vmul.f32 %v4102_v43, %v4205_v18  ;;  %v603_v33 = vmul.f32 %v4086_v34, %v576_v28  ;;  %v602_v42 = vmul.f32 %v4081_v30, %v575_v10  ;;  %v643_v37 = vmul.f32 0.01, %v627_v25  ;;  %v684_v10 = vld [vmem:[%s5812_s4 + $0x20] sm:$0xff]  ;;  %v685_v28 = vld [vmem:[%s5812_s4 + $0x28] sm:$0xff] }
 0x2a3   :  { %5927 = vst [vmem:[#allocation34_spill] sm:$0xff] %v4210_v14  ;;  %v674_v23 = vmul.f32 %v4102_v43, %v4210_v14  ;;  %v644_v44 = vmul.f32 0.01, %v628_v29 }
 0x2a4   :  { %v3563_v41 = vpack.c.bf16 %v675_v55, %v673_v32  ;;  %v630_v40 = vadd.f32 %v4092_v36, %v603_v33  ;;  %v629_v3 = vadd.f32 %v4089_v35, %v602_v42  ;;  %v4225_v30 = vmax.f32 %v627_v25, %v643_v37  ;;  %v686_v25 = vld [vmem:[%s5812_s4 + $0x30] sm:$0xff]  ;;  %v687_v32 = vld [vmem:[%s5812_s4 + $0x38] sm:$0xff] }
 0x2a5   :  { %v3565_v48 = vpack.c.bf16 %v674_v23, %v672_v47  ;;  %v4223_v53 = vmax.f32 %v628_v29, %v644_v44  ;;  %v699_v29 = vpop.permute.xlu1 %698  ;;  %v704_v47 = vpop.permute.xlu0 %703 }
 0x2a6   :  { %3564 = vmatprep.subr.bf16.mxu0 %v3563_v41  ;;  %v646_v51 = vmul.f32 0.01, %v630_v40  ;;  %v645_v34 = vmul.f32 0.01, %v629_v3  ;;  %5929 = vst [vmem:[#allocation36_spill] sm:$0xff] %v4225_v30  ;;  %v676_v35 = vmul.f32 %v4102_v43, %v4225_v30 }
 0x2a7   :  { %5928 = vst [vmem:[#allocation35_spill] sm:$0xff] %v4223_v53  ;;  %3566 = vmatpush1.bf16.msra.mxu0 %v3565_v48  ;;  %v677_v59 = vmul.f32 %v4102_v43, %v4223_v53 }
 0x2a8   :  { %v4227_v54 = vmax.f32 %v630_v40, %v646_v51  ;;  %v4229_v39 = vmax.f32 %v629_v3, %v645_v34 }
 0x2a9   :  { %v709_v3 = vpop.permute.xlu1 %708 }
 0x2aa   :  { %5930 = vst [vmem:[#allocation37_spill] sm:$0xff] %v4227_v54  ;;  %5931 = vst [vmem:[#allocation38_spill] sm:$0xff] %v4229_v39  ;;  %v679_v36 = vmul.f32 %v4102_v43, %v4227_v54  ;;  %v678_v61 = vmul.f32 %v4102_v43, %v4229_v39 }
 0x2ac   :  { %v3567_v63 = vpack.c.bf16 %v679_v36, %v677_v59  ;;  %v3569_v2 = vpack.c.bf16 %v678_v61, %v676_v35 }
 0x2ae   :  { %3568 = vmatprep.subr.bf16.mxu0 %v3567_v63 }
 0x2af   :  { %3570 = vmatpush1.bf16.msra.mxu0 %v3569_v2 }
 0x2b2   :  { %3457 = vmatmul.mubr.msk.f32.vlgmr.msra.gmra.mrb[8].mxu0 %vm283_vm1, %v680_v1 }
 0x2b3   :  { %830 = vmatprep.mubr.f32.mxu0 %v5818_v4 }
 0x2b6   :  { %3458 = vmatmul.mubr.msk.f32.gmra.mrb[10].mxu0 %vm283_vm1, %v681_v6 }
 0x2b7   :  { %836 = vmatprep.mubr.f32.mxu0 %v5818_v4 }
 0x2ba   :  { %3459 = vmatmul.mubr.msk.f32.gmra.mrb[12].mxu0 %vm283_vm1, %v682_v9 }
 0x2bb   :  { %842 = vmatprep.mubr.f32.mxu0 %v5818_v4 }
 0x2be   :  { %3460 = vmatmul.mubr.msk.f32.gmra.mrb[14].mxu0 %vm283_vm1, %v683_v15 }
 0x2bf   :  { %848 = vmatprep.mubr.f32.mxu0 %v5818_v4 }
 0x2c2   :  { %3461 = vmatmul.mubr.msk.f32.gmra.mrb[16].mxu0 %vm283_vm1, %v684_v10  ;;  %v714_v10 = vpop.permute.xlu1 %713 }
 0x2c3   :  { %854 = vmatprep.mubr.f32.mxu0 %v5818_v4 }
 0x2c6   :  { %3462 = vmatmul.mubr.msk.f32.gmra.mrb[18].mxu0 %vm283_vm1, %v685_v28 }
 0x2c7   :  { %860 = vmatprep.mubr.f32.mxu0 %v5818_v4 }
 0x2ca   :  { %3463 = vmatmul.mubr.msk.f32.gmra.mrb[20].mxu0 %vm283_vm1, %v686_v25 }
 0x2cb   :  { %866 = vmatprep.mubr.f32.mxu0 %v5818_v4 }
 0x2ce   :  { %3464 = vmatmul.mubr.msk.f32.gmra.mrb[22].mxu0 %vm283_vm1, %v687_v32 }
 0x2cf   :  { %1009 = vmatprep.mubr.f32.mxu0 %v5818_v4 }
 0x385   :  { %v826_v55 = vpop.f32.mrb[8].mxu0 }
 0x386   :  { %v827_v33 = vadd.f32 %v826_v55, %v699_v29  ;;  %v828_v42 = vpop.f32.mrb[9].mxu0 }
 0x387   :  { %v829_v37 = vadd.f32 %v828_v42, %v699_v29 }
 0x388   :  { %v873_v44 = vmul.f32 0.01, %v827_v33 }
 0x389   :  { %v832_v23 = vpop.f32.mrb[10].mxu0  ;;  %v874_v48 = vmul.f32 0.01, %v829_v37 }
 0x38a   :  { %v833_v41 = vadd.f32 %v832_v23, %v704_v47  ;;  %v834_v40 = vpop.f32.mrb[11].mxu0  ;;  %v889_v35 = vmax.f32 %v827_v33, %v873_v44  ;;  %v719_v33 = vpop.permute.xlu0 %718 }
 0x38b   :  { %v835_v51 = vadd.f32 %v834_v40, %v704_v47  ;;  %v890_v1 = vmax.f32 %v829_v37, %v874_v48 }
 0x38c   :  { %v875_v34 = vmul.f32 0.01, %v833_v41 }
 0x38d   :  { %v876_v59 = vmul.f32 0.01, %v835_v51  ;;  %v838_v36 = vpop.f32.mrb[12].mxu0 }
 0x38e   :  { %v891_v61 = vmax.f32 %v833_v41, %v875_v34  ;;  %v839_v63 = vadd.f32 %v838_v36, %v709_v3  ;;  %v840_v2 = vpop.f32.mrb[13].mxu0 }
 0x38f   :  { %v892_v6 = vmax.f32 %v835_v51, %v876_v59  ;;  %v841_v9 = vadd.f32 %v840_v2, %v709_v3 }
 0x390   :  { %v3573_v15 = vpack.c.bf16 %v891_v61, %v889_v35  ;;  %v877_v32 = vmul.f32 0.01, %v839_v63  ;;  %v724_v35 = vpop.permute.xlu1 %723 }
 0x391   :  { %v844_v28 = vpop.f32.mrb[14].mxu0  ;;  %v3571_v25 = vpack.c.bf16 %v892_v6, %v890_v1  ;;  %v878_v42 = vmul.f32 0.01, %v841_v9 }
 0x392   :  { %v845_v29 = vadd.f32 %v844_v28, %v714_v10  ;;  %v846_v55 = vpop.f32.mrb[15].mxu0  ;;  %v893_v37 = vmax.f32 %v839_v63, %v877_v32  ;;  %v729_v63 = vpop.permute.xlu0 %728 }
 0x393   :  { %v847_v23 = vadd.f32 %v846_v55, %v714_v10  ;;  %3572 = vmatprep.subr.bf16.mxu0 %v3571_v25  ;;  %3661 = vmatprep.subr.bf16.mxu1 %v3571_v25  ;;  %v894_v51 = vmax.f32 %v841_v9, %v878_v42 }
 0x394   :  { %v879_v47 = vmul.f32 0.01, %v845_v29  ;;  %3574 = vmatpush1.bf16.msra.mxu0 %v3573_v15  ;;  %3665 = vmatpush1.bf16.msra.mxu1 %v3573_v15 }
 0x395   :  { %v880_v44 = vmul.f32 0.01, %v847_v23  ;;  %v850_v41 = vpop.f32.mrb[16].mxu0 }
 0x396   :  { %v895_v40 = vmax.f32 %v845_v29, %v879_v47  ;;  %v851_v3 = vadd.f32 %v850_v41, %v719_v33  ;;  %v852_v48 = vpop.f32.mrb[17].mxu0 }
 0x397   :  { %v896_v34 = vmax.f32 %v847_v23, %v880_v44  ;;  %v853_v59 = vadd.f32 %v852_v48, %v719_v33 }
 0x398   :  { %v3577_v36 = vpack.c.bf16 %v895_v40, %v893_v37  ;;  %v881_v1 = vmul.f32 0.01, %v851_v3  ;;  %v734_v37 = vpop.permute.xlu1 %733 }
 0x399   :  { %v856_v61 = vpop.f32.mrb[18].mxu0  ;;  %v3575_v2 = vpack.c.bf16 %v896_v34, %v894_v51  ;;  %v882_v28 = vmul.f32 0.01, %v853_v59 }
 0x39a   :  { %v857_v6 = vadd.f32 %v856_v61, %v724_v35  ;;  %v858_v10 = vpop.f32.mrb[19].mxu0  ;;  %v897_v9 = vmax.f32 %v851_v3, %v881_v1 }
 0x39b   :  { %v859_v25 = vadd.f32 %v858_v10, %v724_v35  ;;  %3576 = vmatprep.subr.bf16.mxu0 %v3575_v2  ;;  %3662 = vmatprep.subr.bf16.mxu1 %v3575_v2  ;;  %v898_v47 = vmax.f32 %v853_v59, %v882_v28 }
 0x39c   :  { %v883_v15 = vmul.f32 0.01, %v857_v6  ;;  %3578 = vmatpush1.bf16.msra.mxu0 %v3577_v36  ;;  %3666 = vmatpush1.bf16.msra.mxu1 %v3577_v36 }
 0x39d   :  { %v884_v32 = vmul.f32 0.01, %v859_v25  ;;  %v862_v29 = vpop.f32.mrb[20].mxu0 }
 0x39e   :  { %v899_v55 = vmax.f32 %v857_v6, %v883_v15  ;;  %v863_v42 = vadd.f32 %v862_v29, %v729_v63  ;;  %v864_v23 = vpop.f32.mrb[21].mxu0  ;;  %v905_v15 = vld [vmem:[%s5814_s6] sm:$0xff]  ;;  %v908_v29 = vld [vmem:[%s5814_s6 + $0x18] sm:$0xff] }
 0x39f   :  { %v900_v33 = vmax.f32 %v859_v25, %v884_v32  ;;  %v865_v44 = vadd.f32 %v864_v23, %v729_v63  ;;  %v906_v63 = vld [vmem:[%s5814_s6 + $0x8] sm:$0xff]  ;;  %v907_v32 = vld [vmem:[%s5814_s6 + $0x10] sm:$0xff]  ;;  %v912_v23 = vld [vmem:[%s5814_s6 + $0x38] sm:$0xff] }
 0x3a0   :  { %v3581_v41 = vpack.c.bf16 %v899_v55, %v897_v9  ;;  %v885_v51 = vmul.f32 0.01, %v863_v42  ;;  %v909_v9 = vld [vmem:[%s5814_s6 + $0x20] sm:$0xff]  ;;  %v910_v55 = vld [vmem:[%s5814_s6 + $0x28] sm:$0xff] }
 0x3a1   :  { %v868_v40 = vpop.f32.mrb[22].mxu0  ;;  %v3579_v48 = vpack.c.bf16 %v900_v33, %v898_v47  ;;  %v886_v61 = vmul.f32 0.01, %v865_v44  ;;  %v913_v47 = vld [vmem:[%s5814_s6 + $0x40] sm:$0xff]  ;;  %v914_v33 = vld [vmem:[%s5814_s6 + $0x48] sm:$0xff] }
 0x3a2   :  { %v869_v34 = vadd.f32 %v868_v40, %v734_v37  ;;  %v870_v35 = vpop.f32.mrb[23].mxu0  ;;  %v901_v1 = vmax.f32 %v863_v42, %v885_v51  ;;  %v911_v42 = vld [vmem:[%s5814_s6 + $0x30] sm:$0xff] }
 0x3a3   :  { %v871_v2 = vadd.f32 %v870_v35, %v734_v37  ;;  %3580 = vmatprep.subr.bf16.mxu0 %v3579_v48  ;;  %3663 = vmatprep.subr.bf16.mxu1 %v3579_v48  ;;  %v902_v59 = vmax.f32 %v865_v44, %v886_v61 }
 0x3a4   :  { %v887_v36 = vmul.f32 0.01, %v869_v34  ;;  %3582 = vmatpush1.bf16.msra.mxu0 %v3581_v41  ;;  %3667 = vmatpush1.bf16.msra.mxu1 %v3581_v41 }
 0x3a5   :  { %v888_v3 = vmul.f32 0.01, %v871_v2 }
 0x3a6   :  { %v903_v6 = vmax.f32 %v869_v34, %v887_v36 }
 0x3a7   :  { %v904_v10 = vmax.f32 %v871_v2, %v888_v3 }
 0x3a8   :  { %v3585_v28 = vpack.c.bf16 %v903_v6, %v901_v1 }
 0x3a9   :  { %v3583_v25 = vpack.c.bf16 %v904_v10, %v902_v59 }
 0x3ab   :  { %3584 = vmatprep.subr.bf16.mxu0 %v3583_v25  ;;  %3664 = vmatprep.subr.bf16.mxu1 %v3583_v25 }
 0x3ac   :  { %3586 = vmatpush1.bf16.msra.mxu0 %v3585_v28  ;;  %3668 = vmatpush1.bf16.msra.mxu1 %v3585_v28 }
 0x3af   :  { %3465 = vmatmul.mubr.msk.f32.vlgmr.msra.gmra.mrb[24].mxu0 %vm283_vm1, %v905_v15  ;;  %3466 = vmatmul.mubr.msk.f32.vlgmr.msra.gmra.mrb[24].mxu1 %vm283_vm1, %v906_v63 }
 0x3b0   :  { %1021 = vmatprep.mubr.f32.mxu1 %v5818_v4  ;;  %1251 = vmatprep.mubr.f32.mxu0 %v5818_v4 }
 0x3b3   :  { %3467 = vmatmul.mubr.msk.f32.gmra.mrb[26].mxu1 %vm283_vm1, %v907_v32 }
 0x3b4   :  { %1027 = vmatprep.mubr.f32.mxu1 %v5818_v4 }
 0x3b7   :  { %3468 = vmatmul.mubr.msk.f32.gmra.mrb[28].mxu1 %vm283_vm1, %v908_v29 }
 0x3b8   :  { %1033 = vmatprep.mubr.f32.mxu1 %v5818_v4 }
 0x3bb   :  { %3469 = vmatmul.mubr.msk.f32.gmra.mrb[30].mxu1 %vm283_vm1, %v909_v9 }
 0x3bc   :  { %1039 = vmatprep.mubr.f32.mxu1 %v5818_v4 }
 0x3bf   :  { %3470 = vmatmul.mubr.msk.f32.gmra.mrb[32].mxu1 %vm283_vm1, %v910_v55 }
 0x3c0   :  { %1045 = vmatprep.mubr.f32.mxu1 %v5818_v4 }
 0x3c3   :  { %3471 = vmatmul.mubr.msk.f32.gmra.mrb[34].mxu1 %vm283_vm1, %v911_v42 }
 0x3c4   :  { %1051 = vmatprep.mubr.f32.mxu1 %v5818_v4 }
 0x3c7   :  { %3472 = vmatmul.mubr.msk.f32.gmra.mrb[36].mxu1 %vm283_vm1, %v912_v23 }
 0x3c8   :  { %1057 = vmatprep.mubr.f32.mxu1 %v5818_v4 }
 0x3cb   :  { %3473 = vmatmul.mubr.msk.f32.gmra.mrb[38].mxu1 %vm283_vm1, %v913_v47 }
 0x3cc   :  { %1063 = vmatprep.mubr.f32.mxu1 %v5818_v4 }
 0x3cf   :  { %3474 = vmatmul.mubr.msk.f32.gmra.mrb[40].mxu1 %vm283_vm1, %v914_v33 }
 0x3d0   :  { %2007 = vmatprep.mubr.f32.mxu1 %v5818_v4 }
 0x482   :  { %v4329_v44 = vpop.f32.mrb[24].mxu0  ;;  %v4331_v41 = vpop.f32.mrb[24].mxu1 }
 0x483   :  { %v4333_v37 = vpop.f32.mrb[25].mxu0  ;;  %v4335_v40 = vpop.f32.mrb[25].mxu1  ;;  %v1082_v48 = vmul.f32 %v4329_v44, %v4329_v44  ;;  %v1084_v51 = vmul.f32 %v4331_v41, %v4331_v41 }
 0x484   :  { %v1077_v34 = vadd.f32 %v4335_v40, %v4331_v41  ;;  %v1074_v35 = vadd.f32 %v4333_v37, %v4329_v44  ;;  %v1083_v61 = vmul.f32 %v4333_v37, %v4333_v37  ;;  %v1085_v2 = vmul.f32 %v4335_v40, %v4335_v40 }
 0x486   :  { %1078 = vadd.xlane.f32.xlu1 %v1077_v34  ;;  %v1023_v36 = vpop.f32.mrb[26].mxu1  ;;  %1075 = vadd.xlane.f32.xlu0 %v1074_v35  ;;  %v1086_v3 = vadd.f32 %v1083_v61, %v1082_v48  ;;  %v1089_v1 = vadd.f32 %v1085_v2, %v1084_v51 }
 0x487   :  { %v4350_v6 = vadd.f32 %v1023_v36, %v3948_v45  ;;  %v1025_v59 = vpop.f32.mrb[27].mxu1  ;;  %v1871_v45 = vld [vmem:[%s5810_s2 + $0x40] sm:$0xff] }
 0x488   :  { %v4353_v10 = vadd.f32 %v1025_v59, %v3950_v46 }
 0x489   :  { %v1592_v15 = vmul.f32 %v4350_v6, %v4350_v6 }
 0x48a   :  { %v1029_v28 = vpop.f32.mrb[28].mxu1  ;;  %1087 = vadd.xlane.f32.xlu0 %v1086_v3  ;;  %v1560_v25 = vadd.f32 %v4353_v10, %v4350_v6  ;;  %v1593_v63 = vmul.f32 %v4353_v10, %v4353_v10 }
 0x48b   :  { %v4362_v32 = vadd.f32 %v1029_v28, %v3958_v50  ;;  %v1031_v29 = vpop.f32.mrb[29].mxu1 }
 0x48c   :  { %v4365_v9 = vadd.f32 %v1031_v29, %v3960_v52  ;;  %1561 = vadd.xlane.f32.xlu1 %v1560_v25  ;;  %v1608_v42 = vadd.f32 %v1593_v63, %v1592_v15 }
 0x48d   :  { %v1594_v51 = vmul.f32 %v4362_v32, %v4362_v32 }
 0x48e   :  { %v1035_v55 = vpop.f32.mrb[30].mxu1  ;;  %1090 = vadd.xlane.f32.xlu0 %v1089_v1  ;;  %v1563_v48 = vadd.f32 %v4365_v9, %v4362_v32  ;;  %v1595_v34 = vmul.f32 %v4365_v9, %v4365_v9 }
 0x48f   :  { %v4368_v23 = vadd.f32 %v1035_v55, %v3968_v56  ;;  %v1037_v47 = vpop.f32.mrb[31].mxu1 }
 0x490   :  { %v4371_v33 = vadd.f32 %v1037_v47, %v3970_v58  ;;  %1609 = vadd.xlane.f32.xlu1 %v1608_v42  ;;  %v1611_v28 = vadd.f32 %v1595_v34, %v1594_v51 }
 0x491   :  { %v1596_v2 = vmul.f32 %v4368_v23, %v4368_v23 }
 0x492   :  { %v1041_v35 = vpop.f32.mrb[32].mxu1  ;;  %1564 = vadd.xlane.f32.xlu0 %v1563_v48  ;;  %v1566_v61 = vadd.f32 %v4371_v33, %v4368_v23  ;;  %v1597_v36 = vmul.f32 %v4371_v33, %v4371_v33 }
 0x493   :  { %v4386_v3 = vadd.f32 %v1041_v35, %v3978_v62  ;;  %v1043_v1 = vpop.f32.mrb[33].mxu1 }
 0x494   :  { %v4389_v59 = vadd.f32 %v1043_v1, %v3980_v0  ;;  %1567 = vadd.xlane.f32.xlu1 %v1566_v61  ;;  %v1614_v15 = vadd.f32 %v1597_v36, %v1596_v2 }
 0x495   :  { %v1598_v47 = vmul.f32 %v4386_v3, %v4386_v3 }
 0x496   :  { %v1047_v25 = vpop.f32.mrb[34].mxu1  ;;  %1612 = vadd.xlane.f32.xlu0 %v1611_v28  ;;  %v1569_v42 = vadd.f32 %v4389_v59, %v4386_v3  ;;  %v1599_v48 = vmul.f32 %v4389_v59, %v4389_v59 }
 0x497   :  { %v4392_v63 = vadd.f32 %v1047_v25, %v3988_v5  ;;  %v1049_v29 = vpop.f32.mrb[35].mxu1 }
 0x498   :  { %v4395_v55 = vadd.f32 %v1049_v29, %v3990_v7  ;;  %1615 = vadd.xlane.f32.xlu1 %v1614_v15  ;;  %v1617_v28 = vadd.f32 %v1599_v48, %v1598_v47 }
 0x499   :  { %v1600_v35 = vmul.f32 %v4392_v63, %v4392_v63 }
 0x49a   :  { %v1053_v51 = vpop.f32.mrb[36].mxu1  ;;  %1570 = vadd.xlane.f32.xlu0 %v1569_v42  ;;  %v1572_v34 = vadd.f32 %v4395_v55, %v4392_v63  ;;  %v1601_v61 = vmul.f32 %v4395_v55, %v4395_v55 }
 0x49b   :  { %v4410_v2 = vadd.f32 %v1053_v51, %v3998_v11  ;;  %v1055_v36 = vpop.f32.mrb[37].mxu1 }
 0x49c   :  { %v4413_v1 = vadd.f32 %v1055_v36, %v4000_v13  ;;  %1573 = vadd.xlane.f32.xlu1 %v1572_v34  ;;  %v1620_v15 = vadd.f32 %v1601_v61, %v1600_v35 }
 0x49d   :  { %v1602_v36 = vmul.f32 %v4410_v2, %v4410_v2 }
 0x49e   :  { %v1059_v25 = vpop.f32.mrb[38].mxu1  ;;  %1618 = vadd.xlane.f32.xlu0 %v1617_v28  ;;  %v1575_v51 = vadd.f32 %v4413_v1, %v4410_v2  ;;  %v1603_v47 = vmul.f32 %v4413_v1, %v4413_v1 }
 0x49f   :  { %v4416_v29 = vadd.f32 %v1059_v25, %v4008_v17  ;;  %v1061_v42 = vpop.f32.mrb[39].mxu1 }
 0x4a0   :  { %v4419_v4 = vadd.f32 %v1061_v42, %v4010_v19  ;;  %1621 = vadd.xlane.f32.xlu1 %v1620_v15  ;;  %v1623_v25 = vadd.f32 %v1603_v47, %v1602_v36 }
 0x4a2   :  { %v1065_v48 = vpop.f32.mrb[40].mxu1  ;;  %1576 = vadd.xlane.f32.xlu0 %v1575_v51  ;;  %v1578_v34 = vadd.f32 %v4419_v4, %v4416_v29  ;;  %v1605_v52 = vmul.f32 %v4419_v4, %v4419_v4 }
 0x4a3   :  { %v4430_v35 = vadd.f32 %v1065_v48, %v4018_v24  ;;  %v1067_v61 = vpop.f32.mrb[41].mxu1 }
 0x4a4   :  { %v4433_v28 = vadd.f32 %v1067_v61, %v4020_v26  ;;  %1579 = vadd.xlane.f32.xlu1 %v1578_v34 }
 0x4a6   :  { %5932 = vst [vmem:[#allocation39_spill] sm:$0xff] %v4433_v28  ;;  %1624 = vadd.xlane.f32.xlu0 %v1623_v25  ;;  %v1581_v15 = vadd.f32 %v4433_v28, %v4430_v35  ;;  %v3475_v25 = vld [vmem:[%s5816_s8 + $0x2] ss:$8 sm:$0x3]  ;;  %v1607_v50 = vmul.f32 %v4433_v28, %v4433_v28 }
 0x4aa   :  { %1582 = vadd.xlane.f32.xlu0 %v1581_v15  ;;  %v3476_v15 = vld [vmem:[%s5816_s8 + $0x3] ss:$8 sm:$0x3] }
 0x513   :  { %v1076_v42 = vpop.xlane.xlu0 %1075  ;;  %v1079_v51 = vpop.xlane.xlu1 %1078 }
 0x514   :  { %v1080_v19 = vmul.f32 0.00390625, %v1076_v42  ;;  %v1081_v13 = vmul.f32 0.00390625, %v1079_v51  ;;  %v1135_v42 = vrot.slane %v3476_v15, %v4073_v20 }
 0x516   :  { %v1094_v11 = vmul.f32 %v1080_v19, %v1080_v19  ;;  %v1095_v24 = vmul.f32 %v1081_v13, %v1081_v13  ;;  %v1103_v51 = vsub.f32 %v4335_v40, %v1081_v13 }
 0x517   :  { %v1088_v17 = vpop.xlane.xlu0 %1087 }
 0x518   :  { %v1092_v7 = vmul.f32 0.00390625, %v1088_v17  ;;  %v1116_v17 = vrot.slane %v3475_v25, %v4066_v12 }
 0x51a   :  { %v1096_v48 = vsub.f32 %v1092_v7, %v1094_v11  ;;  %v1100_v7 = vsub.f32 %v4329_v44, %v1080_v19  ;;  %v1101_v11 = vsub.f32 %v4333_v37, %v1080_v19  ;;  %v1102_v44 = vsub.f32 %v4331_v41, %v1081_v13 }
 0x51b   :  { %v1091_v5 = vpop.xlane.xlu0 %1090 }
 0x51c   :  { %v1098_v0 = vmax.f32 %v1096_v48, 0.0  ;;  %v1093_v61 = vmul.f32 0.00390625, %v1091_v5  ;;  %v1120_v5 = vrot.slane %v3475_v25, %v4073_v20 }
 0x51e   :  { %v1104_v26 = vadd.f32 1e-05, %v1098_v0  ;;  %v1097_v34 = vsub.f32 %v1093_v61, %v1095_v24 }
 0x520   :  { %3690 = vrsqrt.f32 %v1104_v26  ;;  %v1099_v36 = vmax.f32 %v1097_v34, 0.0  ;;  %v1131_v34 = vrot.slane %v3476_v15, %v4066_v12 }
 0x522   :  { %v1105_v47 = vadd.f32 1e-05, %v1099_v36 }
 0x524   :  { %3692 = vrsqrt.f32 %v1105_v47 }
 0x52a   :  { %v3691_v0 = vpop.eup %3690 }
 0x52b   :  { %v1108_v24 = vmul.f32 %v3691_v0, %v1100_v7  ;;  %v1109_v26 = vmul.f32 %v3691_v0, %v1101_v11 }
 0x52d   :  { %v1124_v48 = vmul.f32 %v1120_v5, %v1109_v26  ;;  %v1123_v36 = vmul.f32 %v1116_v17, %v1108_v24 }
 0x52e   :  { %v3693_v61 = vpop.eup %3692 }
 0x52f   :  { %v1111_v47 = vmul.f32 %v3693_v61, %v1103_v51  ;;  %v1139_v19 = vadd.f32 %v1135_v42, %v1124_v48  ;;  %v1110_v37 = vmul.f32 %v3693_v61, %v1102_v44  ;;  %v1138_v56 = vadd.f32 %v1131_v34, %v1123_v36  ;;  %v1157_v51 = vld [vmem:[%s5815_s7 + $0x18] sm:$0xff]  ;;  %v1158_v48 = vld [vmem:[%s5815_s7 + $0x20] sm:$0xff]  ;;  %v1159_v61 = vld [vmem:[%s5815_s7 + $0x28] sm:$0xff] }
 0x530   :  { %v1161_v36 = vld [vmem:[%s5815_s7 + $0x38] sm:$0xff] }
 0x531   :  { %v1126_v62 = vmul.f32 %v1120_v5, %v1111_v47  ;;  %v1143_v58 = vmul.f32 0.01, %v1139_v19  ;;  %v1125_v0 = vmul.f32 %v1116_v17, %v1110_v37  ;;  %v1142_v40 = vmul.f32 0.01, %v1138_v56  ;;  %v1155_v17 = vld [vmem:[%s5815_s7 + $0x8] sm:$0xff] }
 0x532   :  { %v5933_v5 = vmov 0.0  }
 0x533   :  { %v1141_v25 = vadd.f32 %v1135_v42, %v1126_v62  ;;  %v1147_v7 = vmax.f32 %v1139_v19, %v1143_v58  ;;  %v1140_v15 = vadd.f32 %v1131_v34, %v1125_v0  ;;  %v1146_v24 = vmax.f32 %v1138_v56, %v1142_v40  ;;  %v1154_v56 = vld [vmem:[%s5815_s7] sm:$0xff]  ;;  %v1156_v42 = vld [vmem:[%s5815_s7 + $0x10] sm:$0xff] }
 0x534   :  { %v1160_v34 = vld [vmem:[%s5815_s7 + $0x30] sm:$0xff] }
 0x535   :  { %v1145_v11 = vmul.f32 0.01, %v1141_v25  ;;  %1151 = vst [vmem:[%s5817_s9 + $0x8] sm:$0xff] %v1147_v7  ;;  %v1144_v41 = vmul.f32 0.01, %v1140_v15  ;;  %1150 = vst [vmem:[%s5817_s9] sm:$0xff] %v1146_v24 }
 0x537   :  { %v1149_v26 = vmax.f32 %v1141_v25, %v1145_v11  ;;  %v1148_v58 = vmax.f32 %v1140_v15, %v1144_v41 }
 0x539   :  { %1153 = vst [vmem:[%s5817_s9 + $0x18] sm:$0xff] %v1149_v26  ;;  %v3587_v13 = vpack.c.bf16 %v1149_v26, %v1147_v7  ;;  %1152 = vst [vmem:[%s5817_s9 + $0x10] sm:$0xff] %v1148_v58  ;;  %v3589_v62 = vpack.c.bf16 %v1148_v58, %v1146_v24 }
 0x53b   :  { %3588 = vmatprep.subr.bf16.mxu0 %v3587_v13 }
 0x53c   :  { %3590 = vmatpush1.bf16.msra.mxu0 %v3589_v62 }
 0x53f   :  { %3477 = vmatmul.mubr.msk.f32.vlgmr.msra.gmra.mrb[26].mxu0 %vm1162_vm2, %v1154_v56 }
 0x540   :  { %1257 = vmatprep.mubr.f32.mxu0 %v5933_v5 }
 0x543   :  { %3478 = vmatmul.mubr.msk.f32.gmra.mrb[28].mxu0 %vm1162_vm2, %v1155_v17 }
 0x544   :  { %1263 = vmatprep.mubr.f32.mxu0 %v5933_v5 }
 0x547   :  { %3479 = vmatmul.mubr.msk.f32.gmra.mrb[30].mxu0 %vm1162_vm2, %v1156_v42 }
 0x548   :  { %1269 = vmatprep.mubr.f32.mxu0 %v5933_v5 }
 0x54b   :  { %3480 = vmatmul.mubr.msk.f32.gmra.mrb[32].mxu0 %vm1162_vm2, %v1157_v51 }
 0x54c   :  { %1275 = vmatprep.mubr.f32.mxu0 %v5933_v5 }
 0x54f   :  { %3481 = vmatmul.mubr.msk.f32.gmra.mrb[34].mxu0 %vm1162_vm2, %v1158_v48 }
 0x550   :  { %1281 = vmatprep.mubr.f32.mxu0 %v5933_v5 }
 0x553   :  { %3482 = vmatmul.mubr.msk.f32.gmra.mrb[36].mxu0 %vm1162_vm2, %v1159_v61 }
 0x554   :  { %1287 = vmatprep.mubr.f32.mxu0 %v5933_v5 }
 0x557   :  { %3483 = vmatmul.mubr.msk.f32.gmra.mrb[38].mxu0 %vm1162_vm2, %v1160_v34 }
 0x558   :  { %1293 = vmatprep.mubr.f32.mxu0 %v5933_v5 }
 0x55b   :  { %3484 = vmatmul.mubr.msk.f32.gmra.mrb[40].mxu0 %vm1162_vm2, %v1161_v36 }
 0x55c   :  { %2192 = vmatprep.mubr.f32.mxu0 %v5933_v5 }
 0x612   :  { %v4503_v44 = vpop.f32.mrb[26].mxu0 }
 0x613   :  { %v4505_v47 = vpop.f32.mrb[27].mxu0  ;;  %v1336_v19 = vmul.f32 %v4503_v44, %v4503_v44 }
 0x614   :  { %v1304_v37 = vadd.f32 %v4505_v47, %v4503_v44  ;;  %v1337_v25 = vmul.f32 %v4505_v47, %v4505_v47 }
 0x616   :  { %1305 = vadd.xlane.f32.xlu1 %v1304_v37  ;;  %v4513_v7 = vpop.f32.mrb[28].mxu0  ;;  %v1352_v11 = vadd.f32 %v1337_v25, %v1336_v19 }
 0x617   :  { %v4515_v0 = vpop.f32.mrb[29].mxu0  ;;  %v1338_v40 = vmul.f32 %v4513_v7, %v4513_v7 }
 0x618   :  { %v1307_v26 = vadd.f32 %v4515_v0, %v4513_v7  ;;  %v1339_v15 = vmul.f32 %v4515_v0, %v4515_v0 }
 0x61a   :  { %1353 = vadd.xlane.f32.xlu1 %v1352_v11  ;;  %1308 = vadd.xlane.f32.xlu0 %v1307_v26  ;;  %v4523_v24 = vpop.f32.mrb[30].mxu0  ;;  %v1355_v13 = vadd.f32 %v1339_v15, %v1338_v40 }
 0x61b   :  { %v4525_v41 = vpop.f32.mrb[31].mxu0  ;;  %v1340_v58 = vmul.f32 %v4523_v24, %v4523_v24 }
 0x61c   :  { %v1310_v62 = vadd.f32 %v4525_v41, %v4523_v24  ;;  %v1341_v56 = vmul.f32 %v4525_v41, %v4525_v41 }
 0x61e   :  { %1356 = vadd.xlane.f32.xlu0 %v1355_v13  ;;  %1311 = vadd.xlane.f32.xlu1 %v1310_v62  ;;  %v4533_v17 = vpop.f32.mrb[32].mxu0  ;;  %v1358_v42 = vadd.f32 %v1341_v56, %v1340_v58 }
 0x61f   :  { %v4535_v51 = vpop.f32.mrb[33].mxu0  ;;  %v1342_v48 = vmul.f32 %v4533_v17, %v4533_v17 }
 0x620   :  { %v1313_v61 = vadd.f32 %v4535_v51, %v4533_v17  ;;  %v1343_v34 = vmul.f32 %v4535_v51, %v4535_v51 }
 0x622   :  { %1359 = vadd.xlane.f32.xlu1 %v1358_v42  ;;  %1314 = vadd.xlane.f32.xlu0 %v1313_v61  ;;  %v4543_v36 = vpop.f32.mrb[34].mxu0  ;;  %v1361_v19 = vadd.f32 %v1343_v34, %v1342_v48 }
 0x623   :  { %v4545_v37 = vpop.f32.mrb[35].mxu0  ;;  %v1344_v25 = vmul.f32 %v4543_v36, %v4543_v36 }
 0x624   :  { %v1316_v11 = vadd.f32 %v4545_v37, %v4543_v36  ;;  %v1345_v40 = vmul.f32 %v4545_v37, %v4545_v37 }
 0x626   :  { %1362 = vadd.xlane.f32.xlu0 %v1361_v19  ;;  %1317 = vadd.xlane.f32.xlu1 %v1316_v11  ;;  %v4553_v26 = vpop.f32.mrb[36].mxu0  ;;  %v1364_v15 = vadd.f32 %v1345_v40, %v1344_v25 }
 0x627   :  { %v4555_v13 = vpop.f32.mrb[37].mxu0  ;;  %v1346_v58 = vmul.f32 %v4553_v26, %v4553_v26 }
 0x628   :  { %v1319_v62 = vadd.f32 %v4555_v13, %v4553_v26  ;;  %v1347_v56 = vmul.f32 %v4555_v13, %v4555_v13 }
 0x62a   :  { %1365 = vadd.xlane.f32.xlu1 %v1364_v15  ;;  %1320 = vadd.xlane.f32.xlu0 %v1319_v62  ;;  %v4563_v42 = vpop.f32.mrb[38].mxu0  ;;  %v1367_v48 = vadd.f32 %v1347_v56, %v1346_v58  ;;  %v1604_v56 = vmul.f32 %v4416_v29, %v4416_v29 }
 0x62b   :  { %v4565_v61 = vpop.f32.mrb[39].mxu0  ;;  %v1348_v34 = vmul.f32 %v4563_v42, %v4563_v42 }
 0x62c   :  { %v1322_v19 = vadd.f32 %v4565_v61, %v4563_v42  ;;  %v1349_v25 = vmul.f32 %v4565_v61, %v4565_v61 }
 0x62e   :  { %1368 = vadd.xlane.f32.xlu0 %v1367_v48  ;;  %1323 = vadd.xlane.f32.xlu1 %v1322_v19  ;;  %v4573_v11 = vpop.f32.mrb[40].mxu0  ;;  %v1370_v40 = vadd.f32 %v1349_v25, %v1348_v34  ;;  %v1626_v19 = vadd.f32 %v1605_v52, %v1604_v56  ;;  %v1606_v25 = vmul.f32 %v4430_v35, %v4430_v35  ;;  %v1874_v52 = vld [vmem:[%s5810_s2 + $0x58] sm:$0xff]  ;;  %v1562_v56 = vpop.xlane.xlu1 %1561 }
 0x62f   :  { %v4575_v15 = vpop.f32.mrb[41].mxu0  ;;  %v1350_v58 = vmul.f32 %v4573_v11, %v4573_v11 }
 0x630   :  { %v1325_v62 = vadd.f32 %v4575_v15, %v4573_v11  ;;  %v1351_v48 = vmul.f32 %v4575_v15, %v4575_v15  ;;  %v1629_v46 = vadd.f32 %v1607_v50, %v1606_v25  ;;  %v1878_v50 = vld [vmem:[%s5810_s2 + $0x78] sm:$0xff] }
 0x632   :  { %1371 = vadd.xlane.f32.xlu1 %v1370_v40  ;;  %1326 = vadd.xlane.f32.xlu0 %v1325_v62  ;;  %v1373_v34 = vadd.f32 %v1351_v48, %v1350_v58  ;;  %v1873_v40 = vld [vmem:[%s5810_s2 + $0x50] sm:$0xff]  ;;  %v1872_v58 = vld [vmem:[%s5810_s2 + $0x48] sm:$0xff]  ;;  %v1565_v48 = vpop.xlane.xlu0 %1564 }
 0x633   :  { %v1877_v62 = vld [vmem:[%s5810_s2 + $0x70] sm:$0xff]  ;;  %v1585_v39 = vmul.f32 0.00390625, %v1565_v48 }
 0x636   :  { %1627 = vadd.xlane.f32.xlu1 %v1626_v19  ;;  %1374 = vadd.xlane.f32.xlu0 %v1373_v34  ;;  %v1610_v34 = vpop.xlane.xlu1 %1609  ;;  %v1613_v19 = vpop.xlane.xlu0 %1612 }
 0x637   :  { %v1632_v5 = vmul.f32 0.00390625, %v1610_v34  ;;  %v1633_v53 = vmul.f32 0.00390625, %v1613_v19 }
 0x63a   :  { %1630 = vadd.xlane.f32.xlu0 %v1629_v46  ;;  %v1876_v46 = vld [vmem:[%s5810_s2 + $0x68] sm:$0xff]  ;;  %v1568_v25 = vpop.xlane.xlu1 %1567 }
 0x63b   :  { %v4615_v49 = vmul.f32 0.00390625, %v1568_v25 }
 0x63d   :  { %v1642_v48 = vmul.f32 %v4615_v49, %v4615_v49 }
 0x647   :  { %1881 = vperm.xlu1 %3673, %v1871_v45   ;;  %v1875_v45 = vld [vmem:[%s5810_s2 + $0x60] sm:$0xff] }
 0x64b   :  { %1891 = vperm.xlu1 %3673, %v1873_v40   ;;  %v1571_v40 = vpop.xlane.xlu0 %1570 }
 0x64f   :  { %1896 = vperm.xlu1 %3673, %v1874_v52   ;;  %v1616_v52 = vpop.xlane.xlu1 %1615 }
 0x650   :  { %1886 = vperm.xlu0 %3672, %v1872_v58   ;;  %v1619_v58 = vpop.xlane.xlu0 %1618  ;;  %v1634_v22 = vmul.f32 0.00390625, %v1616_v52 }
 0x651   :  { %v1635_v38 = vmul.f32 0.00390625, %v1619_v58 }
 0x653   :  { %1906 = vperm.xlu1 %3673, %v1876_v46   ;;  %v1584_v46 = vmul.f32 0.00390625, %v1562_v56 }
 0x654   :  { %1901 = vperm.xlu0 %3672, %v1875_v45   ;;  %v1574_v45 = vpop.xlane.xlu1 %1573  ;;  %v1577_v30 = vpop.xlane.xlu0 %1576 }
 0x655   :  { %v1640_v54 = vmul.f32 %v1584_v46, %v1584_v46  ;;  %v4619_v16 = vmul.f32 0.00390625, %v1574_v45  ;;  %v4621_v56 = vmul.f32 0.00390625, %v1577_v30 }
 0x657   :  { %1916 = vperm.xlu1 %3673, %v1878_v50   ;;  %v1648_v14 = vsub.f32 %v1632_v5, %v1640_v54  ;;  %v1641_v50 = vmul.f32 %v1585_v39, %v1585_v39  ;;  %v1645_v58 = vmul.f32 %v4621_v56, %v4621_v56 }
 0x658   :  { %1911 = vperm.xlu0 %3672, %v1877_v62   ;;  %v4617_v62 = vmul.f32 0.00390625, %v1571_v40  ;;  %v1622_v18 = vpop.xlane.xlu1 %1621  ;;  %v1625_v21 = vpop.xlane.xlu0 %1624  ;;  %v1650_v40 = vsub.f32 %v1634_v22, %v1642_v48 }
 0x659   :  { %v1649_v57 = vsub.f32 %v1633_v53, %v1641_v50  ;;  %v1656_v34 = vmax.f32 %v1648_v14, 0.0  ;;  %v1636_v19 = vmul.f32 0.00390625, %v1622_v18  ;;  %v1637_v5 = vmul.f32 0.00390625, %v1625_v21 }
 0x65a   :  { %v1643_v54 = vmul.f32 %v4617_v62, %v4617_v62  ;;  %v1644_v53 = vmul.f32 %v4619_v16, %v4619_v16  ;;  %v1658_v31 = vmax.f32 %v1650_v40, 0.0 }
 0x65b   :  { %v1657_v25 = vmax.f32 %v1649_v57, 0.0  ;;  %v1680_v30 = vadd.f32 1e-05, %v1656_v34  ;;  %v1653_v14 = vsub.f32 %v1637_v5, %v1645_v58  ;;  %v1558_v34 = vld [vmem:[%s5816_s8] ss:$8 sm:$0x3]  ;;  %v1664_v5 = vsub.f32 %v4350_v6, %v1584_v46 }
 0x65c   :  { %v1651_v52 = vsub.f32 %v1635_v38, %v1643_v54  ;;  %v1652_v45 = vsub.f32 %v1636_v19, %v1644_v53  ;;  %v1682_v21 = vadd.f32 1e-05, %v1658_v31  ;;  %v1665_v19 = vsub.f32 %v4353_v10, %v1584_v46  ;;  %v1580_v6 = vpop.xlane.xlu1 %1579 }
 0x65d   :  { %v1681_v50 = vadd.f32 1e-05, %v1657_v25  ;;  %3694 = vrsqrt.f32 %v1680_v30  ;;  %v1661_v27 = vmax.f32 %v1653_v14, 0.0  ;;  %v1666_v31 = vsub.f32 %v4362_v32, %v1585_v39 }
 0x65e   :  { %v1659_v8 = vmax.f32 %v1651_v52, 0.0  ;;  %v1660_v18 = vmax.f32 %v1652_v45, 0.0  ;;  %v1667_v53 = vsub.f32 %v4365_v9, %v1585_v39  ;;  %v3487_v52 = vld [vmem:[%s5816_s8 + $0x1] ss:$8 sm:$0x3]  ;;  %v1668_v32 = vsub.f32 %v4368_v23, %v4615_v49 }
 0x65f   :  { %3696 = vrsqrt.f32 %v1681_v50  ;;  %v1685_v48 = vadd.f32 1e-05, %v1661_v27  ;;  %v4641_v27 = vrot.slane %v1558_v34, %v4066_v12  ;;  %v4651_v14 = vrot.slane %v3487_v52, %v4066_v12 }
 0x660   :  { %v1683_v57 = vadd.f32 1e-05, %v1659_v8  ;;  %v1684_v22 = vadd.f32 1e-05, %v1660_v18  ;;  %3698 = vrsqrt.f32 %v1682_v21  ;;  %v4638_v8 = vrot.slane %v1558_v34, %v4073_v20 }
 0x661   :  { %5935 = vst [vmem:[#allocation41_spill] sm:$0xff] %v4651_v14  ;;  %v4654_v50 = vrot.slane %v3487_v52, %v4073_v20  ;;  %v1669_v18 = vsub.f32 %v4371_v33, %v4615_v49  ;;  %v1670_v21 = vsub.f32 %v4386_v3, %v4617_v62  ;;  %v1671_v23 = vsub.f32 %v4389_v59, %v4617_v62  ;;  %v1583_v33 = vpop.xlane.xlu0 %1582 }
 0x662   :  { %3700 = vrsqrt.f32 %v1683_v57  ;;  %5934 = vst [vmem:[#allocation40_spill] sm:$0xff] %v4638_v8  ;;  %v4668_v34 = vmul.f32 0.00390625, %v1580_v6  ;;  %v1675_v49 = vsub.f32 %v4413_v1, %v4621_v56 }
 0x663   :  { %3702 = vrsqrt.f32 %v1684_v22  ;;  %5936 = vst [vmem:[#allocation42_spill] sm:$0xff] %v4654_v50 }
 0x664   :  { %3704 = vrsqrt.f32 %v1685_v48  ;;  %v1672_v48 = vsub.f32 %v4392_v63, %v4619_v16  ;;  %v4690_v6 = vmul.f32 %v4668_v34, %v4668_v34 }
 0x667   :  { %v3695_v38 = vpop.eup %3694 }
 0x668   :  { %v1697_v25 = vmul.f32 %v3695_v38, %v1665_v19  ;;  %v1696_v40 = vmul.f32 %v3695_v38, %v1664_v5  ;;  %v1673_v38 = vsub.f32 %v4395_v55, %v4619_v16  ;;  %v1674_v5 = vsub.f32 %v4410_v2, %v4621_v56 }
 0x669   :  { %v3697_v54 = vpop.eup %3696 }
 0x66a   :  { %v1698_v10 = vmul.f32 %v3697_v54, %v1666_v31  ;;  %v3699_v58 = vpop.eup %3698  ;;  %v1699_v30 = vmul.f32 %v3697_v54, %v1667_v53  ;;  %v1724_v45 = vmul.f32 %v4638_v8, %v1697_v25  ;;  %v1723_v9 = vmul.f32 %v4641_v27, %v1696_v40 }
 0x66b   :  { %v1700_v19 = vmul.f32 %v3699_v58, %v1668_v32  ;;  %v1701_v54 = vmul.f32 %v3699_v58, %v1669_v18  ;;  %v4681_v53 = vmul.f32 0.00390625, %v1583_v33 }
 0x66c   :  { %v3701_v46 = vpop.eup %3700  ;;  %v1725_v22 = vmul.f32 %v4641_v27, %v1698_v10  ;;  %v1726_v3 = vmul.f32 %v4638_v8, %v1699_v30  ;;  %v1751_v63 = vadd.f32 %v4654_v50, %v1724_v45  ;;  %v1750_v55 = vadd.f32 %v4651_v14, %v1723_v9 }
 0x66d   :  { %v3703_v39 = vpop.eup %3702  ;;  %v1702_v59 = vmul.f32 %v3701_v46, %v1670_v21  ;;  %v1703_v62 = vmul.f32 %v3701_v46, %v1671_v23  ;;  %v1727_v10 = vmul.f32 %v4641_v27, %v1700_v19  ;;  %v1728_v58 = vmul.f32 %v4638_v8, %v1701_v54 }
 0x66e   :  { %v3705_v57 = vpop.eup %3704  ;;  %v1704_v25 = vmul.f32 %v3703_v39, %v1672_v48  ;;  %v1705_v31 = vmul.f32 %v3703_v39, %v1673_v38  ;;  %v1752_v52 = vadd.f32 %v4651_v14, %v1725_v22  ;;  %v1753_v56 = vadd.f32 %v4654_v50, %v1726_v3 }
 0x66f   :  { %v1707_v16 = vmul.f32 %v3705_v57, %v1675_v49  ;;  %v1706_v2 = vmul.f32 %v3705_v57, %v1674_v5  ;;  %v1729_v30 = vmul.f32 %v4641_v27, %v1702_v59  ;;  %v1767_v46 = vmul.f32 0.01, %v1751_v63 }
 0x670   :  { %v1730_v32 = vmul.f32 %v4638_v8, %v1703_v62  ;;  %v1731_v45 = vmul.f32 %v4641_v27, %v1704_v25  ;;  %v1766_v9 = vmul.f32 0.01, %v1750_v55  ;;  %v1732_v18 = vmul.f32 %v4638_v8, %v1705_v31 }
 0x671   :  { %v1734_v21 = vmul.f32 %v4638_v8, %v1707_v16  ;;  %v1768_v48 = vmul.f32 0.01, %v1752_v52  ;;  %v1733_v38 = vmul.f32 %v4641_v27, %v1706_v2  ;;  %v1769_v19 = vmul.f32 0.01, %v1753_v56 }
 0x672   :  { %v1755_v54 = vadd.f32 %v4654_v50, %v1728_v58  ;;  %v1754_v49 = vadd.f32 %v4651_v14, %v1727_v10  ;;  %v4707_v33 = vmul.f32 %v4681_v53, %v4681_v53  ;;  %v4709_v3 = vmax.f32 %v1751_v63, %v1767_v46 }
 0x673   :  { %v1757_v59 = vadd.f32 %v4654_v50, %v1730_v32  ;;  %v1756_v62 = vadd.f32 %v4651_v14, %v1729_v30  ;;  %v4713_v31 = vmax.f32 %v1750_v55, %v1766_v9  ;;  %v1759_v16 = vadd.f32 %v4654_v50, %v1732_v18 }
 0x674   :  { %5937 = vst [vmem:[#allocation43_spill] sm:$0xff] %v4709_v3  ;;  %v1761_v2 = vadd.f32 %v4654_v50, %v1734_v21  ;;  %v1758_v10 = vadd.f32 %v4651_v14, %v1731_v45  ;;  %v4722_v46 = vmax.f32 %v1752_v52, %v1768_v48  ;;  %v4724_v32 = vmax.f32 %v1753_v56, %v1769_v19 }
 0x675   :  { %5938 = vst [vmem:[#allocation44_spill] sm:$0xff] %v4713_v31  ;;  %v1771_v30 = vmul.f32 0.01, %v1755_v54  ;;  %v1770_v57 = vmul.f32 0.01, %v1754_v49  ;;  %v1760_v55 = vadd.f32 %v4651_v14, %v1733_v38  ;;  %v4729_v18 = vmul.f32 %v4709_v3, %v4102_v43 }
 0x676   :  { %5939 = vst [vmem:[#allocation45_spill] sm:$0xff] %v4722_v46  ;;  %5940 = vst [vmem:[#allocation46_spill] sm:$0xff] %v4724_v32  ;;  %v1773_v45 = vmul.f32 0.01, %v1757_v59  ;;  %v1772_v21 = vmul.f32 0.01, %v1756_v62 }
 0x677   :  { %v1775_v52 = vmul.f32 0.01, %v1759_v16  ;;  %v1777_v56 = vmul.f32 0.01, %v1761_v2  ;;  %v1774_v48 = vmul.f32 0.01, %v1758_v10  ;;  %v4743_v40 = vmax.f32 %v1755_v54, %v1771_v30 }
 0x678   :  { %v4745_v3 = vmax.f32 %v1754_v49, %v1770_v57 }
 0x679   :  { %5941 = vst [vmem:[#allocation47_spill] sm:$0xff] %v4743_v40  ;;  %v4757_v54 = vmax.f32 %v1761_v2, %v1777_v56  ;;  %v4759_v57 = vmax.f32 %v1758_v10, %v1774_v48 }
 0x67a   :  { %5942 = vst [vmem:[#allocation48_spill] sm:$0xff] %v4745_v3  ;;  %v4776_v2 = vmul.f32 %v4745_v3, %v4102_v43 }
 0x67b   :  { %5946 = vst [vmem:[#allocation52_spill] sm:$0xff] %v4757_v54  ;;  %5947 = vst [vmem:[#allocation53_spill] sm:$0xff] %v4759_v57  ;;  %v4799_v56 = vmul.f32 %v4757_v54, %v4102_v43  ;;  %v4803_v48 = vmul.f32 %v4759_v57, %v4102_v43 }
 0x67d   :  { %5949 = vst [vmem:[#allocation55_spill] sm:$0xff] %v4799_v56  ;;  %5950 = vst [vmem:[#allocation56_spill] sm:$0xff] %v4803_v48 }
 0x6a3   :  { %v1306_v39 = vpop.xlane.xlu1 %1305 }
 0x6a4   :  { %v4700_v22 = vmul.f32 0.00390625, %v1306_v39 }
 0x6a6   :  { %v1384_v58 = vmul.f32 %v4700_v22, %v4700_v22 }
 0x6a7   :  { %v1354_v5 = vpop.xlane.xlu1 %1353  ;;  %v1309_v25 = vpop.xlane.xlu0 %1308 }
 0x6a8   :  { %v1376_v39 = vmul.f32 0.00390625, %v1354_v5  ;;  %v4720_v63 = vmul.f32 0.00390625, %v1309_v25  ;;  %v4733_v5 = vmul.f32 %v4713_v31, %v4102_v43  ;;  %v1776_v31 = vmul.f32 0.01, %v1760_v55 }
 0x6aa   :  { %v1392_v9 = vsub.f32 %v1376_v39, %v1384_v58  ;;  %v1385_v38 = vmul.f32 %v4720_v63, %v4720_v63  ;;  %v4741_v39 = vmul.f32 %v4722_v46, %v4102_v43  ;;  %v4755_v46 = vmax.f32 %v1759_v16, %v1775_v52 }
 0x6ab   :  { %v1312_v23 = vpop.xlane.xlu1 %1311  ;;  %v1357_v1 = vpop.xlane.xlu0 %1356  ;;  %v4772_v16 = vmul.f32 %v4743_v40, %v4102_v43 }
 0x6ac   :  { %v1400_v19 = vmax.f32 %v1392_v9, 0.0  ;;  %v4735_v25 = vmul.f32 0.00390625, %v1312_v23  ;;  %v1377_v58 = vmul.f32 0.00390625, %v1357_v1  ;;  %v4749_v9 = vmax.f32 %v1757_v59, %v1773_v45  ;;  %5945 = vst [vmem:[#allocation51_spill] sm:$0xff] %v4755_v46 }
 0x6ad   :  { %v4751_v23 = vmax.f32 %v1756_v62, %v1772_v21  ;;  %v3485_v59 = vld [vmem:[%s5816_s8 + $0x4] ss:$8 sm:$0x3]  ;;  %v4768_v62 = vmul.f32 %v4724_v32, %v4102_v43 }
 0x6ae   :  { %v1424_v14 = vadd.f32 1e-05, %v1400_v19  ;;  %v1393_v50 = vsub.f32 %v1377_v58, %v1385_v38  ;;  %5943 = vst [vmem:[#allocation49_spill] sm:$0xff] %v4749_v9  ;;  %v1386_v1 = vmul.f32 %v4735_v25, %v4735_v25  ;;  %v4785_v10 = vmul.f32 %v4749_v9, %v4102_v43 }
 0x6af   :  { %5944 = vst [vmem:[#allocation50_spill] sm:$0xff] %v4751_v23  ;;  %v1360_v8 = vpop.xlane.xlu1 %1359  ;;  %v1315_v28 = vpop.xlane.xlu0 %1314  ;;  %v4789_v45 = vmul.f32 %v4751_v23, %v4102_v43  ;;  %v1411_v9 = vsub.f32 %v4515_v0, %v4720_v63 }
 0x6b0   :  { %3706 = vrsqrt.f32 %v1424_v14  ;;  %v1401_v49 = vmax.f32 %v1393_v50, 0.0  ;;  %v1378_v30 = vmul.f32 0.00390625, %v1360_v8  ;;  %v4761_v19 = vmul.f32 0.00390625, %v1315_v28  ;;  %v3486_v50 = vld [vmem:[%s5816_s8 + $0x5] ss:$8 sm:$0x3] }
 0x6b1   :  { %v4778_v14 = vmax.f32 %v1760_v55, %v1776_v31  ;;  %v4795_v55 = vmul.f32 %v4755_v46, %v4102_v43  ;;  %v4814_v46 = vrot.slane %v3486_v50, %v4066_v12 }
 0x6b2   :  { %v1425_v28 = vadd.f32 1e-05, %v1401_v49  ;;  %v1394_v8 = vsub.f32 %v1378_v30, %v1386_v1  ;;  %v1387_v52 = vmul.f32 %v4761_v19, %v4761_v19  ;;  %v4808_v49 = vrot.slane %v3485_v59, %v4066_v12 }
 0x6b3   :  { %5948 = vst [vmem:[#allocation54_spill] sm:$0xff] %v4778_v14  ;;  %v1318_v21 = vpop.xlane.xlu1 %1317  ;;  %v1363_v31 = vpop.xlane.xlu0 %1362  ;;  %v4811_v30 = vrot.slane %v3485_v59, %v4073_v20  ;;  %v4818_v54 = vmul.f32 %v4778_v14, %v4102_v43  ;;  %v1409_v59 = vsub.f32 %v4505_v47, %v4700_v22  ;;  %v1413_v47 = vsub.f32 %v4525_v41, %v4735_v25 }
 0x6b4   :  { %3708 = vrsqrt.f32 %v1425_v28  ;;  %v1402_v38 = vmax.f32 %v1394_v8, 0.0  ;;  %v4805_v58 = vmul.f32 0.00390625, %v1318_v21  ;;  %v1379_v1 = vmul.f32 0.00390625, %v1363_v31 }
 0x6b5   :  { %5951 = vst [vmem:[#allocation57_spill] sm:$0xff] %v4818_v54  ;;  %v4821_v28 = vrot.slane %v3486_v50, %v4073_v20  ;;  %v4824_v8 = vstv %s4747_s21  ;;  %v1408_v21 = vsub.f32 %v4503_v44, %v4700_v22  ;;  %v1410_v31 = vsub.f32 %v4513_v7, %v4720_v63 }
 0x6b6   :  { %v1426_v57 = vadd.f32 1e-05, %v1402_v38  ;;  %v1395_v23 = vsub.f32 %v1379_v1, %v1387_v52  ;;  %5952 = vst [vmem:[#allocation58_spill] sm:$0xff] %v4824_v8  ;;  %v1388_v14 = vmul.f32 %v4805_v58, %v4805_v58  ;;  %v1412_v44 = vsub.f32 %v4523_v24, %v4735_v25 }
 0x6b7   :  { %v1366_v3 = vpop.xlane.xlu1 %1365  ;;  %v1321_v38 = vpop.xlane.xlu0 %1320  ;;  %v5953_v56 = vsub.f32 %v4533_v17, %v4761_v19 }
 0x6b8   :  { %3710 = vrsqrt.f32 %v1426_v57  ;;  %v1403_v52 = vmax.f32 %v1395_v23, 0.0  ;;  %v1380_v50 = vmul.f32 0.00390625, %v1366_v3  ;;  %v4834_v1 = vmul.f32 0.00390625, %v1321_v38 }
 0x6b9   :  { %v1415_v57 = vsub.f32 %v4535_v51, %v4761_v19 }
 0x6ba   :  { %v3707_v22 = vpop.eup %3706  ;;  %v1427_v23 = vadd.f32 1e-05, %v1403_v52  ;;  %v1396_v38 = vsub.f32 %v1380_v50, %v1388_v14  ;;  %v1389_v41 = vmul.f32 %v4834_v1, %v4834_v1 }
 0x6bb   :  { %v1440_v40 = vmul.f32 %v3707_v22, %v1408_v21  ;;  %v1441_v0 = vmul.f32 %v3707_v22, %v1409_v59  ;;  %v1324_v63 = vpop.xlane.xlu1 %1323  ;;  %v1369_v25 = vpop.xlane.xlu0 %1368 }
 0x6bc   :  { %3712 = vrsqrt.f32 %v1427_v23  ;;  %v1404_v7 = vmax.f32 %v1396_v38, 0.0  ;;  %v4852_v32 = vmul.f32 0.00390625, %v1324_v63  ;;  %v1381_v51 = vmul.f32 0.00390625, %v1369_v25 }
 0x6bd   :  { %v1467_v20 = vmul.f32 %v4808_v49, %v1440_v40  ;;  %v1468_v59 = vmul.f32 %v4811_v30, %v1441_v0 }
 0x6be   :  { %v3709_v52 = vpop.eup %3708  ;;  %v1428_v50 = vadd.f32 1e-05, %v1404_v7  ;;  %v1397_v38 = vsub.f32 %v1381_v51, %v1389_v41  ;;  %v1390_v40 = vmul.f32 %v4852_v32, %v4852_v32 }
 0x6bf   :  { %v1442_v63 = vmul.f32 %v3709_v52, %v1410_v31  ;;  %v1443_v25 = vmul.f32 %v3709_v52, %v1411_v9  ;;  %v1372_v14 = vpop.xlane.xlu1 %1371  ;;  %v1327_v24 = vpop.xlane.xlu0 %1326  ;;  %v1495_v21 = vadd.f32 %v4821_v28, %v1468_v59  ;;  %v1494_v31 = vadd.f32 %v4814_v46, %v1467_v20 }
 0x6c0   :  { %3714 = vrsqrt.f32 %v1428_v50  ;;  %v1405_v0 = vmax.f32 %v1397_v38, 0.0  ;;  %v1382_v3 = vmul.f32 0.00390625, %v1372_v14  ;;  %v4867_v7 = vmul.f32 0.00390625, %v1327_v24 }
 0x6c1   :  { %v1469_v22 = vmul.f32 %v4808_v49, %v1442_v63  ;;  %v1470_v12 = vmul.f32 %v4811_v30, %v1443_v25  ;;  %v1511_v23 = vmul.f32 0.01, %v1495_v21  ;;  %v1510_v48 = vmul.f32 0.01, %v1494_v31 }
 0x6c2   :  { %v3711_v9 = vpop.eup %3710  ;;  %v1429_v41 = vadd.f32 1e-05, %v1405_v0  ;;  %v1398_v51 = vsub.f32 %v1382_v3, %v1390_v40  ;;  %v1391_v38 = vmul.f32 %v4867_v7, %v4867_v7 }
 0x6c3   :  { %v1444_v50 = vmul.f32 %v3711_v9, %v1412_v44  ;;  %v1445_v14 = vmul.f32 %v3711_v9, %v1413_v47  ;;  %v1628_v24 = vpop.xlane.xlu1 %1627  ;;  %v1375_v63 = vpop.xlane.xlu0 %1374  ;;  %v1497_v25 = vadd.f32 %v4821_v28, %v1470_v12  ;;  %v1527_v52 = vmax.f32 %v1495_v21, %v1511_v23 }
 0x6c4   :  { %3716 = vrsqrt.f32 %v1429_v41  ;;  %v1406_v20 = vmax.f32 %v1398_v51, 0.0  ;;  %v1638_v43 = vmul.f32 0.00390625, %v1628_v24  ;;  %v1383_v0 = vmul.f32 0.00390625, %v1375_v63 }
 0x6c5   :  { %v1471_v3 = vmul.f32 %v4808_v49, %v1444_v50  ;;  %v1513_v40 = vmul.f32 0.01, %v1497_v25  ;;  %v1496_v54 = vadd.f32 %v4814_v46, %v1469_v22  ;;  %v1800_v63 = vmul.f32 %v4824_v8, %v1527_v52 }
 0x6c6   :  { %v3713_v59 = vpop.eup %3712  ;;  %v1430_v44 = vadd.f32 1e-05, %v1406_v20  ;;  %v1654_v47 = vsub.f32 %v1638_v43, %v4690_v6  ;;  %v1399_v9 = vsub.f32 %v1383_v0, %v1391_v38 }
 0x6c7   :  { %v1446_v12 = vmul.f32 %v3713_v59, %v5953_v56  ;;  %v1447_v41 = vmul.f32 %v3713_v59, %v1415_v57  ;;  %v1631_v51 = vpop.xlane.xlu0 %1630  ;;  %v1529_v24 = vmax.f32 %v1497_v25, %v1513_v40  ;;  %v1832_v43 = vadd.f32 %v4729_v18, %v1800_v63 }
 0x6c8   :  { %3718 = vrsqrt.f32 %v1430_v44  ;;  %v1662_v50 = vmax.f32 %v1654_v47, 0.0  ;;  %v1407_v21 = vmax.f32 %v1399_v9, 0.0  ;;  %v1639_v23 = vmul.f32 0.00390625, %v1631_v51 }
 0x6c9   :  { %v1473_v22 = vmul.f32 %v4808_v49, %v1446_v12  ;;  %v1802_v20 = vmul.f32 %v4824_v8, %v1529_v24  ;;  %v1512_v6 = vmul.f32 0.01, %v1496_v54  ;;  %v1526_v56 = vmax.f32 %v1494_v31, %v1510_v48  ;;  %v5956_v48 = vld [vmem:[#allocation24_spill] sm:$0xff] }
 0x6ca   :  { %v3715_v38 = vpop.eup %3714  ;;  %v1686_v0 = vadd.f32 1e-05, %v1662_v50  ;;  %v1431_v17 = vadd.f32 1e-05, %v1407_v21  ;;  %v1655_v19 = vsub.f32 %v1639_v23, %v4707_v33  ;;  %v5954_v57 = vsub.f32 %v4543_v36, %v4805_v58  ;;  %v5959_v23 = vld [vmem:[#allocation25_spill] sm:$0xff] }
 0x6cb   :  { %v5955_v59 = vsub.f32 %v4545_v37, %v4805_v58  ;;  %v1834_v40 = vadd.f32 %v4768_v62, %v1802_v20  ;;  %v1848_v44 = vadd.f32 %v1832_v43, %v4139_v60  ;;  %v1528_v47 = vmax.f32 %v1496_v54, %v1512_v6 }
 0x6cc   :  { %v1448_v52 = vmul.f32 %v3715_v38, %v5954_v57  ;;  %3720 = vrsqrt.f32 %v1686_v0  ;;  %v1663_v18 = vmax.f32 %v1655_v19, 0.0  ;;  %v1799_v9 = vmul.f32 %v4824_v8, %v1526_v56 }
 0x6cd   :  { %v1449_v25 = vmul.f32 %v3715_v38, %v5955_v59  ;;  %3722 = vrsqrt.f32 %v1431_v17  ;;  %v1850_v31 = vadd.f32 %v1834_v40, %v5956_v48  ;;  %v1472_v36 = vmul.f32 %v4811_v30, %v1445_v14 }
 0x6ce   :  { %v1475_v33 = vmul.f32 %v4808_v49, %v1448_v52  ;;  %v3717_v12 = vpop.eup %3716  ;;  %v1687_v51 = vadd.f32 1e-05, %v1663_v18  ;;  %v1801_v37 = vmul.f32 %v4824_v8, %v1528_v47  ;;  %v1831_v62 = vadd.f32 %v4733_v5, %v1799_v9 }
 0x6cf   :  { %v1474_v60 = vmul.f32 %v4811_v30, %v1447_v41  ;;  %v5957_v54 = vsub.f32 %v4553_v26, %v4834_v1  ;;  %v5958_v24 = vsub.f32 %v4555_v13, %v4834_v1  ;;  %v3591_v50 = vpack.c.bf16 %v1850_v31, %v1848_v44  ;;  %v5960_v1 = vld [vmem:[#allocation26_spill] sm:$0xff] }
 0x6d0   :  { %v1499_v21 = vadd.f32 %v4821_v28, %v1472_v36  ;;  %3724 = vrsqrt.f32 %v1687_v51  ;;  %v1833_v14 = vadd.f32 %v4741_v39, %v1801_v37  ;;  %v1847_v20 = vadd.f32 %v1831_v62, %v5959_v23 }
 0x6d1   :  { %v1450_v58 = vmul.f32 %v3717_v12, %v5957_v54  ;;  %v1451_v63 = vmul.f32 %v3717_v12, %v5958_v24  ;;  %v1501_v5 = vadd.f32 %v4821_v28, %v1474_v60  ;;  %3592 = vmatprep.subr.bf16.mxu1 %v3591_v50  ;;  %v1498_v26 = vadd.f32 %v4814_v46, %v1471_v3 }
 0x6d2   :  { %v1515_v43 = vmul.f32 0.01, %v1499_v21  ;;  %v1500_v6 = vadd.f32 %v4814_v46, %v1473_v22  ;;  %v3719_v13 = vpop.eup %3718  ;;  %v1849_v38 = vadd.f32 %v1833_v14, %v5960_v1  ;;  %v1476_v17 = vmul.f32 %v4811_v30, %v1449_v25 }
 0x6d3   :  { %v1477_v41 = vmul.f32 %v4808_v49, %v1450_v58  ;;  %v1517_v0 = vmul.f32 0.01, %v1501_v5  ;;  %v1478_v39 = vmul.f32 %v4811_v30, %v1451_v63  ;;  %v5961_v19 = vsub.f32 %v4563_v42, %v4852_v32 }
 0x6d4   :  { %v5962_v57 = vsub.f32 %v4565_v61, %v4852_v32  ;;  %v1531_v59 = vmax.f32 %v1499_v21, %v1515_v43  ;;  %v1514_v3 = vmul.f32 0.01, %v1498_v26  ;;  %v3593_v40 = vpack.c.bf16 %v1849_v38, %v1847_v20  ;;  %v5972_v38 = vld [vmem:[#allocation28_spill] sm:$0xff] }
 0x6d5   :  { %v1452_v56 = vmul.f32 %v3719_v13, %v5961_v19  ;;  %v1533_v22 = vmax.f32 %v1501_v5, %v1517_v0  ;;  %v1516_v44 = vmul.f32 0.01, %v1500_v6  ;;  %v1503_v18 = vadd.f32 %v4821_v28, %v1476_v17 }
 0x6d6   :  { %v1453_v52 = vmul.f32 %v3719_v13, %v5962_v57  ;;  %v1804_v25 = vmul.f32 %v4824_v8, %v1531_v59  ;;  %v1530_v9 = vmax.f32 %v1498_v26, %v1514_v3  ;;  %v1505_v48 = vadd.f32 %v4821_v28, %v1478_v39  ;;  %v3721_v42 = vpop.eup %3720  ;;  %3594 = vmatpush1.bf16.msra.mxu1 %v3593_v40  ;;  %v5973_v39 = vld [vmem:[#allocation30_spill] sm:$0xff] }
 0x6d7   :  { %v1479_v47 = vmul.f32 %v4808_v49, %v1452_v56  ;;  %v1806_v31 = vmul.f32 %v4824_v8, %v1533_v22  ;;  %v1532_v61 = vmax.f32 %v1500_v6, %v1516_v44  ;;  %v1519_v32 = vmul.f32 0.01, %v1503_v18  ;;  %v3723_v12 = vpop.eup %3722  ;;  %v5970_v6 = vld [vmem:[#allocation39_spill] sm:$0xff] }
 0x6d8   :  { %v1502_v36 = vadd.f32 %v4814_v46, %v1475_v33  ;;  %v5963_v51 = vsub.f32 %v4416_v29, %v4668_v34  ;;  %v5964_v62 = vsub.f32 %v4419_v4, %v4668_v34  ;;  %v1836_v54 = vadd.f32 %v4772_v16, %v1804_v25  ;;  %v5967_v4 = vld [vmem:[#allocation27_spill] sm:$0xff] }
 0x6d9   :  { %v1803_v58 = vmul.f32 %v4824_v8, %v1530_v9  ;;  %v5965_v24 = vsub.f32 %v4573_v11, %v4867_v7  ;;  %v5966_v33 = vsub.f32 %v4575_v15, %v4867_v7  ;;  %v1838_v21 = vadd.f32 %v4785_v10, %v1806_v31  ;;  %v5968_v11 = vld [vmem:[#allocation29_spill] sm:$0xff]  ;;  %v5974_v44 = vld [vmem:[#allocation55_spill] sm:$0xff] }
 0x6da   :  { %v1708_v37 = vmul.f32 %v3721_v42, %v5963_v51  ;;  %v1709_v60 = vmul.f32 %v3721_v42, %v5964_v62  ;;  %v1805_v29 = vmul.f32 %v4824_v8, %v1532_v61  ;;  %v1852_v34 = vadd.f32 %v1836_v54, %v5967_v4  ;;  %v3725_v20 = vpop.eup %3724  ;;  %v5978_v51 = vld [vmem:[#allocation42_spill] sm:$0xff] }
 0x6db   :  { %v1454_v63 = vmul.f32 %v3723_v12, %v5965_v24  ;;  %v1455_v50 = vmul.f32 %v3723_v12, %v5966_v33  ;;  %v1835_v16 = vadd.f32 %v4776_v2, %v1803_v58  ;;  %v1521_v23 = vmul.f32 0.01, %v1505_v48  ;;  %v5979_v24 = vld [vmem:[#allocation56_spill] sm:$0xff] }
 0x6dc   :  { %v1735_v14 = vmul.f32 %v4641_v27, %v1708_v37  ;;  %v1854_v43 = vadd.f32 %v1838_v21, %v5968_v11  ;;  %v1837_v26 = vadd.f32 %v4789_v45, %v1805_v29  ;;  %v1535_v15 = vmax.f32 %v1503_v18, %v1519_v32  ;;  %v5977_v32 = vld [vmem:[#allocation33_spill] sm:$0xff] }
 0x6dd   :  { %v1481_v5 = vmul.f32 %v4808_v49, %v1454_v63  ;;  %v5969_v10 = vsub.f32 %v4430_v35, %v4681_v53  ;;  %v5971_v13 = vsub.f32 %v5970_v6, %v4681_v53  ;;  %v1851_v0 = vadd.f32 %v1835_v16, %v5972_v38 }
 0x6de   :  { %v1537_v2 = vmax.f32 %v1505_v48, %v1521_v23  ;;  %v3595_v17 = vpack.c.bf16 %v1854_v43, %v1852_v34  ;;  %v1853_v19 = vadd.f32 %v1837_v26, %v5973_v39  ;;  %v1808_v49 = vmul.f32 %v4824_v8, %v1535_v15  ;;  %v5983_v43 = vld [vmem:[#allocation34_spill] sm:$0xff] }
 0x6df   :  { %v1710_v7 = vmul.f32 %v3725_v20, %v5969_v10  ;;  %v1711_v1 = vmul.f32 %v3725_v20, %v5971_v13  ;;  %v1504_v56 = vadd.f32 %v4814_v46, %v1477_v41  ;;  %v1518_v35 = vmul.f32 0.01, %v1502_v36  ;;  %v5975_v41 = vld [vmem:[#allocation40_spill] sm:$0xff]  ;;  %v5986_v13 = vld [vmem:[#allocation41_spill] sm:$0xff] }
 0x6e0   :  { %v1810_v57 = vmul.f32 %v4824_v8, %v1537_v2  ;;  %v1480_v59 = vmul.f32 %v4811_v30, %v1453_v52  ;;  %3596 = vmatprep.subr.bf16.mxu1 %v3595_v17  ;;  %v3597_v53 = vpack.c.bf16 %v1853_v19, %v1851_v0  ;;  %v1840_v3 = vadd.f32 %v4795_v55, %v1808_v49  ;;  %v5982_v20 = vld [vmem:[#allocation32_spill] sm:$0xff] }
 0x6e1   :  { %v1737_v45 = vmul.f32 %v4641_v27, %v1710_v7  ;;  %v1520_v40 = vmul.f32 0.01, %v1504_v56  ;;  %v1482_v22 = vmul.f32 %v4811_v30, %v1455_v50  ;;  %v1534_v25 = vmax.f32 %v1502_v36, %v1518_v35  ;;  %v5976_v27 = vld [vmem:[#allocation31_spill] sm:$0xff]  ;;  %v5980_v50 = vld [vmem:[#allocation57_spill] sm:$0xff] }
 0x6e2   :  { %v1842_v18 = vadd.f32 %v5974_v44, %v1810_v57  ;;  %v1507_v9 = vadd.f32 %v4821_v28, %v1480_v59  ;;  %v1736_v48 = vmul.f32 %v5975_v41, %v1709_v60  ;;  %3598 = vmatpush1.bf16.msra.mxu1 %v3597_v53  ;;  %v1856_v42 = vadd.f32 %v1840_v3, %v5976_v27  ;;  %v5985_v7 = vld [vmem:[#allocation23_spill] sm:$0xff]  ;;  %v5992_v27 = vld [vmem:[#allocation38_spill] sm:$0xff] }
 0x6e3   :  { %v1536_v31 = vmax.f32 %v1504_v56, %v1520_v40  ;;  %v1509_v52 = vadd.f32 %v4821_v28, %v1482_v22  ;;  %v1738_v61 = vmul.f32 %v5975_v41, %v1711_v1  ;;  %v1807_v12 = vmul.f32 %v4824_v8, %v1534_v25  ;;  %v5991_v41 = vld [vmem:[#allocation36_spill] sm:$0xff] }
 0x6e4   :  { %v1858_v55 = vadd.f32 %v1842_v18, %v5977_v32  ;;  %v1523_v30 = vmul.f32 0.01, %v1507_v9  ;;  %v1763_v37 = vadd.f32 %v5978_v51, %v1736_v48  ;;  %v1506_v54 = vadd.f32 %v4814_v46, %v1479_v47  ;;  %v1864_v32 = vld [vmem:[%s5812_s4 + $0x8] sm:$0xff] }
 0x6e5   :  { %v1809_v36 = vmul.f32 %v4824_v8, %v1536_v31  ;;  %v1525_v62 = vmul.f32 0.01, %v1509_v52  ;;  %v1765_v60 = vadd.f32 %v5978_v51, %v1738_v61  ;;  %v1839_v63 = vadd.f32 %v5979_v24, %v1807_v12  ;;  %v1866_v12 = vld [vmem:[%s5812_s4 + $0x18] sm:$0xff]  ;;  %v1868_v51 = vld [vmem:[%s5812_s4 + $0x28] sm:$0xff] }
 0x6e6   :  { %v3599_v58 = vpack.c.bf16 %v1858_v55, %v1856_v42  ;;  %v1539_v28 = vmax.f32 %v1507_v9, %v1523_v30  ;;  %v1779_v33 = vmul.f32 0.01, %v1763_v37  ;;  %v1508_v34 = vadd.f32 %v4814_v46, %v1481_v5  ;;  %v1865_v55 = vld [vmem:[%s5812_s4 + $0x10] sm:$0xff]  ;;  %v1867_v30 = vld [vmem:[%s5812_s4 + $0x20] sm:$0xff] }
 0x6e7   :  { %v1841_v21 = vadd.f32 %v5980_v50, %v1809_v36  ;;  %v1541_v29 = vmax.f32 %v1509_v52, %v1525_v62  ;;  %v1781_v4 = vmul.f32 0.01, %v1765_v60  ;;  %v1522_v23 = vmul.f32 0.01, %v1506_v54  ;;  %v1863_v52 = vld [vmem:[%s5812_s4] sm:$0xff]  ;;  %v1870_v36 = vld [vmem:[%s5812_s4 + $0x38] sm:$0xff]  ;;  %v1882_v62 = vpop.permute.xlu1 %1881 }
 0x6e8   :  { %3600 = vmatprep.subr.bf16.mxu1 %v3599_v58  ;;  %v4985_v16 = vmax.f32 %v1763_v37, %v1779_v33  ;;  %v1855_v11 = vadd.f32 %v1839_v63, %v5982_v20  ;;  %v1524_v15 = vmul.f32 0.01, %v1508_v34  ;;  %v1812_v10 = vmul.f32 %v4824_v8, %v1539_v28  ;;  %v1869_v37 = vld [vmem:[%s5812_s4 + $0x30] sm:$0xff]  ;;  %v1887_v63 = vpop.permute.xlu0 %1886 }
 0x6e9   :  { %v1857_v26 = vadd.f32 %v1841_v21, %v5983_v43  ;;  %v4989_v47 = vmax.f32 %v1765_v60, %v1781_v4  ;;  %v1762_v1 = vadd.f32 %v5986_v13, %v1735_v14  ;;  %v1764_v46 = vadd.f32 %v5986_v13, %v1737_v45  ;;  %v5989_v14 = vld [vmem:[#allocation35_spill] sm:$0xff]  ;;  %v5990_v45 = vld [vmem:[#allocation37_spill] sm:$0xff] }
 0x6ea   :  { %5981 = vst [vmem:[#allocation24_spill] sm:$0xff] %v4985_v16  ;;  %v1828_v6 = vmul.f32 %v4985_v16, %v5985_v7  ;;  %v1814_v38 = vmul.f32 %v4824_v8, %v1541_v29  ;;  %v1538_v2 = vmax.f32 %v1506_v54, %v1522_v23  ;;  %v1540_v39 = vmax.f32 %v1508_v34, %v1524_v15 }
 0x6eb   :  { %5984 = vst [vmem:[#allocation25_spill] sm:$0xff] %v4989_v47  ;;  %v3601_v5 = vpack.c.bf16 %v1857_v26, %v1855_v11  ;;  %v1830_v0 = vmul.f32 %v4989_v47, %v5985_v7  ;;  %v1778_v19 = vmul.f32 0.01, %v1762_v1  ;;  %v1780_v49 = vmul.f32 0.01, %v1764_v46  ;;  %v1892_v29 = vpop.permute.xlu1 %1891 }
 0x6ec   :  { %v1844_v17 = vadd.f32 %v1828_v6, %v1812_v10  ;;  %v1811_v3 = vmul.f32 %v4824_v8, %v1538_v2  ;;  %v1813_v40 = vmul.f32 %v4824_v8, %v1540_v39  ;;  %v5993_v61 = vmov 0.0  }
 0x6ed   :  { %3602 = vmatpush1.bf16.msra.mxu1 %v3601_v5  ;;  %v1846_v56 = vadd.f32 %v1830_v0, %v1814_v38  ;;  %v4999_v57 = vmax.f32 %v1762_v1, %v1778_v19  ;;  %v5001_v35 = vmax.f32 %v1764_v46, %v1780_v49 }
 0x6ee   :  { %v1860_v59 = vadd.f32 %v1844_v17, %v5989_v14  ;;  %v1902_v14 = vpop.permute.xlu0 %1901 }
 0x6ef   :  { %5987 = vst [vmem:[#allocation26_spill] sm:$0xff] %v4999_v57  ;;  %5988 = vst [vmem:[#allocation27_spill] sm:$0xff] %v5001_v35  ;;  %v1862_v53 = vadd.f32 %v1846_v56, %v5990_v45  ;;  %v1827_v22 = vmul.f32 %v4999_v57, %v5985_v7  ;;  %v1829_v44 = vmul.f32 %v5001_v35, %v5985_v7  ;;  %v1897_v5 = vpop.permute.xlu1 %1896 }
 0x6f1   :  { %v3603_v18 = vpack.c.bf16 %v1862_v53, %v1860_v59  ;;  %v1843_v25 = vadd.f32 %v1827_v22, %v1811_v3  ;;  %v1845_v9 = vadd.f32 %v1829_v44, %v1813_v40 }
 0x6f3   :  { %3604 = vmatprep.subr.bf16.mxu1 %v3603_v18  ;;  %v1859_v48 = vadd.f32 %v1843_v25, %v5991_v41  ;;  %v1861_v42 = vadd.f32 %v1845_v9, %v5992_v27  ;;  %v1907_v41 = vpop.permute.xlu1 %1906 }
 0x6f5   :  { %v3605_v31 = vpack.c.bf16 %v1861_v42, %v1859_v48 }
 0x6f7   :  { %3606 = vmatpush1.bf16.msra.mxu1 %v3605_v31 }
 0x6fa   :  { %3488 = vmatmul.mubr.msk.f32.vlgmr.msra.gmra.mrb[42].mxu1 %vm283_vm1, %v1863_v52 }
 0x6fb   :  { %2013 = vmatprep.mubr.f32.mxu1 %v5993_v61 }
 0x6fe   :  { %3489 = vmatmul.mubr.msk.f32.gmra.mrb[44].mxu1 %vm283_vm1, %v1864_v32 }
 0x6ff   :  { %2019 = vmatprep.mubr.f32.mxu1 %v5993_v61 }
 0x702   :  { %3490 = vmatmul.mubr.msk.f32.gmra.mrb[46].mxu1 %vm283_vm1, %v1865_v55 }
 0x703   :  { %2025 = vmatprep.mubr.f32.mxu1 %v5993_v61 }
 0x706   :  { %3491 = vmatmul.mubr.msk.f32.gmra.mrb[48].mxu1 %vm283_vm1, %v1866_v12 }
 0x707   :  { %2031 = vmatprep.mubr.f32.mxu1 %v5993_v61 }
 0x70a   :  { %3492 = vmatmul.mubr.msk.f32.gmra.mrb[50].mxu1 %vm283_vm1, %v1867_v30  ;;  %v1912_v30 = vpop.permute.xlu0 %1911 }
 0x70b   :  { %2037 = vmatprep.mubr.f32.mxu1 %v5993_v61 }
 0x70e   :  { %3493 = vmatmul.mubr.msk.f32.gmra.mrb[52].mxu1 %vm283_vm1, %v1868_v51 }
 0x70f   :  { %2043 = vmatprep.mubr.f32.mxu1 %v5993_v61 }
 0x712   :  { %3494 = vmatmul.mubr.msk.f32.gmra.mrb[54].mxu1 %vm283_vm1, %v1869_v37 }
 0x713   :  { %2049 = vmatprep.mubr.f32.mxu1 %v5993_v61 }
 0x716   :  { %3495 = vmatmul.mubr.msk.f32.gmra.mrb[56].mxu1 %vm283_vm1, %v1870_v36 }
 0x717   :  { %2432 = vmatprep.mubr.f32.mxu1 %v5993_v61 }
 0x7cd   :  { %v2009_v60 = vpop.f32.mrb[42].mxu1 }
 0x7ce   :  { %v2010_v54 = vadd.f32 %v2009_v60, %v1882_v62  ;;  %v2011_v58 = vpop.f32.mrb[43].mxu1 }
 0x7cf   :  { %v2012_v24 = vadd.f32 %v2011_v58, %v1882_v62 }
 0x7d0   :  { %v2056_v33 = vmul.f32 0.01, %v2010_v54 }
 0x7d1   :  { %v2015_v28 = vpop.f32.mrb[44].mxu1  ;;  %v2057_v4 = vmul.f32 0.01, %v2012_v24 }
 0x7d2   :  { %v2016_v50 = vadd.f32 %v2015_v28, %v1887_v63  ;;  %v2017_v21 = vpop.f32.mrb[45].mxu1  ;;  %v2072_v43 = vmax.f32 %v2010_v54, %v2056_v33  ;;  %v1917_v33 = vpop.permute.xlu1 %1916 }
 0x7d3   :  { %v2018_v34 = vadd.f32 %v2017_v21, %v1887_v63  ;;  %v2073_v6 = vmax.f32 %v2012_v24, %v2057_v4 }
 0x7d4   :  { %v2058_v23 = vmul.f32 0.01, %v2016_v50 }
 0x7d5   :  { %v2059_v20 = vmul.f32 0.01, %v2018_v34  ;;  %v2021_v11 = vpop.f32.mrb[46].mxu1 }
 0x7d6   :  { %v2074_v26 = vmax.f32 %v2016_v50, %v2058_v23  ;;  %v2022_v15 = vadd.f32 %v2021_v11, %v1892_v29  ;;  %v2023_v10 = vpop.f32.mrb[47].mxu1 }
 0x7d7   :  { %v2075_v13 = vmax.f32 %v2018_v34, %v2059_v20  ;;  %v2024_v1 = vadd.f32 %v2023_v10, %v1892_v29 }
 0x7d8   :  { %v3609_v46 = vpack.c.bf16 %v2074_v26, %v2072_v43  ;;  %v2060_v2 = vmul.f32 0.01, %v2022_v15 }
 0x7d9   :  { %v2027_v38 = vpop.f32.mrb[48].mxu1  ;;  %v3607_v0 = vpack.c.bf16 %v2075_v13, %v2073_v6  ;;  %v2061_v19 = vmul.f32 0.01, %v2024_v1 }
 0x7da   :  { %v2028_v17 = vadd.f32 %v2027_v38, %v1897_v5  ;;  %v2029_v39 = vpop.f32.mrb[49].mxu1  ;;  %v2076_v53 = vmax.f32 %v2022_v15, %v2060_v2  ;;  %v2090_v38 = vld [vmem:[%s5814_s6 + $0x10] sm:$0xff]  ;;  %v2092_v2 = vld [vmem:[%s5814_s6 + $0x20] sm:$0xff] }
 0x7db   :  { %v2030_v49 = vadd.f32 %v2029_v39, %v1897_v5  ;;  %3608 = vmatprep.subr.bf16.mxu0 %v3607_v0  ;;  %v2077_v44 = vmax.f32 %v2024_v1, %v2061_v19  ;;  %v2089_v5 = vld [vmem:[%s5814_s6 + $0x8] sm:$0xff]  ;;  %v2091_v0 = vld [vmem:[%s5814_s6 + $0x18] sm:$0xff]  ;;  %v2094_v39 = vld [vmem:[%s5814_s6 + $0x30] sm:$0xff] }
 0x7dc   :  { %v2062_v56 = vmul.f32 0.01, %v2028_v17  ;;  %3610 = vmatpush1.bf16.msra.mxu0 %v3609_v46  ;;  %v2088_v46 = vld [vmem:[%s5814_s6] sm:$0xff]  ;;  %v2095_v19 = vld [vmem:[%s5814_s6 + $0x38] sm:$0xff] }
 0x7dd   :  { %v2063_v59 = vmul.f32 0.01, %v2030_v49  ;;  %v2033_v45 = vpop.f32.mrb[50].mxu1 }
 0x7de   :  { %v2078_v3 = vmax.f32 %v2028_v17, %v2062_v56  ;;  %v2034_v40 = vadd.f32 %v2033_v45, %v1902_v14  ;;  %v2035_v22 = vpop.f32.mrb[51].mxu1  ;;  %v2093_v17 = vld [vmem:[%s5814_s6 + $0x28] sm:$0xff] }
 0x7df   :  { %v2079_v18 = vmax.f32 %v2030_v49, %v2063_v59  ;;  %v2036_v25 = vadd.f32 %v2035_v22, %v1902_v14  ;;  %v2096_v49 = vld [vmem:[%s5814_s6 + $0x40] sm:$0xff]  ;;  %v2097_v56 = vld [vmem:[%s5814_s6 + $0x48] sm:$0xff] }
 0x7e0   :  { %v3613_v9 = vpack.c.bf16 %v2078_v3, %v2076_v53  ;;  %v2064_v42 = vmul.f32 0.01, %v2034_v40 }
 0x7e1   :  { %v2039_v48 = vpop.f32.mrb[52].mxu1  ;;  %v3611_v27 = vpack.c.bf16 %v2079_v18, %v2077_v44  ;;  %v2065_v32 = vmul.f32 0.01, %v2036_v25 }
 0x7e2   :  { %v2040_v31 = vadd.f32 %v2039_v48, %v1907_v41  ;;  %v2041_v52 = vpop.f32.mrb[53].mxu1  ;;  %v2080_v36 = vmax.f32 %v2034_v40, %v2064_v42 }
 0x7e3   :  { %v2042_v55 = vadd.f32 %v2041_v52, %v1907_v41  ;;  %3612 = vmatprep.subr.bf16.mxu0 %v3611_v27  ;;  %v2081_v58 = vmax.f32 %v2036_v25, %v2065_v32  ;;  %v5994_v27 = vld [vmem:[#allocation5_spill] sm:$0xff]  ;;  %v5995_v52 = vld [vmem:[#allocation6_spill] sm:$0xff] }
 0x7e4   :  { %v2066_v12 = vmul.f32 0.01, %v2040_v31  ;;  %3614 = vmatpush1.bf16.msra.mxu0 %v3613_v9 }
 0x7e5   :  { %v2067_v51 = vmul.f32 0.01, %v2042_v55  ;;  %v2045_v37 = vpop.f32.mrb[54].mxu1 }
 0x7e6   :  { %v2082_v62 = vmax.f32 %v2040_v31, %v2066_v12  ;;  %v2046_v60 = vadd.f32 %v2045_v37, %v1912_v30  ;;  %v2047_v54 = vpop.f32.mrb[55].mxu1  ;;  %v5996_v37 = vld [vmem:[#allocation7_spill] sm:$0xff] }
 0x7e7   :  { %v2083_v24 = vmax.f32 %v2042_v55, %v2067_v51  ;;  %v2048_v63 = vadd.f32 %v2047_v54, %v1912_v30 }
 0x7e8   :  { %v3617_v28 = vpack.c.bf16 %v2082_v62, %v2080_v36  ;;  %v2068_v29 = vmul.f32 0.01, %v2046_v60 }
 0x7e9   :  { %v2051_v50 = vpop.f32.mrb[56].mxu1  ;;  %v3615_v21 = vpack.c.bf16 %v2083_v24, %v2081_v58  ;;  %v2069_v23 = vmul.f32 0.01, %v2048_v63 }
 0x7ea   :  { %v2052_v4 = vadd.f32 %v2051_v50, %v1917_v33  ;;  %v2053_v34 = vpop.f32.mrb[57].mxu1  ;;  %v2084_v26 = vmax.f32 %v2046_v60, %v2068_v29  ;;  %v5997_v60 = vld [vmem:[#allocation8_spill] sm:$0xff]  ;;  %v5998_v50 = vld [vmem:[#allocation9_spill] sm:$0xff] }
 0x7eb   :  { %v2054_v20 = vadd.f32 %v2053_v34, %v1917_v33  ;;  %3616 = vmatprep.subr.bf16.mxu0 %v3615_v21  ;;  %v2085_v10 = vmax.f32 %v2048_v63, %v2069_v23 }
 0x7ec   :  { %v2070_v11 = vmul.f32 0.01, %v2052_v4  ;;  %3618 = vmatpush1.bf16.msra.mxu0 %v3617_v28 }
 0x7ed   :  { %v2071_v43 = vmul.f32 0.01, %v2054_v20 }
 0x7ee   :  { %v2086_v15 = vmax.f32 %v2052_v4, %v2070_v11  ;;  %v5999_v4 = vld [vmem:[#allocation10_spill] sm:$0xff] }
 0x7ef   :  { %v2087_v6 = vmax.f32 %v2054_v20, %v2071_v43 }
 0x7f0   :  { %v3621_v13 = vpack.c.bf16 %v2086_v15, %v2084_v26  ;;  %v6000_v15 = vld [vmem:[#allocation11_spill] sm:$0xff] }
 0x7f1   :  { %v3619_v1 = vpack.c.bf16 %v2087_v6, %v2085_v10 }
 0x7f3   :  { %3620 = vmatprep.subr.bf16.mxu0 %v3619_v1 }
 0x7f4   :  { %3622 = vmatpush1.bf16.msra.mxu0 %v3621_v13  ;;  %v6001_v13 = vld [vmem:[#allocation12_spill] sm:$0xff] }
 0x7f7   :  { %3496 = vmatmul.mubr.msk.f32.vlgmr.msra.gmra.mrb[42].mxu0 %vm283_vm1, %v2088_v46 }
 0x7f8   :  { %2198 = vmatprep.mubr.f32.mxu0 %v5993_v61 }
 0x7fb   :  { %3497 = vmatmul.mubr.msk.f32.gmra.mrb[44].mxu0 %vm283_vm1, %v2089_v5 }
 0x7fc   :  { %2204 = vmatprep.mubr.f32.mxu0 %v5993_v61 }
 0x7ff   :  { %3498 = vmatmul.mubr.msk.f32.gmra.mrb[46].mxu0 %vm283_vm1, %v2090_v38 }
 0x800   :  { %2210 = vmatprep.mubr.f32.mxu0 %v5993_v61 }
 0x803   :  { %3499 = vmatmul.mubr.msk.f32.gmra.mrb[48].mxu0 %vm283_vm1, %v2091_v0 }
 0x804   :  { %2216 = vmatprep.mubr.f32.mxu0 %v5993_v61 }
 0x807   :  { %3500 = vmatmul.mubr.msk.f32.gmra.mrb[50].mxu0 %vm283_vm1, %v2092_v2 }
 0x808   :  { %2222 = vmatprep.mubr.f32.mxu0 %v5993_v61 }
 0x80b   :  { %3501 = vmatmul.mubr.msk.f32.gmra.mrb[52].mxu0 %vm283_vm1, %v2093_v17  ;;  %v6002_v17 = vld [vmem:[#allocation13_spill] sm:$0xff] }
 0x80c   :  { %2228 = vmatprep.mubr.f32.mxu0 %v5993_v61 }
 0x80f   :  { %3502 = vmatmul.mubr.msk.f32.gmra.mrb[54].mxu0 %vm283_vm1, %v2094_v39 }
 0x810   :  { %2234 = vmatprep.mubr.f32.mxu0 %v5993_v61 }
 0x813   :  { %3503 = vmatmul.mubr.msk.f32.gmra.mrb[56].mxu0 %vm283_vm1, %v2095_v19 }
 0x814   :  { %2240 = vmatprep.mubr.f32.mxu0 %v5993_v61 }
 0x817   :  { %3504 = vmatmul.mubr.msk.f32.gmra.mrb[58].mxu0 %vm283_vm1, %v2096_v49  ;;  %v6003_v49 = vld [vmem:[#allocation14_spill] sm:$0xff] }
 0x818   :  { %2246 = vmatprep.mubr.f32.mxu0 %v5993_v61 }
 0x81b   :  { %3505 = vmatmul.mubr.msk.f32.gmra.mrb[60].mxu0 %vm283_vm1, %v2097_v56 }
 0x81c   :  { %3185 = vmatprep.mubr.f32.mxu0 %v5993_v61 }
 0x8ca   :  { %v5103_v14 = vpop.f32.mrb[42].mxu0 }
 0x8cb   :  { %v5105_v59 = vpop.f32.mrb[43].mxu0  ;;  %v2263_v45 = vmul.f32 %v5103_v14, %v5103_v14 }
 0x8cc   :  { %v2255_v53 = vadd.f32 %v5105_v59, %v5103_v14  ;;  %v2264_v3 = vmul.f32 %v5105_v59, %v5105_v59 }
 0x8ce   :  { %2256 = vadd.xlane.f32.xlu0 %v2255_v53  ;;  %v5113_v40 = vpop.f32.mrb[44].mxu0  ;;  %v2267_v22 = vadd.f32 %v2264_v3, %v2263_v45 }
 0x8cf   :  { %v5115_v44 = vpop.f32.mrb[45].mxu0  ;;  %v2265_v18 = vmul.f32 %v5113_v40, %v5113_v40 }
 0x8d0   :  { %v2258_v25 = vadd.f32 %v5115_v44, %v5113_v40  ;;  %v2266_v9 = vmul.f32 %v5115_v44, %v5115_v44 }
 0x8d2   :  { %2268 = vadd.xlane.f32.xlu0 %v2267_v22  ;;  %2259 = vadd.xlane.f32.xlu1 %v2258_v25  ;;  %v2206_v41 = vpop.f32.mrb[46].mxu0  ;;  %v2270_v48 = vadd.f32 %v2266_v9, %v2265_v18  ;;  %v6004_v25 = vld [vmem:[#allocation15_spill] sm:$0xff] }
 0x8d3   :  { %v5124_v42 = vadd.f32 %v2206_v41, %v5994_v27  ;;  %v2208_v31 = vpop.f32.mrb[47].mxu0 }
 0x8d4   :  { %v5127_v32 = vadd.f32 %v2208_v31, %v5995_v52 }
 0x8d5   :  { %v2771_v30 = vmul.f32 %v5124_v42, %v5124_v42 }
 0x8d6   :  { %2271 = vadd.xlane.f32.xlu0 %v2270_v48  ;;  %v2212_v55 = vpop.f32.mrb[48].mxu0  ;;  %v2739_v12 = vadd.f32 %v5127_v32, %v5124_v42  ;;  %v2772_v51 = vmul.f32 %v5127_v32, %v5127_v32  ;;  %v6005_v48 = vld [vmem:[#allocation16_spill] sm:$0xff] }
 0x8d7   :  { %v5136_v36 = vadd.f32 %v2212_v55, %v5996_v37  ;;  %v2214_v62 = vpop.f32.mrb[49].mxu0 }
 0x8d8   :  { %v5139_v54 = vadd.f32 %v2214_v62, %v5997_v60  ;;  %2740 = vadd.xlane.f32.xlu1 %v2739_v12  ;;  %v2787_v24 = vadd.f32 %v2772_v51, %v2771_v30  ;;  %v6006_v51 = vld [vmem:[#allocation17_spill] sm:$0xff]  ;;  %v6007_v60 = vld [vmem:[#allocation18_spill] sm:$0xff] }
 0x8d9   :  { %v2773_v28 = vmul.f32 %v5136_v36, %v5136_v36 }
 0x8da   :  { %v2218_v58 = vpop.f32.mrb[50].mxu0  ;;  %v2742_v63 = vadd.f32 %v5139_v54, %v5136_v36  ;;  %v2774_v33 = vmul.f32 %v5139_v54, %v5139_v54 }
 0x8db   :  { %v5148_v21 = vadd.f32 %v2218_v58, %v5998_v50  ;;  %v2220_v29 = vpop.f32.mrb[51].mxu0 }
 0x8dc   :  { %v5151_v34 = vadd.f32 %v2220_v29, %v5999_v4  ;;  %2788 = vadd.xlane.f32.xlu1 %v2787_v24  ;;  %2743 = vadd.xlane.f32.xlu0 %v2742_v63  ;;  %v2790_v20 = vadd.f32 %v2774_v33, %v2773_v28  ;;  %v6008_v33 = vld [vmem:[#allocation19_spill] sm:$0xff]  ;;  %v6010_v4 = vld [vmem:[#allocation20_spill] sm:$0xff] }
 0x8dd   :  { %v2775_v43 = vmul.f32 %v5148_v21, %v5148_v21 }
 0x8de   :  { %v2224_v23 = vpop.f32.mrb[52].mxu0  ;;  %v2745_v11 = vadd.f32 %v5151_v34, %v5148_v21  ;;  %v2776_v26 = vmul.f32 %v5151_v34, %v5151_v34 }
 0x8df   :  { %v5160_v10 = vadd.f32 %v2224_v23, %v6000_v15  ;;  %v2226_v6 = vpop.f32.mrb[53].mxu0 }
 0x8e0   :  { %v5163_v1 = vadd.f32 %v2226_v6, %v6001_v13  ;;  %2791 = vadd.xlane.f32.xlu0 %v2790_v20  ;;  %2746 = vadd.xlane.f32.xlu1 %v2745_v11  ;;  %v2793_v5 = vadd.f32 %v2776_v26, %v2775_v43 }
 0x8e1   :  { %v2777_v0 = vmul.f32 %v5160_v10, %v5160_v10 }
 0x8e2   :  { %v2230_v46 = vpop.f32.mrb[54].mxu0  ;;  %v2748_v38 = vadd.f32 %v5163_v1, %v5160_v10  ;;  %v2778_v2 = vmul.f32 %v5163_v1, %v5163_v1 }
 0x8e3   :  { %v5172_v39 = vadd.f32 %v2230_v46, %v6002_v17  ;;  %v2232_v19 = vpop.f32.mrb[55].mxu0 }
 0x8e4   :  { %v5175_v56 = vadd.f32 %v2232_v19, %v6003_v49  ;;  %2794 = vadd.xlane.f32.xlu1 %v2793_v5  ;;  %2749 = vadd.xlane.f32.xlu0 %v2748_v38  ;;  %v2796_v53 = vadd.f32 %v2778_v2, %v2777_v0 }
 0x8e5   :  { %v2779_v22 = vmul.f32 %v5172_v39, %v5172_v39 }
 0x8e6   :  { %v2236_v45 = vpop.f32.mrb[56].mxu0  ;;  %v2751_v3 = vadd.f32 %v5175_v56, %v5172_v39  ;;  %v2780_v18 = vmul.f32 %v5175_v56, %v5175_v56 }
 0x8e7   :  { %v5184_v9 = vadd.f32 %v2236_v45, %v6004_v25  ;;  %v2238_v41 = vpop.f32.mrb[57].mxu0 }
 0x8e8   :  { %v5187_v27 = vadd.f32 %v2238_v41, %v6005_v48  ;;  %2797 = vadd.xlane.f32.xlu0 %v2796_v53  ;;  %2752 = vadd.xlane.f32.xlu1 %v2751_v3  ;;  %v2799_v52 = vadd.f32 %v2780_v18, %v2779_v22  ;;  %v3506_v3 = vld [vmem:[%s5816_s8 + $0x2] ss:$8 sm:$0x3]  ;;  %v3507_v22 = vld [vmem:[%s5816_s8 + $0x3] ss:$8 sm:$0x3] }
 0x8e9   :  { %v2781_v12 = vmul.f32 %v5184_v9, %v5184_v9  ;;  %v6012_v41 = vld [vmem:[#allocation21_spill] sm:$0xff] }
 0x8ea   :  { %v2242_v31 = vpop.f32.mrb[58].mxu0  ;;  %v2754_v55 = vadd.f32 %v5187_v27, %v5184_v9  ;;  %v2782_v30 = vmul.f32 %v5187_v27, %v5187_v27  ;;  %v2297_v48 = vrot.slane %v3506_v3, %v6012_v41 }
 0x8eb   :  { %v5196_v37 = vadd.f32 %v2242_v31, %v6006_v51  ;;  %v2244_v62 = vpop.f32.mrb[59].mxu0  ;;  %v6013_v31 = vld [vmem:[#allocation22_spill] sm:$0xff]  ;;  %v2312_v51 = vrot.slane %v3507_v22, %v6012_v41 }
 0x8ec   :  { %v5199_v58 = vadd.f32 %v2244_v62, %v6007_v60  ;;  %2800 = vadd.xlane.f32.xlu1 %v2799_v52  ;;  %2755 = vadd.xlane.f32.xlu0 %v2754_v55  ;;  %v2802_v63 = vadd.f32 %v2782_v30, %v2781_v12  ;;  %v2301_v52 = vrot.slane %v3506_v3, %v6013_v31  ;;  %v2341_v3 = vld [vmem:[%s5815_s7 + $0x28] sm:$0xff] }
 0x8ed   :  { %v2316_v62 = vrot.slane %v3507_v22, %v6013_v31  ;;  %v2342_v22 = vld [vmem:[%s5815_s7 + $0x30] sm:$0xff] }
 0x8ee   :  { %v2248_v24 = vpop.f32.mrb[60].mxu0  ;;  %v2757_v28 = vadd.f32 %v5199_v58, %v5196_v37 }
 0x8ef   :  { %v5204_v50 = vadd.f32 %v2248_v24, %v6008_v33  ;;  %v2250_v29 = vpop.f32.mrb[61].mxu0 }
 0x8f0   :  { %v5207_v23 = vadd.f32 %v2250_v29, %v6010_v4  ;;  %2803 = vadd.xlane.f32.xlu0 %v2802_v63  ;;  %2758 = vadd.xlane.f32.xlu1 %v2757_v28 }
 0x8f1   :  { %6009 = vst [vmem:[#allocation29_spill] sm:$0xff] %v5204_v50 }
 0x8f2   :  { %6011 = vst [vmem:[#allocation39_spill] sm:$0xff] %v5207_v23  ;;  %v2760_v20 = vadd.f32 %v5207_v23, %v5204_v50 }
 0x8f4   :  { %2761 = vadd.xlane.f32.xlu0 %v2760_v20 }
 0x95b   :  { %v2257_v11 = vpop.xlane.xlu0 %2256 }
 0x95c   :  { %v2261_v43 = vmul.f32 0.00390625, %v2257_v11 }
 0x95e   :  { %v2275_v6 = vmul.f32 %v2261_v43, %v2261_v43  ;;  %v2281_v18 = vsub.f32 %v5103_v14, %v2261_v43  ;;  %v2282_v25 = vsub.f32 %v5105_v59, %v2261_v43 }
 0x95f   :  { %v2269_v26 = vpop.xlane.xlu0 %2268  ;;  %v2260_v15 = vpop.xlane.xlu1 %2259 }
 0x960   :  { %v2273_v13 = vmul.f32 0.00390625, %v2269_v26  ;;  %v2262_v46 = vmul.f32 0.00390625, %v2260_v15 }
 0x962   :  { %v2277_v5 = vsub.f32 %v2273_v13, %v2275_v6  ;;  %v2276_v38 = vmul.f32 %v2262_v46, %v2262_v46  ;;  %v2283_v60 = vsub.f32 %v5113_v40, %v2262_v46  ;;  %v2284_v24 = vsub.f32 %v5115_v44, %v2262_v46 }
 0x963   :  { %v2272_v0 = vpop.xlane.xlu0 %2271 }
 0x964   :  { %v2279_v2 = vmax.f32 %v2277_v5, 0.0  ;;  %v2274_v17 = vmul.f32 0.00390625, %v2272_v0 }
 0x966   :  { %v2285_v19 = vadd.f32 1e-05, %v2279_v2  ;;  %v2278_v49 = vsub.f32 %v2274_v17, %v2276_v38  ;;  %v2336_v17 = vld [vmem:[%s5815_s7] sm:$0xff] }
 0x968   :  { %3726 = vrsqrt.f32 %v2285_v19  ;;  %v2280_v45 = vmax.f32 %v2278_v49, 0.0  ;;  %v2337_v19 = vld [vmem:[%s5815_s7 + $0x8] sm:$0xff]  ;;  %v2338_v49 = vld [vmem:[%s5815_s7 + $0x10] sm:$0xff] }
 0x96a   :  { %v2286_v53 = vadd.f32 1e-05, %v2280_v45  ;;  %v2339_v45 = vld [vmem:[%s5815_s7 + $0x18] sm:$0xff] }
 0x96c   :  { %3728 = vrsqrt.f32 %v2286_v53  ;;  %v2340_v53 = vld [vmem:[%s5815_s7 + $0x20] sm:$0xff] }
 0x972   :  { %v3727_v55 = vpop.eup %3726 }
 0x973   :  { %v2289_v12 = vmul.f32 %v3727_v55, %v2281_v18  ;;  %v2290_v30 = vmul.f32 %v3727_v55, %v2282_v25  ;;  %v2343_v18 = vld [vmem:[%s5815_s7 + $0x38] sm:$0xff] }
 0x975   :  { %v2305_v63 = vmul.f32 %v2301_v52, %v2290_v30  ;;  %v2304_v28 = vmul.f32 %v2297_v48, %v2289_v12 }
 0x976   :  { %v3729_v14 = vpop.eup %3728 }
 0x977   :  { %v2291_v33 = vmul.f32 %v3729_v14, %v2283_v60  ;;  %v2292_v59 = vmul.f32 %v3729_v14, %v2284_v24  ;;  %v2320_v29 = vadd.f32 %v2316_v62, %v2305_v63  ;;  %v2319_v4 = vadd.f32 %v2312_v51, %v2304_v28 }
 0x979   :  { %v2307_v20 = vmul.f32 %v2301_v52, %v2292_v59  ;;  %v2324_v11 = vmul.f32 0.01, %v2320_v29  ;;  %v2306_v43 = vmul.f32 %v2297_v48, %v2291_v33  ;;  %v2323_v13 = vmul.f32 0.01, %v2319_v4 }
 0x97b   :  { %v2322_v26 = vadd.f32 %v2316_v62, %v2307_v20  ;;  %v2328_v15 = vmax.f32 %v2320_v29, %v2324_v11  ;;  %v2321_v6 = vadd.f32 %v2312_v51, %v2306_v43  ;;  %v2327_v46 = vmax.f32 %v2319_v4, %v2323_v13 }
 0x97d   :  { %v2326_v5 = vmul.f32 0.01, %v2322_v26  ;;  %3509 = vst [vmem:[%s5817_s9 + $0x28] sm:$0xff] %v2328_v15  ;;  %v2325_v44 = vmul.f32 0.01, %v2321_v6  ;;  %3508 = vst [vmem:[%s5817_s9 + $0x20] sm:$0xff] %v2327_v46 }
 0x97f   :  { %v2330_v40 = vmax.f32 %v2322_v26, %v2326_v5  ;;  %v2329_v0 = vmax.f32 %v2321_v6, %v2325_v44 }
 0x981   :  { %3511 = vst [vmem:[%s5817_s9 + $0x38] sm:$0xff] %v2330_v40  ;;  %v3623_v38 = vpack.c.bf16 %v2330_v40, %v2328_v15  ;;  %3510 = vst [vmem:[%s5817_s9 + $0x30] sm:$0xff] %v2329_v0  ;;  %v3625_v2 = vpack.c.bf16 %v2329_v0, %v2327_v46 }
 0x983   :  { %3624 = vmatprep.subr.bf16.mxu1 %v3623_v38 }
 0x984   :  { %3626 = vmatpush1.bf16.msra.mxu1 %v3625_v2 }
 0x987   :  { %3512 = vmatmul.mubr.msk.f32.vlgmr.msra.gmra.mrb[58].mxu1 %vm1162_vm2, %v2336_v17 }
 0x988   :  { %2438 = vmatprep.mubr.f32.mxu1 %v5993_v61 }
 0x98b   :  { %3513 = vmatmul.mubr.msk.f32.gmra.mrb[60].mxu1 %vm1162_vm2, %v2337_v19 }
 0x98c   :  { %2444 = vmatprep.mubr.f32.mxu1 %v5993_v61 }
 0x98f   :  { %3514 = vmatmul.mubr.msk.f32.gmra.mrb[62].mxu1 %vm1162_vm2, %v2338_v49 }
 0x990   :  { %2450 = vmatprep.mubr.f32.mxu1 %v5993_v61 }
 0x993   :  { %3515 = vmatmul.mubr.msk.f32.gmra.mrb[64].mxu1 %vm1162_vm2, %v2339_v45 }
 0x994   :  { %2456 = vmatprep.mubr.f32.mxu1 %v5993_v61 }
 0x997   :  { %3516 = vmatmul.mubr.msk.f32.gmra.mrb[66].mxu1 %vm1162_vm2, %v2340_v53 }
 0x998   :  { %2462 = vmatprep.mubr.f32.mxu1 %v5993_v61 }
 0x99b   :  { %3517 = vmatmul.mubr.msk.f32.gmra.mrb[68].mxu1 %vm1162_vm2, %v2341_v3 }
 0x99c   :  { %2468 = vmatprep.mubr.f32.mxu1 %v5993_v61 }
 0x99f   :  { %3518 = vmatmul.mubr.msk.f32.gmra.mrb[70].mxu1 %vm1162_vm2, %v2342_v22 }
 0x9a0   :  { %2474 = vmatprep.mubr.f32.mxu1 %v5993_v61 }
 0x9a3   :  { %3519 = vmatmul.mubr.msk.f32.gmra.mrb[72].mxu1 %vm1162_vm2, %v2343_v18 }
 0x9a4   :  { %3338 = vmatprep.mubr.f32.mxu1 %v5993_v61 }
 0xa5a   :  { %v5277_v25 = vpop.f32.mrb[58].mxu1 }
 0xa5b   :  { %v5279_v48 = vpop.f32.mrb[59].mxu1  ;;  %v2515_v52 = vmul.f32 %v5277_v25, %v5277_v25 }
 0xa5c   :  { %v2483_v55 = vadd.f32 %v5279_v48, %v5277_v25  ;;  %v2516_v12 = vmul.f32 %v5279_v48, %v5279_v48 }
 0xa5e   :  { %v5287_v30 = vpop.f32.mrb[60].mxu1  ;;  %2484 = vadd.xlane.f32.xlu1 %v2483_v55  ;;  %v2531_v51 = vadd.f32 %v2516_v12, %v2515_v52 }
 0xa5f   :  { %v2517_v62 = vmul.f32 %v5287_v30, %v5287_v30  ;;  %v5291_v60 = vpop.f32.mrb[61].mxu1 }
 0xa60   :  { %v2518_v24 = vmul.f32 %v5291_v60, %v5291_v60  ;;  %v2486_v63 = vadd.f32 %v5291_v60, %v5287_v30 }
 0xa62   :  { %v5297_v28 = vpop.f32.mrb[62].mxu1  ;;  %2532 = vadd.xlane.f32.xlu1 %v2531_v51  ;;  %2487 = vadd.xlane.f32.xlu0 %v2486_v63  ;;  %v2534_v14 = vadd.f32 %v2518_v24, %v2517_v62  ;;  %v2783_v63 = vmul.f32 %v5196_v37, %v5196_v37 }
 0xa63   :  { %v2519_v33 = vmul.f32 %v5297_v28, %v5297_v28  ;;  %v5301_v59 = vpop.f32.mrb[63].mxu1 }
 0xa64   :  { %v2520_v29 = vmul.f32 %v5301_v59, %v5301_v59  ;;  %v2489_v4 = vadd.f32 %v5301_v59, %v5297_v28 }
 0xa66   :  { %v5307_v20 = vpop.f32.mrb[64].mxu1  ;;  %2490 = vadd.xlane.f32.xlu1 %v2489_v4  ;;  %2535 = vadd.xlane.f32.xlu0 %v2534_v14  ;;  %v2537_v11 = vadd.f32 %v2520_v29, %v2519_v33  ;;  %v2784_v14 = vmul.f32 %v5199_v58, %v5199_v58 }
 0xa67   :  { %v2521_v43 = vmul.f32 %v5307_v20, %v5307_v20  ;;  %v5311_v26 = vpop.f32.mrb[65].mxu1 }
 0xa68   :  { %v2492_v15 = vadd.f32 %v5311_v26, %v5307_v20  ;;  %v2522_v6 = vmul.f32 %v5311_v26, %v5311_v26 }
 0xa6a   :  { %v5317_v13 = vpop.f32.mrb[66].mxu1  ;;  %2538 = vadd.xlane.f32.xlu1 %v2537_v11  ;;  %2493 = vadd.xlane.f32.xlu0 %v2492_v15  ;;  %v2540_v5 = vadd.f32 %v2522_v6, %v2521_v43  ;;  %v2785_v11 = vmul.f32 %v5204_v50, %v5204_v50  ;;  %v2786_v43 = vmul.f32 %v5207_v23, %v5207_v23 }
 0xa6b   :  { %v2523_v40 = vmul.f32 %v5317_v13, %v5317_v13  ;;  %v5321_v44 = vpop.f32.mrb[67].mxu1  ;;  %v2805_v15 = vadd.f32 %v2784_v14, %v2783_v63 }
 0xa6c   :  { %v2495_v46 = vadd.f32 %v5321_v44, %v5317_v13  ;;  %v2524_v38 = vmul.f32 %v5321_v44, %v5321_v44  ;;  %v2808_v6 = vadd.f32 %v2786_v43, %v2785_v11 }
 0xa6e   :  { %v5327_v0 = vpop.f32.mrb[68].mxu1  ;;  %2496 = vadd.xlane.f32.xlu1 %v2495_v46  ;;  %2541 = vadd.xlane.f32.xlu0 %v2540_v5  ;;  %v2543_v2 = vadd.f32 %v2524_v38, %v2523_v40  ;;  %v3049_v5 = vld [vmem:[%s5810_s2 + $0x40] sm:$0xff]  ;;  %v3051_v40 = vld [vmem:[%s5810_s2 + $0x50] sm:$0xff]  ;;  %v3052_v46 = vld [vmem:[%s5810_s2 + $0x58] sm:$0xff] }
 0xa6f   :  { %v2525_v17 = vmul.f32 %v5327_v0, %v5327_v0  ;;  %v5331_v19 = vpop.f32.mrb[69].mxu1  ;;  %v3050_v38 = vld [vmem:[%s5810_s2 + $0x48] sm:$0xff] }
 0xa70   :  { %v2498_v49 = vadd.f32 %v5331_v19, %v5327_v0  ;;  %v2526_v45 = vmul.f32 %v5331_v19, %v5331_v19 }
 0xa72   :  { %v5337_v53 = vpop.f32.mrb[70].mxu1  ;;  %2544 = vadd.xlane.f32.xlu1 %v2543_v2  ;;  %2499 = vadd.xlane.f32.xlu0 %v2498_v49  ;;  %v2546_v3 = vadd.f32 %v2526_v45, %v2525_v17  ;;  %v3054_v2 = vld [vmem:[%s5810_s2 + $0x68] sm:$0xff]  ;;  %v3053_v17 = vld [vmem:[%s5810_s2 + $0x60] sm:$0xff]  ;;  %v3056_v49 = vld [vmem:[%s5810_s2 + $0x78] sm:$0xff] }
 0xa73   :  { %v2527_v22 = vmul.f32 %v5337_v53, %v5337_v53  ;;  %v5341_v18 = vpop.f32.mrb[71].mxu1  ;;  %v3055_v45 = vld [vmem:[%s5810_s2 + $0x70] sm:$0xff] }
 0xa74   :  { %v2501_v52 = vadd.f32 %v5341_v18, %v5337_v53  ;;  %v2528_v55 = vmul.f32 %v5341_v18, %v5341_v18 }
 0xa76   :  { %v5347_v12 = vpop.f32.mrb[72].mxu1  ;;  %2502 = vadd.xlane.f32.xlu1 %v2501_v52  ;;  %2547 = vadd.xlane.f32.xlu0 %v2546_v3  ;;  %v2549_v51 = vadd.f32 %v2528_v55, %v2527_v22  ;;  %v2741_v3 = vpop.xlane.xlu1 %2740 }
 0xa77   :  { %v2529_v62 = vmul.f32 %v5347_v12, %v5347_v12  ;;  %v5351_v24 = vpop.f32.mrb[73].mxu1  ;;  %v2744_v22 = vpop.xlane.xlu0 %2743 }
 0xa78   :  { %v2504_v33 = vadd.f32 %v5351_v24, %v5347_v12  ;;  %v2530_v29 = vmul.f32 %v5351_v24, %v5351_v24 }
 0xa7a   :  { %2550 = vadd.xlane.f32.xlu1 %v2549_v51  ;;  %2505 = vadd.xlane.f32.xlu0 %v2504_v33  ;;  %v2552_v4 = vadd.f32 %v2530_v29, %v2529_v62  ;;  %v2789_v52 = vpop.xlane.xlu1 %2788  ;;  %v2763_v33 = vmul.f32 0.00390625, %v2741_v3  ;;  %v2764_v29 = vmul.f32 0.00390625, %v2744_v22 }
 0xa7b   :  { %v2792_v55 = vpop.xlane.xlu0 %2791 }
 0xa7c   :  { %v2812_v43 = vmul.f32 0.00390625, %v2792_v55 }
 0xa7e   :  { %2806 = vadd.xlane.f32.xlu1 %v2805_v15  ;;  %2553 = vadd.xlane.f32.xlu0 %v2552_v4  ;;  %v2747_v51 = vpop.xlane.xlu1 %2746  ;;  %v2811_v4 = vmul.f32 0.00390625, %v2789_v52  ;;  %v2819_v15 = vmul.f32 %v2763_v33, %v2763_v33 }
 0xa7f   :  { %v2750_v62 = vpop.xlane.xlu0 %2749 }
 0xa82   :  { %2809 = vadd.xlane.f32.xlu0 %v2808_v6  ;;  %v2795_v63 = vpop.xlane.xlu1 %2794 }
 0xa83   :  { %v2798_v14 = vpop.xlane.xlu0 %2797 }
 0xa84   :  { %v2814_v35 = vmul.f32 0.00390625, %v2798_v14 }
 0xa86   :  { %v2753_v11 = vpop.xlane.xlu1 %2752 }
 0xa87   :  { %v2756_v6 = vpop.xlane.xlu0 %2755 }
 0xa88   :  { %v5397_v57 = vmul.f32 0.00390625, %v2756_v6 }
 0xa8b   :  { %v2804_v3 = vpop.xlane.xlu0 %2803 }
 0xa8f   :  { %3059 = vperm.xlu1 %3673, %v3049_v5   ;;  %v2820_v5 = vmul.f32 %v2764_v29, %v2764_v29 }
 0xa93   :  { %3069 = vperm.xlu1 %3673, %v3051_v40   ;;  %v2827_v40 = vsub.f32 %v2811_v4, %v2819_v15 }
 0xa95   :  { %v2835_v61 = vmax.f32 %v2827_v40, 0.0 }
 0xa97   :  { %3074 = vperm.xlu1 %3673, %v3052_v46   ;;  %v2828_v46 = vsub.f32 %v2812_v43, %v2820_v5  ;;  %v2824_v5 = vmul.f32 %v5397_v57, %v5397_v57 }
 0xa98   :  { %3064 = vperm.xlu0 %3672, %v3050_v38   ;;  %v5389_v38 = vmul.f32 0.00390625, %v2747_v51 }
 0xa99   :  { %v2836_v22 = vmax.f32 %v2828_v46, 0.0 }
 0xa9a   :  { %v2821_v52 = vmul.f32 %v5389_v38, %v5389_v38 }
 0xa9b   :  { %3084 = vperm.xlu1 %3673, %v3054_v2   ;;  %v5391_v2 = vmul.f32 0.00390625, %v2750_v62  ;;  %v2860_v15 = vadd.f32 1e-05, %v2836_v22  ;;  %v2844_v22 = vsub.f32 %v5127_v32, %v2763_v33 }
 0xa9c   :  { %3079 = vperm.xlu0 %3672, %v3053_v17   ;;  %v2801_v17 = vpop.xlane.xlu1 %2800 }
 0xa9d   :  { %v2815_v55 = vmul.f32 0.00390625, %v2801_v17  ;;  %v2822_v51 = vmul.f32 %v5391_v2, %v5391_v2 }
 0xa9f   :  { %3094 = vperm.xlu1 %3673, %v3056_v49   ;;  %v2813_v49 = vmul.f32 0.00390625, %v2795_v63  ;;  %v2816_v63 = vmul.f32 0.00390625, %v2804_v3  ;;  %v2830_v43 = vsub.f32 %v2814_v35, %v2822_v51  ;;  %v2843_v51 = vsub.f32 %v5124_v42, %v2763_v33 }
 0xaa0   :  { %3089 = vperm.xlu0 %3672, %v3055_v45   ;;  %v5393_v45 = vmul.f32 0.00390625, %v2753_v11  ;;  %v2859_v11 = vadd.f32 1e-05, %v2835_v61  ;;  %v2737_v61 = vld [vmem:[%s5816_s8] ss:$8 sm:$0x3] }
 0xaa1   :  { %v2829_v4 = vsub.f32 %v2813_v49, %v2821_v52  ;;  %v2832_v46 = vsub.f32 %v2816_v63, %v2824_v5  ;;  %v2838_v6 = vmax.f32 %v2830_v43, 0.0  ;;  %v3522_v63 = vld [vmem:[%s5816_s8 + $0x1] ss:$8 sm:$0x3]  ;;  %v2759_v43 = vpop.xlane.xlu1 %2758  ;;  %v2849_v5 = vsub.f32 %v5160_v10, %v5391_v2 }
 0xaa2   :  { %v2823_v62 = vmul.f32 %v5393_v45, %v5393_v45  ;;  %3730 = vrsqrt.f32 %v2859_v11  ;;  %v5419_v11 = vrot.slane %v2737_v61, %v6012_v41  ;;  %v5423_v33 = vrot.slane %v3522_v63, %v6012_v41 }
 0xaa3   :  { %v2837_v40 = vmax.f32 %v2829_v4, 0.0  ;;  %3732 = vrsqrt.f32 %v2860_v15  ;;  %v2840_v16 = vmax.f32 %v2832_v46, 0.0  ;;  %v2862_v49 = vadd.f32 1e-05, %v2838_v6 }
 0xaa4   :  { %v2831_v14 = vsub.f32 %v2815_v55, %v2823_v62  ;;  %v2846_v55 = vsub.f32 %v5139_v54, %v2764_v29  ;;  %v5412_v62 = vrot.slane %v2737_v61, %v6013_v31  ;;  %6015 = vst [vmem:[#allocation30_spill] sm:$0xff] %v5419_v11  ;;  %6016 = vst [vmem:[#allocation55_spill] sm:$0xff] %v5423_v33 }
 0xaa5   :  { %v2861_v47 = vadd.f32 1e-05, %v2837_v40  ;;  %v2864_v8 = vadd.f32 1e-05, %v2840_v16  ;;  %v2845_v16 = vsub.f32 %v5136_v36, %v2764_v29  ;;  %v5426_v15 = vrot.slane %v3522_v63, %v6013_v31 }
 0xaa6   :  { %v2839_v17 = vmax.f32 %v2831_v14, 0.0  ;;  %6014 = vst [vmem:[#allocation28_spill] sm:$0xff] %v5412_v62  ;;  %v2847_v29 = vsub.f32 %v5148_v21, %v5389_v38  ;;  %v2848_v14 = vsub.f32 %v5151_v34, %v5389_v38  ;;  %v2852_v34 = vsub.f32 %v5175_v56, %v5393_v45  ;;  %v2762_v38 = vpop.xlane.xlu0 %2761 }
 0xaa7   :  { %3734 = vrsqrt.f32 %v2861_v47  ;;  %6017 = vst [vmem:[#allocation40_spill] sm:$0xff] %v5426_v15  ;;  %v2853_v10 = vsub.f32 %v5184_v9, %v5397_v57 }
 0xaa8   :  { %v2863_v52 = vadd.f32 1e-05, %v2839_v17  ;;  %3736 = vrsqrt.f32 %v2862_v49  ;;  %v2850_v17 = vsub.f32 %v5163_v1, %v5391_v2  ;;  %v2851_v49 = vsub.f32 %v5172_v39, %v5393_v45 }
 0xaa9   :  { %v2854_v1 = vsub.f32 %v5187_v27, %v5397_v57  ;;  %v5455_v45 = vmul.f32 0.00390625, %v2762_v38 }
 0xaaa   :  { %3738 = vrsqrt.f32 %v2863_v52  ;;  %v5440_v52 = vmul.f32 0.00390625, %v2759_v43 }
 0xaab   :  { %3740 = vrsqrt.f32 %v2864_v8  ;;  %6018 = vst [vmem:[#allocation31_spill] sm:$0xff] %v5455_v45 }
 0xaac   :  { %v3731_v35 = vpop.eup %3730 }
 0xaad   :  { %v3733_v3 = vpop.eup %3732  ;;  %v2876_v4 = vmul.f32 %v3731_v35, %v2844_v22  ;;  %v2875_v32 = vmul.f32 %v3731_v35, %v2843_v51 }
 0xaae   :  { %v2878_v47 = vmul.f32 %v3733_v3, %v2846_v55  ;;  %v2877_v8 = vmul.f32 %v3733_v3, %v2845_v16 }
 0xaaf   :  { %v2903_v42 = vmul.f32 %v5412_v62, %v2876_v4  ;;  %v2902_v6 = vmul.f32 %v5419_v11, %v2875_v32 }
 0xab0   :  { %v2905_v40 = vmul.f32 %v5412_v62, %v2878_v47  ;;  %v2904_v21 = vmul.f32 %v5419_v11, %v2877_v8  ;;  %v5465_v8 = vmul.f32 %v5440_v52, %v5440_v52 }
 0xab1   :  { %v3735_v54 = vpop.eup %3734  ;;  %v2930_v39 = vadd.f32 %v5426_v15, %v2903_v42  ;;  %v2929_v16 = vadd.f32 %v5423_v33, %v2902_v6 }
 0xab2   :  { %v3737_v36 = vpop.eup %3736  ;;  %v2880_v35 = vmul.f32 %v3735_v54, %v2848_v14  ;;  %v2879_v3 = vmul.f32 %v3735_v54, %v2847_v29  ;;  %v2932_v4 = vadd.f32 %v5426_v15, %v2905_v40  ;;  %v5459_v57 = vadd.f32 %v5423_v33, %v2904_v21 }
 0xab3   :  { %v2882_v22 = vmul.f32 %v3737_v36, %v2850_v17  ;;  %v2881_v2 = vmul.f32 %v3737_v36, %v2849_v5  ;;  %v2946_v43 = vmul.f32 0.01, %v2930_v39  ;;  %v2945_v17 = vmul.f32 0.01, %v2929_v16 }
 0xab4   :  { %v3739_v46 = vpop.eup %3738  ;;  %v2907_v27 = vmul.f32 %v5412_v62, %v2880_v35  ;;  %v2906_v32 = vmul.f32 %v5419_v11, %v2879_v3  ;;  %v2948_v14 = vmul.f32 0.01, %v2932_v4  ;;  %v2947_v21 = vmul.f32 0.01, %v5459_v57 }
 0xab5   :  { %v3741_v61 = vpop.eup %3740  ;;  %v2883_v55 = vmul.f32 %v3739_v46, %v2851_v49  ;;  %v2884_v51 = vmul.f32 %v3739_v46, %v2852_v34  ;;  %v2909_v54 = vmul.f32 %v5412_v62, %v2882_v22  ;;  %v2908_v42 = vmul.f32 %v5419_v11, %v2881_v2 }
 0xab6   :  { %v2885_v47 = vmul.f32 %v3741_v61, %v2853_v10  ;;  %v2886_v63 = vmul.f32 %v3741_v61, %v2854_v1  ;;  %v2934_v35 = vadd.f32 %v5426_v15, %v2907_v27  ;;  %v5483_v10 = vmul.f32 %v5455_v45, %v5455_v45 }
 0xab7   :  { %v2910_v36 = vmul.f32 %v5419_v11, %v2883_v55  ;;  %v2911_v5 = vmul.f32 %v5412_v62, %v2884_v51  ;;  %v2962_v38 = vmax.f32 %v2930_v39, %v2946_v43  ;;  %v2936_v61 = vadd.f32 %v5426_v15, %v2909_v54 }
 0xab8   :  { %v2912_v49 = vmul.f32 %v5419_v11, %v2885_v47  ;;  %v2913_v34 = vmul.f32 %v5412_v62, %v2886_v63  ;;  %v2933_v3 = vadd.f32 %v5423_v33, %v2906_v32  ;;  %v2964_v2 = vmax.f32 %v2932_v4, %v2948_v14 }
 0xab9   :  { %v2935_v55 = vadd.f32 %v5423_v33, %v2908_v42  ;;  %v2938_v51 = vadd.f32 %v5426_v15, %v2911_v5  ;;  %v2937_v47 = vadd.f32 %v5423_v33, %v2910_v36  ;;  %v2961_v39 = vmax.f32 %v2929_v16, %v2945_v17 }
 0xaba   :  { %v2963_v43 = vmax.f32 %v5459_v57, %v2947_v21  ;;  %v2950_v54 = vmul.f32 0.01, %v2934_v35  ;;  %v2940_v32 = vadd.f32 %v5426_v15, %v2913_v34  ;;  %v2939_v4 = vadd.f32 %v5423_v33, %v2912_v49 }
 0xabb   :  { %v5498_v42 = vmul.f32 %v2962_v38, %v5985_v7  ;;  %v2952_v5 = vmul.f32 0.01, %v2936_v61  ;;  %v2949_v36 = vmul.f32 0.01, %v2933_v3  ;;  %v2954_v16 = vmul.f32 0.01, %v2938_v51 }
 0xabc   :  { %v2953_v17 = vmul.f32 0.01, %v2937_v47  ;;  %v5508_v38 = vmul.f32 %v2961_v39, %v5985_v7  ;;  %v2955_v9 = vmul.f32 0.01, %v2939_v4 }
 0xabd   :  { %v2965_v15 = vmax.f32 %v2933_v3, %v2949_v36  ;;  %v2970_v45 = vmax.f32 %v2938_v51, %v2954_v16 }
 0xabe   :  { %v2969_v50 = vmax.f32 %v2937_v47, %v2953_v17  ;;  %v2971_v3 = vmax.f32 %v2939_v4, %v2955_v9  ;;  %v3521_v9 = vld [vmem:[%s5816_s8 + $0x5] ss:$8 sm:$0x3] }
 0xaeb   :  { %v2485_v29 = vpop.xlane.xlu1 %2484 }
 0xaec   :  { %v5475_v6 = vmul.f32 0.00390625, %v2485_v29 }
 0xaee   :  { %v2563_v63 = vmul.f32 %v5475_v6, %v5475_v6 }
 0xaef   :  { %v2533_v22 = vpop.xlane.xlu1 %2532  ;;  %v2488_v1 = vpop.xlane.xlu0 %2487 }
 0xaf0   :  { %v2555_v27 = vmul.f32 0.00390625, %v2533_v22  ;;  %v5492_v29 = vmul.f32 0.00390625, %v2488_v1  ;;  %v5501_v22 = vmul.f32 %v2964_v2, %v5985_v7  ;;  %v2951_v1 = vmul.f32 0.01, %v2935_v55 }
 0xaf1   :  { %v2968_v2 = vmax.f32 %v2936_v61, %v2952_v5  ;;  %v3520_v5 = vld [vmem:[%s5816_s8 + $0x4] ss:$8 sm:$0x3] }
 0xaf2   :  { %v2571_v14 = vsub.f32 %v2555_v27, %v2563_v63  ;;  %v2564_v49 = vmul.f32 %v5492_v29, %v5492_v29  ;;  %v2966_v63 = vmax.f32 %v2934_v35, %v2950_v54  ;;  %v2956_v27 = vmul.f32 0.01, %v2940_v32 }
 0xaf3   :  { %v2491_v46 = vpop.xlane.xlu1 %2490  ;;  %v2536_v40 = vpop.xlane.xlu0 %2535  ;;  %v2967_v23 = vmax.f32 %v2935_v55, %v2951_v1  ;;  %v5515_v35 = vmul.f32 %v2963_v43, %v5985_v7  ;;  %v5546_v16 = vrot.slane %v3520_v5, %v6012_v41  ;;  %v5549_v17 = vrot.slane %v3520_v5, %v6013_v31 }
 0xaf4   :  { %v2579_v57 = vmax.f32 %v2571_v14, 0.0  ;;  %v5503_v21 = vmul.f32 0.00390625, %v2491_v46  ;;  %v2556_v34 = vmul.f32 0.00390625, %v2536_v40  ;;  %v5518_v54 = vmul.f32 %v2966_v63, %v5985_v7 }
 0xaf5   :  { %v2972_v61 = vmax.f32 %v2940_v32, %v2956_v27  ;;  %v5535_v32 = vmul.f32 %v2967_v23, %v5985_v7  ;;  %v2587_v63 = vsub.f32 %v5277_v25, %v5475_v6  ;;  %v2588_v27 = vsub.f32 %v5279_v48, %v5475_v6 }
 0xaf6   :  { %v2603_v56 = vadd.f32 1e-05, %v2579_v57  ;;  %v2572_v33 = vsub.f32 %v2556_v34, %v2564_v49  ;;  %v2565_v62 = vmul.f32 %v5503_v21, %v5503_v21  ;;  %v5558_v49 = vrot.slane %v3521_v9, %v6012_v41 }
 0xaf7   :  { %v2539_v14 = vpop.xlane.xlu1 %2538  ;;  %v2494_v46 = vpop.xlane.xlu0 %2493  ;;  %v5552_v23 = vmul.f32 %v2972_v61, %v5985_v7  ;;  %v5561_v34 = vrot.slane %v3521_v9, %v6013_v31  ;;  %v2591_v25 = vsub.f32 %v5297_v28, %v5503_v21  ;;  %v2592_v48 = vsub.f32 %v5301_v59, %v5503_v21 }
 0xaf8   :  { %3742 = vrsqrt.f32 %v2603_v56  ;;  %v2580_v40 = vmax.f32 %v2572_v33, 0.0  ;;  %v2557_v11 = vmul.f32 0.00390625, %v2539_v14  ;;  %v5512_v39 = vmul.f32 0.00390625, %v2494_v46 }
 0xaf9   :  { %v5524_v56 = vmul.f32 %v2968_v2, %v5985_v7  ;;  %v5527_v33 = vmul.f32 %v2965_v15, %v5985_v7  ;;  %v2589_v2 = vsub.f32 %v5287_v30, %v5492_v29 }
 0xafa   :  { %v2604_v55 = vadd.f32 1e-05, %v2580_v40  ;;  %v2573_v51 = vsub.f32 %v2557_v11, %v2565_v62  ;;  %v2566_v43 = vmul.f32 %v5512_v39, %v5512_v39  ;;  %v5538_v62 = vmul.f32 %v2970_v45, %v5985_v7 }
 0xafb   :  { %v2497_v47 = vpop.xlane.xlu1 %2496  ;;  %v2542_v36 = vpop.xlane.xlu0 %2541  ;;  %v5541_v11 = vmul.f32 %v2969_v50, %v5985_v7  ;;  %v5555_v45 = vmul.f32 %v2971_v3, %v5985_v7  ;;  %v6019_v31 = vsub.f32 %v5307_v20, %v5512_v39 }
 0xafc   :  { %3744 = vrsqrt.f32 %v2604_v55  ;;  %v2581_v15 = vmax.f32 %v2573_v51, 0.0  ;;  %v5543_v4 = vmul.f32 0.00390625, %v2497_v47  ;;  %v2558_v1 = vmul.f32 0.00390625, %v2542_v36 }
 0xafd   :  { %v2590_v55 = vsub.f32 %v5291_v60, %v5492_v29  ;;  %v2594_v51 = vsub.f32 %v5311_v26, %v5512_v39 }
 0xafe   :  { %v2605_v57 = vadd.f32 1e-05, %v2581_v15  ;;  %v2574_v50 = vsub.f32 %v2558_v1, %v2566_v43  ;;  %v2567_v14 = vmul.f32 %v5543_v4, %v5543_v4 }
 0xaff   :  { %v2545_v46 = vpop.xlane.xlu1 %2544  ;;  %v2500_v40 = vpop.xlane.xlu0 %2499 }
 0xb00   :  { %3746 = vrsqrt.f32 %v2605_v57  ;;  %v2582_v61 = vmax.f32 %v2574_v50, 0.0  ;;  %v2559_v3 = vmul.f32 0.00390625, %v2545_v46  ;;  %v5571_v5 = vmul.f32 0.00390625, %v2500_v40 }
 0xb02   :  { %v3743_v6 = vpop.eup %3742  ;;  %v2606_v43 = vadd.f32 1e-05, %v2582_v61  ;;  %v2575_v36 = vsub.f32 %v2559_v3, %v2567_v14  ;;  %v2568_v59 = vmul.f32 %v5571_v5, %v5571_v5 }
 0xb03   :  { %v2619_v9 = vmul.f32 %v3743_v6, %v2587_v63  ;;  %v2620_v60 = vmul.f32 %v3743_v6, %v2588_v27  ;;  %v2503_v29 = vpop.xlane.xlu1 %2502  ;;  %v2548_v21 = vpop.xlane.xlu0 %2547 }
 0xb04   :  { %3748 = vrsqrt.f32 %v2606_v43  ;;  %v2583_v15 = vmax.f32 %v2575_v36, 0.0  ;;  %v5589_v1 = vmul.f32 0.00390625, %v2503_v29  ;;  %v2560_v26 = vmul.f32 0.00390625, %v2548_v21 }
 0xb05   :  { %v2646_v57 = vmul.f32 %v5546_v16, %v2619_v9  ;;  %v2647_v27 = vmul.f32 %v5549_v17, %v2620_v60 }
 0xb06   :  { %v3745_v14 = vpop.eup %3744  ;;  %v2607_v46 = vadd.f32 1e-05, %v2583_v15  ;;  %v2576_v3 = vsub.f32 %v2560_v26, %v2568_v59  ;;  %v2569_v36 = vmul.f32 %v5589_v1, %v5589_v1 }
 0xb07   :  { %v2621_v6 = vmul.f32 %v3745_v14, %v2589_v2  ;;  %v2622_v43 = vmul.f32 %v3745_v14, %v2590_v55  ;;  %v2551_v9 = vpop.xlane.xlu1 %2550  ;;  %v2506_v29 = vpop.xlane.xlu0 %2505  ;;  %v2674_v21 = vadd.f32 %v5561_v34, %v2647_v27  ;;  %v2673_v2 = vadd.f32 %v5558_v49, %v2646_v57 }
 0xb08   :  { %3750 = vrsqrt.f32 %v2607_v46  ;;  %v2584_v60 = vmax.f32 %v2576_v3, 0.0  ;;  %v2561_v63 = vmul.f32 0.00390625, %v2551_v9  ;;  %v5604_v15 = vmul.f32 0.00390625, %v2506_v29 }
 0xb09   :  { %v2648_v40 = vmul.f32 %v5546_v16, %v2621_v6  ;;  %v2649_v50 = vmul.f32 %v5549_v17, %v2622_v43  ;;  %v2690_v61 = vmul.f32 0.01, %v2674_v21  ;;  %v2689_v30 = vmul.f32 0.01, %v2673_v2 }
 0xb0a   :  { %v3747_v55 = vpop.eup %3746  ;;  %v2608_v59 = vadd.f32 1e-05, %v2584_v60  ;;  %v2577_v26 = vsub.f32 %v2561_v63, %v2569_v36  ;;  %v2570_v6 = vmul.f32 %v5604_v15, %v5604_v15 }
 0xb0b   :  { %v2623_v46 = vmul.f32 %v3747_v55, %v2591_v25  ;;  %v2624_v3 = vmul.f32 %v3747_v55, %v2592_v48  ;;  %v2807_v9 = vpop.xlane.xlu1 %2806  ;;  %v2554_v29 = vpop.xlane.xlu0 %2553  ;;  %v2676_v43 = vadd.f32 %v5561_v34, %v2649_v50  ;;  %v2706_v14 = vmax.f32 %v2674_v21, %v2690_v61 }
 0xb0c   :  { %3752 = vrsqrt.f32 %v2608_v59  ;;  %v2585_v57 = vmax.f32 %v2577_v26, 0.0  ;;  %v2817_v28 = vmul.f32 0.00390625, %v2807_v9  ;;  %v2562_v60 = vmul.f32 0.00390625, %v2554_v29  ;;  %v6020_v29 = vld [vmem:[#allocation58_spill] sm:$0xff] }
 0xb0d   :  { %v2650_v63 = vmul.f32 %v5546_v16, %v2623_v46  ;;  %v2692_v36 = vmul.f32 0.01, %v2676_v43  ;;  %v2675_v47 = vadd.f32 %v5558_v49, %v2648_v40  ;;  %v2978_v41 = vmul.f32 %v2706_v14, %v6020_v29 }
 0xb0e   :  { %v3749_v27 = vpop.eup %3748  ;;  %v2609_v25 = vadd.f32 1e-05, %v2585_v57  ;;  %v2833_v48 = vsub.f32 %v2817_v28, %v5465_v8  ;;  %v2578_v55 = vsub.f32 %v2562_v60, %v2570_v6  ;;  %v2705_v39 = vmax.f32 %v2673_v2, %v2689_v30  ;;  %v6024_v30 = vld [vmem:[#allocation46_spill] sm:$0xff] }
 0xb0f   :  { %v2625_v50 = vmul.f32 %v3749_v27, %v6019_v31  ;;  %v2626_v59 = vmul.f32 %v3749_v27, %v2594_v51  ;;  %v2810_v26 = vpop.xlane.xlu0 %2809  ;;  %v2708_v9 = vmax.f32 %v2676_v43, %v2692_v36  ;;  %v3010_v8 = vadd.f32 %v5498_v42, %v2978_v41 }
 0xb10   :  { %3754 = vrsqrt.f32 %v2609_v25  ;;  %v2841_v46 = vmax.f32 %v2833_v48, 0.0  ;;  %v2586_v61 = vmax.f32 %v2578_v55, 0.0  ;;  %v2818_v21 = vmul.f32 0.00390625, %v2810_v26  ;;  %v6023_v25 = vld [vmem:[#allocation43_spill] sm:$0xff] }
 0xb11   :  { %v2652_v40 = vmul.f32 %v5546_v16, %v2625_v50  ;;  %v2980_v57 = vmul.f32 %v2708_v9, %v6020_v29  ;;  %v2691_v28 = vmul.f32 0.01, %v2675_v47  ;;  %v6021_v51 = vsub.f32 %v5317_v13, %v5543_v4 }
 0xb12   :  { %v3751_v6 = vpop.eup %3750  ;;  %v2865_v60 = vadd.f32 1e-05, %v2841_v46  ;;  %v2610_v20 = vadd.f32 1e-05, %v2586_v61  ;;  %v2834_v31 = vsub.f32 %v2818_v21, %v5483_v10  ;;  %v6022_v27 = vsub.f32 %v5321_v44, %v5543_v4 }
 0xb13   :  { %v2627_v14 = vmul.f32 %v3751_v6, %v6021_v51  ;;  %v3012_v36 = vadd.f32 %v5501_v22, %v2980_v57  ;;  %v3026_v48 = vadd.f32 %v3010_v8, %v6023_v25  ;;  %v2707_v42 = vmax.f32 %v2675_v47, %v2691_v28  ;;  %v6027_v8 = vld [vmem:[#allocation44_spill] sm:$0xff] }
 0xb14   :  { %v2628_v43 = vmul.f32 %v3751_v6, %v6022_v27  ;;  %3756 = vrsqrt.f32 %v2865_v60  ;;  %v2842_v41 = vmax.f32 %v2834_v31, 0.0  ;;  %v2977_v55 = vmul.f32 %v2705_v39, %v6020_v29 }
 0xb15   :  { %v2654_v10 = vmul.f32 %v5546_v16, %v2627_v14  ;;  %3758 = vrsqrt.f32 %v2610_v20  ;;  %v3028_v2 = vadd.f32 %v3012_v36, %v6024_v30  ;;  %v2651_v13 = vmul.f32 %v5549_v17, %v2624_v3 }
 0xb16   :  { %v3753_v50 = vpop.eup %3752  ;;  %v2866_v26 = vadd.f32 1e-05, %v2842_v41  ;;  %v2979_v44 = vmul.f32 %v2707_v42, %v6020_v29  ;;  %v3009_v22 = vadd.f32 %v5508_v38, %v2977_v55  ;;  %v2653_v4 = vmul.f32 %v5549_v17, %v2626_v59 }
 0xb17   :  { %v6025_v47 = vsub.f32 %v5327_v0, %v5571_v5  ;;  %v6026_v46 = vsub.f32 %v5331_v19, %v5571_v5  ;;  %v3627_v21 = vpack.c.bf16 %v3028_v2, %v3026_v48  ;;  %v2678_v57 = vadd.f32 %v5561_v34, %v2651_v13  ;;  %v6028_v5 = vld [vmem:[#allocation45_spill] sm:$0xff] }
 0xb18   :  { %3760 = vrsqrt.f32 %v2866_v26  ;;  %v3011_v3 = vadd.f32 %v5515_v35, %v2979_v44  ;;  %v3025_v28 = vadd.f32 %v3009_v22, %v6027_v8  ;;  %v2680_v38 = vadd.f32 %v5561_v34, %v2653_v4  ;;  %v6035_v8 = vld [vmem:[#allocation30_spill] sm:$0xff] }
 0xb19   :  { %v2629_v9 = vmul.f32 %v3753_v50, %v6025_v47  ;;  %v2630_v61 = vmul.f32 %v3753_v50, %v6026_v46  ;;  %3628 = vmatprep.subr.bf16.mxu0 %v3627_v21  ;;  %v2694_v6 = vmul.f32 0.01, %v2678_v57  ;;  %v2677_v0 = vadd.f32 %v5558_v49, %v2650_v63 }
 0xb1a   :  { %v2679_v60 = vadd.f32 %v5558_v49, %v2652_v40  ;;  %v3755_v19 = vpop.eup %3754  ;;  %v3027_v20 = vadd.f32 %v3011_v3, %v6028_v5  ;;  %v2696_v31 = vmul.f32 0.01, %v2680_v38  ;;  %v2655_v39 = vmul.f32 %v5549_v17, %v2628_v43  ;;  %v6039_v5 = vld [vmem:[#allocation31_spill] sm:$0xff] }
 0xb1b   :  { %v2656_v59 = vmul.f32 %v5546_v16, %v2629_v9  ;;  %v2657_v35 = vmul.f32 %v5549_v17, %v2630_v61  ;;  %v6029_v51 = vsub.f32 %v5337_v53, %v5589_v1  ;;  %v6030_v27 = vsub.f32 %v5341_v18, %v5589_v1 }
 0xb1c   :  { %v2710_v25 = vmax.f32 %v2678_v57, %v2694_v6  ;;  %v2693_v63 = vmul.f32 0.01, %v2677_v0  ;;  %v3629_v48 = vpack.c.bf16 %v3027_v20, %v3025_v28  ;;  %v2712_v40 = vmax.f32 %v2680_v38, %v2696_v31  ;;  %v6041_v31 = vld [vmem:[#allocation39_spill] sm:$0xff] }
 0xb1d   :  { %v2631_v14 = vmul.f32 %v3755_v19, %v6029_v51  ;;  %v2632_v36 = vmul.f32 %v3755_v19, %v6030_v27  ;;  %v2695_v41 = vmul.f32 0.01, %v2679_v60  ;;  %v2682_v42 = vadd.f32 %v5561_v34, %v2655_v39  ;;  %v6043_v51 = vld [vmem:[#allocation48_spill] sm:$0xff] }
 0xb1e   :  { %v2982_v43 = vmul.f32 %v2710_v25, %v6020_v29  ;;  %v2709_v30 = vmax.f32 %v2677_v0, %v2693_v63  ;;  %v2684_v2 = vadd.f32 %v5561_v34, %v2657_v35  ;;  %v3757_v53 = vpop.eup %3756  ;;  %3630 = vmatpush1.bf16.msra.mxu0 %v3629_v48  ;;  %v2984_v13 = vmul.f32 %v2712_v40, %v6020_v29  ;;  %v6044_v25 = vld [vmem:[#allocation50_spill] sm:$0xff] }
 0xb1f   :  { %v2658_v55 = vmul.f32 %v5546_v16, %v2631_v14  ;;  %v2711_v18 = vmax.f32 %v2679_v60, %v2695_v41  ;;  %v2698_v1 = vmul.f32 0.01, %v2682_v42  ;;  %v2681_v50 = vadd.f32 %v5558_v49, %v2654_v10  ;;  %v3759_v26 = vpop.eup %3758 }
 0xb20   :  { %v6031_v44 = vsub.f32 %v5196_v37, %v5440_v52  ;;  %v6032_v4 = vsub.f32 %v5199_v58, %v5440_v52  ;;  %v3014_v9 = vadd.f32 %v5518_v54, %v2982_v43  ;;  %v2981_v46 = vmul.f32 %v2709_v30, %v6020_v29  ;;  %v6036_v58 = vld [vmem:[#allocation47_spill] sm:$0xff] }
 0xb21   :  { %v6033_v61 = vsub.f32 %v5347_v12, %v5604_v15  ;;  %v6034_v10 = vsub.f32 %v5351_v24, %v5604_v15  ;;  %v3016_v3 = vadd.f32 %v5524_v56, %v2984_v13  ;;  %v2983_v37 = vmul.f32 %v2711_v18, %v6020_v29  ;;  %v6037_v12 = vld [vmem:[#allocation49_spill] sm:$0xff] }
 0xb22   :  { %v2887_v22 = vmul.f32 %v3757_v53, %v6031_v44  ;;  %v2888_v47 = vmul.f32 %v3757_v53, %v6032_v4  ;;  %v3030_v52 = vadd.f32 %v3014_v9, %v6036_v58  ;;  %v3013_v54 = vadd.f32 %v5527_v33, %v2981_v46  ;;  %v3761_v6 = vpop.eup %3760  ;;  %v6038_v15 = vld [vmem:[#allocation29_spill] sm:$0xff]  ;;  %v6046_v44 = vld [vmem:[#allocation51_spill] sm:$0xff]  ;;  %v6047_v46 = vld [vmem:[#allocation52_spill] sm:$0xff] }
 0xb23   :  { %v2633_v21 = vmul.f32 %v3759_v26, %v6033_v61  ;;  %v2634_v57 = vmul.f32 %v3759_v26, %v6034_v10  ;;  %v2700_v38 = vmul.f32 0.01, %v2684_v2  ;;  %v3032_v60 = vadd.f32 %v3016_v3, %v6037_v12 }
 0xb24   :  { %v2914_v28 = vmul.f32 %v6035_v8, %v2887_v22  ;;  %v3015_v19 = vadd.f32 %v5535_v32, %v2983_v37  ;;  %v2714_v24 = vmax.f32 %v2682_v42, %v2698_v1  ;;  %v6040_v56 = vsub.f32 %v6038_v15, %v6039_v5 }
 0xb25   :  { %v2660_v0 = vmul.f32 %v5546_v16, %v2633_v21  ;;  %v6042_v39 = vsub.f32 %v6041_v31, %v6039_v5  ;;  %v3029_v14 = vadd.f32 %v3013_v54, %v6043_v51  ;;  %v2716_v33 = vmax.f32 %v2684_v2, %v2700_v38  ;;  %v6048_v21 = vld [vmem:[#allocation40_spill] sm:$0xff] }
 0xb26   :  { %v2889_v20 = vmul.f32 %v3761_v6, %v6040_v56  ;;  %v3631_v27 = vpack.c.bf16 %v3032_v60, %v3030_v52  ;;  %v3031_v63 = vadd.f32 %v3015_v19, %v6044_v25  ;;  %v2986_v16 = vmul.f32 %v2714_v24, %v6020_v29  ;;  %v6049_v60 = vld [vmem:[#allocation53_spill] sm:$0xff]  ;;  %v6050_v24 = vld [vmem:[#allocation54_spill] sm:$0xff] }
 0xb27   :  { %v2890_v35 = vmul.f32 %v3761_v6, %v6042_v39  ;;  %v2683_v48 = vadd.f32 %v5558_v49, %v2656_v59  ;;  %v2988_v40 = vmul.f32 %v2716_v33, %v6020_v29  ;;  %v2697_v41 = vmul.f32 0.01, %v2681_v50  ;;  %v6045_v59 = vld [vmem:[#allocation28_spill] sm:$0xff] }
 0xb28   :  { %v2916_v32 = vmul.f32 %v6035_v8, %v2889_v20  ;;  %v2659_v42 = vmul.f32 %v5549_v17, %v2632_v36  ;;  %3632 = vmatprep.subr.bf16.mxu0 %v3631_v27  ;;  %v3633_v43 = vpack.c.bf16 %v3031_v63, %v3029_v14  ;;  %v3018_v30 = vadd.f32 %v5538_v62, %v2986_v16  ;;  %v6051_v20 = vld [vmem:[#allocation55_spill] sm:$0xff] }
 0xb29   :  { %v2699_v53 = vmul.f32 0.01, %v2683_v48  ;;  %v2661_v2 = vmul.f32 %v5549_v17, %v2634_v57  ;;  %v3020_v13 = vadd.f32 %v5552_v23, %v2988_v40  ;;  %v2713_v18 = vmax.f32 %v2681_v50, %v2697_v41  ;;  %v6053_v41 = vld [vmem:[#allocation25_spill] sm:$0xff] }
 0xb2a   :  { %v2686_v1 = vadd.f32 %v5561_v34, %v2659_v42  ;;  %v2915_v26 = vmul.f32 %v6045_v59, %v2888_v47  ;;  %3634 = vmatpush1.bf16.msra.mxu0 %v3633_v43  ;;  %v3034_v22 = vadd.f32 %v3018_v30, %v6046_v44  ;;  %v2917_v9 = vmul.f32 %v6045_v59, %v2890_v35  ;;  %v6055_v59 = vld [vmem:[#allocation27_spill] sm:$0xff] }
 0xb2b   :  { %v2715_v4 = vmax.f32 %v2683_v48, %v2699_v53  ;;  %v2688_v36 = vadd.f32 %v5561_v34, %v2661_v2  ;;  %v3036_v62 = vadd.f32 %v3020_v13, %v6047_v46  ;;  %v2985_v61 = vmul.f32 %v2713_v18, %v6020_v29  ;;  %v6052_v48 = vld [vmem:[#allocation24_spill] sm:$0xff]  ;;  %v6054_v18 = vld [vmem:[#allocation26_spill] sm:$0xff] }
 0xb2c   :  { %v2702_v17 = vmul.f32 0.01, %v2686_v1  ;;  %v2942_v23 = vadd.f32 %v6048_v21, %v2915_v26  ;;  %v2944_v47 = vadd.f32 %v6048_v21, %v2917_v9  ;;  %v2685_v57 = vadd.f32 %v5558_v49, %v2658_v55  ;;  %v3045_v9 = vld [vmem:[%s5812_s4 + $0x20] sm:$0xff]  ;;  %v3046_v46 = vld [vmem:[%s5812_s4 + $0x28] sm:$0xff] }
 0xb2d   :  { %v2987_v50 = vmul.f32 %v2715_v4, %v6020_v29  ;;  %v2704_v10 = vmul.f32 0.01, %v2688_v36  ;;  %v3635_v3 = vpack.c.bf16 %v3036_v62, %v3034_v22  ;;  %v3017_v37 = vadd.f32 %v5541_v11, %v2985_v61  ;;  %v3041_v22 = vld [vmem:[%s5812_s4] sm:$0xff]  ;;  %v3043_v4 = vld [vmem:[%s5812_s4 + $0x10] sm:$0xff]  ;;  %v3048_v61 = vld [vmem:[%s5812_s4 + $0x38] sm:$0xff] }
 0xb2e   :  { %v2718_v34 = vmax.f32 %v2686_v1, %v2702_v17  ;;  %v2958_v8 = vmul.f32 0.01, %v2942_v23  ;;  %v2960_v54 = vmul.f32 0.01, %v2944_v47  ;;  %v2687_v38 = vadd.f32 %v5558_v49, %v2660_v0  ;;  %v3047_v62 = vld [vmem:[%s5812_s4 + $0x30] sm:$0xff]  ;;  %v3060_v17 = vpop.permute.xlu1 %3059 }
 0xb2f   :  { %v3019_v58 = vadd.f32 %v5555_v45, %v2987_v50  ;;  %v2720_v52 = vmax.f32 %v2688_v36, %v2704_v10  ;;  %3636 = vmatprep.subr.bf16.mxu0 %v3635_v3  ;;  %v2701_v12 = vmul.f32 0.01, %v2685_v57  ;;  %v3033_v19 = vadd.f32 %v3017_v37, %v6049_v60  ;;  %v3044_v36 = vld [vmem:[%s5812_s4 + $0x18] sm:$0xff] }
 0xb30   :  { %v2974_v6 = vmax.f32 %v2942_v23, %v2958_v8  ;;  %v2976_v5 = vmax.f32 %v2944_v47, %v2960_v54  ;;  %v2703_v55 = vmul.f32 0.01, %v2687_v38  ;;  %v2990_v56 = vmul.f32 %v2718_v34, %v6020_v29  ;;  %v3065_v47 = vpop.permute.xlu0 %3064 }
 0xb31   :  { %v3035_v15 = vadd.f32 %v3019_v58, %v6050_v24  ;;  %v2941_v31 = vadd.f32 %v6051_v20, %v2914_v28  ;;  %v2943_v45 = vadd.f32 %v6051_v20, %v2916_v32  ;;  %v2992_v49 = vmul.f32 %v2720_v52, %v6020_v29 }
 0xb32   :  { %v3006_v11 = vmul.f32 %v2974_v6, %v5985_v7  ;;  %v3008_v0 = vmul.f32 %v2976_v5, %v5985_v7  ;;  %v2717_v35 = vmax.f32 %v2685_v57, %v2701_v12  ;;  %v2719_v14 = vmax.f32 %v2687_v38, %v2703_v55  ;;  %v3070_v8 = vpop.permute.xlu1 %3069 }
 0xb33   :  { %v3637_v39 = vpack.c.bf16 %v3035_v15, %v3033_v19  ;;  %v2957_v33 = vmul.f32 0.01, %v2941_v31  ;;  %v2959_v27 = vmul.f32 0.01, %v2943_v45 }
 0xb34   :  { %v3022_v51 = vadd.f32 %v3006_v11, %v2990_v56  ;;  %v3024_v25 = vadd.f32 %v3008_v0, %v2992_v49  ;;  %v2989_v32 = vmul.f32 %v2717_v35, %v6020_v29  ;;  %v2991_v42 = vmul.f32 %v2719_v14, %v6020_v29  ;;  %v3080_v14 = vpop.permute.xlu0 %3079 }
 0xb35   :  { %3638 = vmatpush1.bf16.msra.mxu0 %v3637_v39  ;;  %v2973_v63 = vmax.f32 %v2941_v31, %v2957_v33  ;;  %v2975_v16 = vmax.f32 %v2943_v45, %v2959_v27  ;;  %v6056_v29 = vmov 0.0  }
 0xb36   :  { %v3038_v40 = vadd.f32 %v3022_v51, %v6052_v48  ;;  %v3040_v28 = vadd.f32 %v3024_v25, %v6053_v41  ;;  %v3075_v11 = vpop.permute.xlu1 %3074 }
 0xb37   :  { %v3005_v43 = vmul.f32 %v2973_v63, %v5985_v7  ;;  %v3007_v30 = vmul.f32 %v2975_v16, %v5985_v7  ;;  %v3042_v7 = vld [vmem:[%s5812_s4 + $0x8] sm:$0xff] }
 0xb38   :  { %v3639_v53 = vpack.c.bf16 %v3040_v28, %v3038_v40 }
 0xb39   :  { %v3021_v2 = vadd.f32 %v3005_v43, %v2989_v32  ;;  %v3023_v13 = vadd.f32 %v3007_v30, %v2991_v42 }
 0xb3a   :  { %3640 = vmatprep.subr.bf16.mxu0 %v3639_v53  ;;  %v3085_v42 = vpop.permute.xlu1 %3084 }
 0xb3b   :  { %v3037_v1 = vadd.f32 %v3021_v2, %v6054_v18  ;;  %v3039_v26 = vadd.f32 %v3023_v13, %v6055_v59 }
 0xb3d   :  { %v3641_v44 = vpack.c.bf16 %v3039_v26, %v3037_v1  ;;  %v3090_v26 = vpop.permute.xlu0 %3089 }
 0xb3f   :  { %3642 = vmatpush1.bf16.msra.mxu0 %v3641_v44 }
 0xb42   :  { %3523 = vmatmul.mubr.msk.f32.vlgmr.msra.gmra.mrb[62].mxu0 %vm283_vm1, %v3041_v22 }
 0xb43   :  { %3191 = vmatprep.mubr.f32.mxu0 %v6056_v29 }
 0xb46   :  { %3524 = vmatmul.mubr.msk.f32.gmra.mrb[64].mxu0 %vm283_vm1, %v3042_v7 }
 0xb47   :  { %3197 = vmatprep.mubr.f32.mxu0 %v6056_v29 }
 0xb4a   :  { %3525 = vmatmul.mubr.msk.f32.gmra.mrb[66].mxu0 %vm283_vm1, %v3043_v4 }
 0xb4b   :  { %3203 = vmatprep.mubr.f32.mxu0 %v6056_v29 }
 0xb4e   :  { %3526 = vmatmul.mubr.msk.f32.gmra.mrb[68].mxu0 %vm283_vm1, %v3044_v36 }
 0xb4f   :  { %3209 = vmatprep.mubr.f32.mxu0 %v6056_v29 }
 0xb52   :  { %3527 = vmatmul.mubr.msk.f32.gmra.mrb[70].mxu0 %vm283_vm1, %v3045_v9 }
 0xb53   :  { %3215 = vmatprep.mubr.f32.mxu0 %v6056_v29 }
 0xb56   :  { %3528 = vmatmul.mubr.msk.f32.gmra.mrb[72].mxu0 %vm283_vm1, %v3046_v46 }
 0xb57   :  { %3221 = vmatprep.mubr.f32.mxu0 %v6056_v29 }
 0xb5a   :  { %3529 = vmatmul.mubr.msk.f32.gmra.mrb[74].mxu0 %vm283_vm1, %v3047_v62 }
 0xb5b   :  { %3227 = vmatprep.mubr.f32.mxu0 %v6056_v29 }
 0xb5e   :  { %3530 = vmatmul.mubr.msk.f32.gmra.mrb[76].mxu0 %vm283_vm1, %v3048_v61 }
 0xc15   :  { %v3187_v21 = vpop.f32.mrb[62].mxu0 }
 0xc16   :  { %v3188_v23 = vadd.f32 %v3187_v21, %v3060_v17  ;;  %v3189_v50 = vpop.f32.mrb[63].mxu0  ;;  %v3095_v21 = vpop.permute.xlu1 %3094 }
 0xc17   :  { %v3190_v10 = vadd.f32 %v3189_v50, %v3060_v17 }
 0xc18   :  { %v3234_v3 = vmul.f32 0.01, %v3188_v23 }
 0xc19   :  { %v3193_v57 = vpop.f32.mrb[64].mxu0  ;;  %v3235_v58 = vmul.f32 0.01, %v3190_v10 }
 0xc1a   :  { %v3194_v37 = vadd.f32 %v3193_v57, %v3065_v47  ;;  %v3195_v34 = vpop.f32.mrb[65].mxu0  ;;  %v3250_v12 = vmax.f32 %v3188_v23, %v3234_v3 }
 0xc1b   :  { %v3196_v52 = vadd.f32 %v3195_v34, %v3065_v47  ;;  %v3251_v15 = vmax.f32 %v3190_v10, %v3235_v58 }
 0xc1c   :  { %v3236_v54 = vmul.f32 0.01, %v3194_v37 }
 0xc1d   :  { %v3237_v38 = vmul.f32 0.01, %v3196_v52  ;;  %v3199_v6 = vpop.f32.mrb[66].mxu0 }
 0xc1e   :  { %v3252_v60 = vmax.f32 %v3194_v37, %v3236_v54  ;;  %v3200_v19 = vadd.f32 %v3199_v6, %v3070_v8  ;;  %v3201_v24 = vpop.f32.mrb[67].mxu0 }
 0xc1f   :  { %v3253_v5 = vmax.f32 %v3196_v52, %v3237_v38  ;;  %v3202_v55 = vadd.f32 %v3201_v24, %v3070_v8 }
 0xc20   :  { %v3645_v56 = vpack.c.bf16 %v3252_v60, %v3250_v12  ;;  %v3238_v45 = vmul.f32 0.01, %v3200_v19  ;;  %v3266_v60 = vld [vmem:[%s5814_s6] sm:$0xff] }
 0xc21   :  { %v3205_v20 = vpop.f32.mrb[68].mxu0  ;;  %v3643_v31 = vpack.c.bf16 %v3253_v5, %v3251_v15  ;;  %v3239_v0 = vmul.f32 0.01, %v3202_v55 }
 0xc22   :  { %v3206_v39 = vadd.f32 %v3205_v20, %v3075_v11  ;;  %v3207_v49 = vpop.f32.mrb[69].mxu0  ;;  %v3254_v25 = vmax.f32 %v3200_v19, %v3238_v45  ;;  %v3267_v19 = vld [vmem:[%s5814_s6 + $0x8] sm:$0xff] }
 0xc23   :  { %v3208_v35 = vadd.f32 %v3207_v49, %v3075_v11  ;;  %3644 = vmatprep.subr.bf16.mxu1 %v3643_v31  ;;  %v3255_v40 = vmax.f32 %v3202_v55, %v3239_v0 }
 0xc24   :  { %v3240_v51 = vmul.f32 0.01, %v3206_v39  ;;  %3646 = vmatpush1.bf16.msra.mxu1 %v3645_v56 }
 0xc25   :  { %v3241_v33 = vmul.f32 0.01, %v3208_v35  ;;  %v3211_v27 = vpop.f32.mrb[70].mxu0 }
 0xc26   :  { %v3256_v63 = vmax.f32 %v3206_v39, %v3240_v51  ;;  %v3212_v16 = vadd.f32 %v3211_v27, %v3080_v14  ;;  %v3213_v48 = vpop.f32.mrb[71].mxu0 }
 0xc27   :  { %v3257_v41 = vmax.f32 %v3208_v35, %v3241_v33  ;;  %v3214_v28 = vadd.f32 %v3213_v48, %v3080_v14 }
 0xc28   :  { %v3649_v32 = vpack.c.bf16 %v3256_v63, %v3254_v25  ;;  %v3242_v53 = vmul.f32 0.01, %v3212_v16 }
 0xc29   :  { %v3217_v43 = vpop.f32.mrb[72].mxu0  ;;  %v3647_v30 = vpack.c.bf16 %v3257_v41, %v3255_v40  ;;  %v3243_v18 = vmul.f32 0.01, %v3214_v28 }
 0xc2a   :  { %v3218_v2 = vadd.f32 %v3217_v43, %v3085_v42  ;;  %v3219_v13 = vpop.f32.mrb[73].mxu0  ;;  %v3258_v7 = vmax.f32 %v3212_v16, %v3242_v53  ;;  %v3534_v53 = vld [vmem:[%s5816_s8 + $0x3] ss:$8 sm:$0x3] }
 0xc2b   :  { %v3220_v1 = vadd.f32 %v3219_v13, %v3085_v42  ;;  %3648 = vmatprep.subr.bf16.mxu1 %v3647_v30  ;;  %v3259_v46 = vmax.f32 %v3214_v28, %v3243_v18  ;;  %v3533_v30 = vld [vmem:[%s5816_s8 + $0x2] ss:$8 sm:$0x3] }
 0xc2c   :  { %v3244_v59 = vmul.f32 0.01, %v3218_v2  ;;  %3650 = vmatpush1.bf16.msra.mxu1 %v3649_v32  ;;  %v6057_v18 = vld [vmem:[#allocation21_spill] sm:$0xff] }
 0xc2d   :  { %v3245_v44 = vmul.f32 0.01, %v3220_v1  ;;  %v3223_v22 = vpop.f32.mrb[74].mxu0 }
 0xc2e   :  { %v3260_v4 = vmax.f32 %v3218_v2, %v3244_v59  ;;  %v3224_v36 = vadd.f32 %v3223_v22, %v3090_v26  ;;  %v3225_v9 = vpop.f32.mrb[75].mxu0  ;;  %v6058_v59 = vld [vmem:[#allocation22_spill] sm:$0xff]  ;;  %v3410_v22 = vrot.slane %v3534_v53, %v6057_v18 }
 0xc2f   :  { %v3261_v62 = vmax.f32 %v3220_v1, %v3245_v44  ;;  %v3226_v61 = vadd.f32 %v3225_v9, %v3090_v26  ;;  %v3395_v1 = vrot.slane %v3533_v30, %v6057_v18  ;;  %v3399_v26 = vrot.slane %v3533_v30, %v6058_v59 }
 0xc30   :  { %v3653_v17 = vpack.c.bf16 %v3260_v4, %v3258_v7  ;;  %v3246_v10 = vmul.f32 0.01, %v3224_v36  ;;  %v3414_v7 = vrot.slane %v3534_v53, %v6058_v59 }
 0xc31   :  { %v3229_v23 = vpop.f32.mrb[76].mxu0  ;;  %v3651_v50 = vpack.c.bf16 %v3261_v62, %v3259_v46  ;;  %v3247_v3 = vmul.f32 0.01, %v3226_v61 }
 0xc32   :  { %v3230_v47 = vadd.f32 %v3229_v23, %v3095_v21  ;;  %v3231_v57 = vpop.f32.mrb[77].mxu0  ;;  %v3262_v58 = vmax.f32 %v3224_v36, %v3246_v10 }
 0xc33   :  { %v3232_v37 = vadd.f32 %v3231_v57, %v3095_v21  ;;  %3652 = vmatprep.subr.bf16.mxu1 %v3651_v50  ;;  %v3263_v54 = vmax.f32 %v3226_v61, %v3247_v3 }
 0xc34   :  { %v3248_v34 = vmul.f32 0.01, %v3230_v47  ;;  %3654 = vmatpush1.bf16.msra.mxu1 %v3653_v17 }
 0xc35   :  { %v3249_v8 = vmul.f32 0.01, %v3232_v37 }
 0xc36   :  { %v3264_v52 = vmax.f32 %v3230_v47, %v3248_v34 }
 0xc37   :  { %v3265_v38 = vmax.f32 %v3232_v37, %v3249_v8 }
 0xc38   :  { %v3657_v6 = vpack.c.bf16 %v3264_v52, %v3262_v58 }
 0xc39   :  { %v3655_v12 = vpack.c.bf16 %v3265_v38, %v3263_v54 }
 0xc3b   :  { %3656 = vmatprep.subr.bf16.mxu1 %v3655_v12 }
 0xc3c   :  { %3658 = vmatpush1.bf16.msra.mxu1 %v3657_v6 }
 0xc3f   :  { %3531 = vmatmul.mubr.msk.f32.vlgmr.msra.gmra.mrb[74].mxu1 %vm283_vm1, %v3266_v60 }
 0xc40   :  { %3344 = vmatprep.mubr.f32.mxu1 %v6056_v29 }
 0xc43   :  { %3532 = vmatmul.mubr.msk.f32.gmra.mrb[76].mxu1 %vm283_vm1, %v3267_v19 }
 0xd12   :  { %v3340_v24 = vpop.f32.mrb[74].mxu1 }
 0xd13   :  { %v3361_v15 = vmul.f32 %v3340_v24, %v3340_v24  ;;  %v3342_v5 = vpop.f32.mrb[75].mxu1 }
 0xd14   :  { %v3353_v55 = vadd.f32 %v3342_v5, %v3340_v24  ;;  %v3362_v56 = vmul.f32 %v3342_v5, %v3342_v5 }
 0xd16   :  { %3354 = vadd.xlane.f32.xlu0 %v3353_v55  ;;  %v3346_v11 = vpop.f32.mrb[76].mxu1  ;;  %v3365_v20 = vadd.f32 %v3362_v56, %v3361_v15 }
 0xd17   :  { %v3363_v31 = vmul.f32 %v3346_v11, %v3346_v11  ;;  %v3348_v45 = vpop.f32.mrb[77].mxu1 }
 0xd18   :  { %v3356_v39 = vadd.f32 %v3348_v45, %v3346_v11  ;;  %v3364_v49 = vmul.f32 %v3348_v45, %v3348_v45 }
 0xd1a   :  { %v3368_v0 = vadd.f32 %v3364_v49, %v3363_v31  ;;  %3366 = vadd.xlane.f32.xlu0 %v3365_v20  ;;  %3357 = vadd.xlane.f32.xlu1 %v3356_v39 }
 0xd1e   :  { %3369 = vadd.xlane.f32.xlu0 %v3368_v0 }
 0xda3   :  { %v3355_v29 = vpop.xlane.xlu0 %3354 }
 0xda4   :  { %v3359_v35 = vmul.f32 0.00390625, %v3355_v29 }
 0xda6   :  { %v3373_v33 = vmul.f32 %v3359_v35, %v3359_v35  ;;  %v3379_v2 = vsub.f32 %v3340_v24, %v3359_v35  ;;  %v3380_v13 = vsub.f32 %v3342_v5, %v3359_v35 }
 0xda7   :  { %v3367_v51 = vpop.xlane.xlu0 %3366  ;;  %v3358_v14 = vpop.xlane.xlu1 %3357 }
 0xda8   :  { %v3371_v27 = vmul.f32 0.00390625, %v3367_v51  ;;  %v3360_v25 = vmul.f32 0.00390625, %v3358_v14 }
 0xdaa   :  { %v3375_v63 = vsub.f32 %v3371_v27, %v3373_v33  ;;  %v3374_v16 = vmul.f32 %v3360_v25, %v3360_v25  ;;  %v3381_v62 = vsub.f32 %v3346_v11, %v3360_v25  ;;  %v3382_v61 = vsub.f32 %v3348_v45, %v3360_v25 }
 0xdab   :  { %v3370_v48 = vpop.xlane.xlu0 %3369 }
 0xdac   :  { %v3377_v40 = vmax.f32 %v3375_v63, 0.0  ;;  %v3372_v41 = vmul.f32 0.00390625, %v3370_v48 }
 0xdae   :  { %v3383_v28 = vadd.f32 1e-05, %v3377_v40  ;;  %v3376_v32 = vsub.f32 %v3372_v41, %v3374_v16 }
 0xdb0   :  { %3762 = vrsqrt.f32 %v3383_v28  ;;  %v3378_v42 = vmax.f32 %v3376_v32, 0.0 }
 0xdb2   :  { %v3384_v43 = vadd.f32 1e-05, %v3378_v42 }
 0xdb4   :  { %3764 = vrsqrt.f32 %v3384_v43 }
 0xdba   :  { %v3763_v44 = vpop.eup %3762 }
 0xdbb   :  { %v3387_v4 = vmul.f32 %v3763_v44, %v3379_v2  ;;  %v3388_v36 = vmul.f32 %v3763_v44, %v3380_v13 }
 0xdbd   :  { %v3402_v9 = vmul.f32 %v3395_v1, %v3387_v4  ;;  %v3403_v46 = vmul.f32 %v3399_v26, %v3388_v36 }
 0xdbe   :  { %v3765_v17 = vpop.eup %3764 }
 0xdbf   :  { %v3417_v21 = vadd.f32 %v3410_v22, %v3402_v9  ;;  %v3418_v23 = vadd.f32 %v3414_v7, %v3403_v46  ;;  %v3389_v50 = vmul.f32 %v3765_v17, %v3381_v62  ;;  %v3390_v10 = vmul.f32 %v3765_v17, %v3382_v61 }
 0xdc1   :  { %v3421_v47 = vmul.f32 0.01, %v3417_v21  ;;  %v3422_v57 = vmul.f32 0.01, %v3418_v23  ;;  %v3404_v3 = vmul.f32 %v3395_v1, %v3389_v50  ;;  %v3405_v37 = vmul.f32 %v3399_v26, %v3390_v10 }
 0xdc3   :  { %v3425_v34 = vmax.f32 %v3417_v21, %v3421_v47  ;;  %v3426_v8 = vmax.f32 %v3418_v23, %v3422_v57  ;;  %v3419_v58 = vadd.f32 %v3410_v22, %v3404_v3  ;;  %v3420_v52 = vadd.f32 %v3414_v7, %v3405_v37 }
 0xdc5   :  { %3535 = vst [vmem:[%s5817_s9 + $0x40] sm:$0xff] %v3425_v34  ;;  %3536 = vst [vmem:[%s5817_s9 + $0x48] sm:$0xff] %v3426_v8  ;;  %v3423_v54 = vmul.f32 0.01, %v3419_v58  ;;  %v3424_v38 = vmul.f32 0.01, %v3420_v52 }
 0xdc7   :  { %v3427_v6 = vmax.f32 %v3419_v58, %v3423_v54  ;;  %v3428_v12 = vmax.f32 %v3420_v52, %v3424_v38 }
 0xdc9   :  { %3537 = vst [vmem:[%s5817_s9 + $0x50] sm:$0xff] %v3427_v6  ;;  %3538 = vst [vmem:[%s5817_s9 + $0x58] sm:$0xff] %v3428_v12 }
 0xdca   :  { %3438 = vsyncpa [#allocation3], 1 }

</bundles_post_ra>
